<compile_context>
chip_gen: v7x
topology: tpu7x:2x2x1
jax: 0.10.0
libtpu: 0.0.40
codegen_flags: <defaults>
</compile_context>

<pallas_src>
import functools

import jax
import jax.numpy as jnp
from jax.experimental import pallas as pl
from jax.experimental.pallas import tpu as pltpu

HIDDEN = 32        # hidden_dim
INPUT_DIM = 4      # input_dim
CTX_DIM = 3
N_HEADS = 4
HEAD_DIM = HIDDEN // N_HEADS
N_STEPS = 1000

# Flip to jnp.bfloat16 for ~3x lower per-pass MXU latency on the serial LSTM
# chain (fp32 matmuls are multi-pass emulated on v5e/v6e/v7x).  Kept fp32 by
# default for numeric parity with the fp32 PyTorch reference.
MATMUL_DTYPE = jnp.float32


def _round8(n):
    return ((n + 7) // 8) * 8


# ---------------------------------------------------------------------------
# Weight-slab row layout (every block start is a multiple of 8 sublanes).
# Rows [_R_L0_WIH, _R_VECS) are 128-lane-wide blocks; rows >= _R_VECS use
# lanes 0:HIDDEN only.
# ---------------------------------------------------------------------------
_R_L0_WIH = 0
_R_L0_WHH = _R_L0_WIH + _round8(INPUT_DIM)
_R_L0_B = _R_L0_WHH + HIDDEN
_R_L1_WIH = _R_L0_B + 8
_R_L1_WHH = _R_L1_WIH + HIDDEN
_R_L1_B = _R_L1_WHH + HIDDEN
_R_QKV_W = _R_L1_B + 8
_R_QKV_B = _R_QKV_W + HIDDEN
_R_VECS = _R_QKV_B + 8
_N_VECS = 16
_R_TE_W2 = _R_VECS + _N_VECS
_R_CE_W2 = _R_TE_W2 + HIDDEN
_R_CE_W3 = _R_CE_W2 + HIDDEN
_R_AT_WO = _R_CE_W3 + HIDDEN
_R_NP_W1C = _R_AT_WO + HIDDEN
_R_NP_W1T = _R_NP_W1C + HIDDEN
_R_NP_W1X = _R_NP_W1T + HIDDEN
_R_NP_W2 = _R_NP_W1X + HIDDEN
_R_NP_W3 = _R_NP_W2 + HIDDEN
_W_ROWS = _R_NP_W3 + HIDDEN

# Row indices inside the 16-row "small vectors" block (lanes 0:HIDDEN).
_V_TE_W1, _V_TE_B1, _V_TE_B2 = 0, 1, 2
_V_CE_B1, _V_CE_B2, _V_CE_B3 = 3, 4, 5
_V_AT_BO, _V_NP_B1, _V_NP_B2, _V_NP_B3 = 6, 7, 8, 9
_V_CE_W1 = 10          # 3 rows


def _vmem():
    return pl.BlockSpec(memory_space=pltpu.MemorySpace.VMEM)


def _sigmoid(v):
    # One EUP op (tanh); saturates cleanly for large |v|.
    return 0.5 * jnp.tanh(0.5 * v) + 0.5


def _silu(v):
    return v * _sigmoid(v)


# ---------------------------------------------------------------------------
# Fused kernel
# ---------------------------------------------------------------------------
def timegrad_fused_kernel(act_ref, w_ref, out_ref, *, batch, seq, dim):
    B, S, D = batch, seq, dim
    H = HIDDEN
    SB = S * B
    f32 = jnp.float32

    def dot(a, b):
        return jnp.dot(a.astype(MATMUL_DTYPE), b.astype(MATMUL_DTYPE),
                       preferred_element_type=f32)

    # ---- unpack activation slab (seq-major rows s*B+b) -----------------------
    act = act_ref[...]                                  # (S*B, D+4)
    x_flat = act[:, 0:D]                                # (S*B, D)
    ctx = act[:, D:D + CTX_DIM]                         # (S*B, 3)
    t_scaled = act[0:B, D + CTX_DIM:D + CTX_DIM + 1]    # (B, 1), pre /N_STEPS

    # ---- unpack weight slab (static sublane-aligned views) -------------------
    vecs = w_ref[_R_VECS:_R_VECS + _N_VECS, 0:H]        # (16, H)
    te_w1 = vecs[_V_TE_W1:_V_TE_W1 + 1]
    te_b1 = vecs[_V_TE_B1:_V_TE_B1 + 1]
    te_b2 = vecs[_V_TE_B2:_V_TE_B2 + 1]
    ce_b1 = vecs[_V_CE_B1:_V_CE_B1 + 1]
    ce_b2 = vecs[_V_CE_B2:_V_CE_B2 + 1]
    ce_b3 = vecs[_V_CE_B3:_V_CE_B3 + 1]
    at_bo = vecs[_V_AT_BO:_V_AT_BO + 1]
    np_b1 = vecs[_V_NP_B1:_V_NP_B1 + 1]
    np_b2 = vecs[_V_NP_B2:_V_NP_B2 + 1]
    np_b3 = vecs[_V_NP_B3:_V_NP_B3 + 1]
    ce_w1 = vecs[_V_CE_W1:_V_CE_W1 + CTX_DIM]           # (3, H)

    te_w2 = w_ref[_R_TE_W2:_R_TE_W2 + H, 0:H]
    ce_w2 = w_ref[_R_CE_W2:_R_CE_W2 + H, 0:H]
    ce_w3 = w_ref[_R_CE_W3:_R_CE_W3 + H, 0:H]
    at_wo = w_ref[_R_AT_WO:_R_AT_WO + H, 0:H]
    np_w1c = w_ref[_R_NP_W1C:_R_NP_W1C + H, 0:H]
    np_w1t = w_ref[_R_NP_W1T:_R_NP_W1T + H, 0:H]
    np_w1x = w_ref[_R_NP_W1X:_R_NP_W1X + H, 0:H]
    np_w2 = w_ref[_R_NP_W2:_R_NP_W2 + H, 0:H]
    np_w3 = w_ref[_R_NP_W3:_R_NP_W3 + H, 0:H]           # only first D cols real

    l0_wih = w_ref[_R_L0_WIH:_R_L0_WIH + D, :]          # (D, 4H)
    l0_whh = w_ref[_R_L0_WHH:_R_L0_WHH + H, :]          # (H, 4H)
    l0_b = w_ref[_R_L0_B:_R_L0_B + 1, :]                # (1, 4H)
    l1_wih = w_ref[_R_L1_WIH:_R_L1_WIH + H, :]
    l1_whh = w_ref[_R_L1_WHH:_R_L1_WHH + H, :]
    l1_b = w_ref[_R_L1_B:_R_L1_B + 1, :]
    at_wqkv = w_ref[_R_QKV_W:_R_QKV_W + H, :]           # (H, 4H), first 3H real
    at_bqkv = w_ref[_R_QKV_B:_R_QKV_B + 1, :]

    # ---- time embedding: (B,1) -> (B,H) --------------------------------------
    th = _silu(t_scaled * te_w1 + te_b1)                # (B,1)*(1,H) outer product
    t_emb = dot(th, te_w2) + te_b2                      # (B,H)

    # ---- context encoder, token-wise (seq-major rows) -------------------------
    ch = _silu(dot(ctx, ce_w1) + ce_b1)
    ch = _silu(dot(ch, ce_w2) + ce_b2)
    ctx_emb = dot(ch, ce_w3) + ce_b3                    # (S*B, H)

    # ---- 2-layer LSTM, wavefronted (gate order [i,f,o,g], g pre-scaled x2) ----
    # Layer-0 input projection hoisted over all steps (one matmul).
    xg0 = (dot(x_flat, l0_wih) + l0_b).reshape(S, B, 4 * H)

    lane = jax.lax.broadcasted_iota(jnp.int32, (B, 4 * H), 1)
    sig_lanes = lane < 3 * H                            # hoisted lane mask

    def cell(gates, c_prev):
        # One EUP push covers all four gates: g columns arrive pre-scaled by 2,
        # so tanh(0.5*gates) == tanh(g) there and sigmoid = 0.5*t+0.5 elsewhere.
        t_all = jnp.tanh(0.5 * gates)
        a = jnp.where(sig_lanes, 0.5 * t_all + 0.5, t_all)
        i_g = a[:, 0:H]
        f_g = a[:, H:2 * H]
        o_g = a[:, 2 * H:3 * H]
        g_g = a[:, 3 * H:4 * H]
        c_new = f_g * c_prev + i_g * g_g
        h_new = o_g * jnp.tanh(c_new)
        return h_new, c_new

    zeros_bh = jnp.zeros((B, H), f32)
    h0, c0 = zeros_bh, zeros_bh
    h1, c1 = zeros_bh, zeros_bh
    h1_steps = []
    for s in range(S):                                  # static full unroll
        # layer 0, step s
        g0 = xg0[s] + dot(h0, l0_whh)
        h0, c0 = cell(g0, c0)
        # layer 1, step s (wavefront: depends only on h0[s] and h1[s-1], so the
        # scheduler overlaps it with layer-0 step s+1).
        g1 = dot(h0, l1_wih) + l1_b + dot(h1, l1_whh)
        h1, c1 = cell(g1, c1)
        h1_steps.append(h1)
    # TODO(synk): inter-layer LSTM dropout (p=0.1) is training-only; eval semantics.

    lstm_out = jnp.stack(h1_steps, axis=0)              # (S,B,H), register-built
    x2 = lstm_out.reshape(SB, H)

    # ---- multi-head self-attention + residual ---------------------------------
    # lstm_out (S,B,H) == MHA (N,L,E): attention mixes over the batch axis B,
    # batched over S, matching the reference (seq-first MHA fed batch-first).
    qkv = dot(x2, at_wqkv) + at_bqkv                    # (S*B, 4H); lanes 3H.. zero
    qkv3 = qkv.reshape(S, B, 4 * H)
    scale = 1.0 / float(HEAD_DIM) ** 0.5
    heads = []
    for hh in range(N_HEADS):                           # tiny (S,B,B) score math
        off = hh * HEAD_DIM
        q = qkv3[:, :, off:off + HEAD_DIM]
        k = qkv3[:, :, H + off:H + off + HEAD_DIM]
        v = qkv3[:, :, 2 * H + off:2 * H + off + HEAD_DIM]
        sc = jnp.einsum('nqd,nkd->nqk', q, k, preferred_element_type=f32) * scale
        sc = sc - jnp.max(sc, axis=-1, keepdims=True)
        p = jnp.exp(sc)
        p = p / jnp.sum(p, axis=-1, keepdims=True)      # exact softmax (2 keys)
        heads.append(jnp.einsum('nqk,nkd->nqd', p, v, preferred_element_type=f32))
    # TODO(synk): attention dropout (p=0.1) is training-only; eval semantics.
    ctx_all = jnp.concatenate(heads, axis=-1).reshape(SB, H)
    attn = dot(ctx_all, at_wo) + at_bo                  # single out-projection
    combined = x2 + attn                                # lstm_out + attn_out

    # ---- noise predictor; feature concat folded into three split matmuls ------
    t_term = jnp.broadcast_to(dot(t_emb, np_w1t)[None, :, :], (S, B, H)).reshape(SB, H)
    pre = dot(combined, np_w1c) + dot(ctx_emb, np_w1x) + t_term + np_b1
    nh = _silu(pre)
    nh = _silu(dot(nh, np_w2) + np_b2)
    noise_wide = dot(nh, np_w3) + np_b3                 # (S*B, H); first D cols real

    # ---- pack all outputs into one lane-dense store ----------------------------
    hc = jnp.concatenate(
        [jnp.stack([h0, h1], axis=0).reshape(2 * B, H),
         jnp.stack([c0, c1], axis=0).reshape(2 * B, H)], axis=0)        # (4B, H)
    hc_full = jnp.concatenate(
        [hc, jnp.zeros((SB - 4 * B, H), f32)], axis=0)                  # (S*B, H)
    out_ref[...] = jnp.concatenate([noise_wide, hc_full], axis=1)       # (S*B, 2H)


# ---------------------------------------------------------------------------
# Parameters (deterministic synthetic init, PyTorch-style layout)
# ---------------------------------------------------------------------------
def init_params(key, input_dim=INPUT_DIM, hidden=HIDDEN):
    keys = iter(jax.random.split(key, 64))

    def lin(in_d, out_d, scale=0.1):
        w = jax.random.normal(next(keys), (in_d, out_d), jnp.float32) * scale
        b = jax.random.normal(next(keys), (1, out_d), jnp.float32) * scale
        return w, b

    p = {}
    # time_embed: Linear(1,H) -> SiLU -> Linear(H,H)
    p['te_w1'], p['te_b1'] = lin(1, hidden)
    p['te_w2'], p['te_b2'] = lin(hidden, hidden)
    # context_encoder: Linear(3,H) -> SiLU -> Linear(H,H) -> SiLU -> Linear(H,H)
    p['ce_w1'], p['ce_b1'] = lin(3, hidden)
    p['ce_w2'], p['ce_b2'] = lin(hidden, hidden)
    p['ce_w3'], p['ce_b3'] = lin(hidden, hidden)
    # 2-layer LSTM: (in,4H), PyTorch gate order [i,f,g,o]; biases pre-folded
    # (for real PyTorch weights, sum b_ih + b_hh before _prep_params).
    p['l0_wih'], p['l0_b'] = lin(input_dim, 4 * hidden)
    p['l0_whh'], _ = lin(hidden, 4 * hidden)
    p['l1_wih'], p['l1_b'] = lin(hidden, 4 * hidden)
    p['l1_whh'], _ = lin(hidden, 4 * hidden)
    # MultiheadAttention: q/k/v in_proj split + out_proj (stored (in,out))
    p['at_wq'], p['at_bq'] = lin(hidden, hidden)
    p['at_wk'], p['at_bk'] = lin(hidden, hidden)
    p['at_wv'], p['at_bv'] = lin(hidden, hidden)
    p['at_wo'], p['at_bo'] = lin(hidden, hidden)
    # noise_predictor: Linear(3H,H) -> SiLU -> Linear(H,H) -> SiLU -> Linear(H,D)
    p['np_w1'], p['np_b1'] = lin(3 * hidden, hidden)
    p['np_w2'], p['np_b2'] = lin(hidden, hidden)
    p['np_w3'], p['np_b3'] = lin(hidden, input_dim)
    return p


def _prep_params(p):
    """Repack PyTorch-layout params into ONE lane-dense slab (folds under jit)."""
    H = HIDDEN
    f32 = jnp.float32

    def pad(a, rows, cols=128):
        return jnp.pad(a, ((0, rows - a.shape[0]), (0, cols - a.shape[1])))

    def prep_gates(w):
        # [i,f,g,o] columns -> [i,f,o, 2*g]; the x2 on g lets the kernel use a
        # single tanh(0.5*gates) for all four gates.
        return jnp.concatenate(
            [w[:, :2 * H], w[:, 3 * H:], 2.0 * w[:, 2 * H:3 * H]], axis=1)

    wqkv = jnp.concatenate([p['at_wq'], p['at_wk'], p['at_wv']], axis=1)   # (H,3H)
    bqkv = jnp.concatenate([p['at_bq'], p['at_bk'], p['at_bv']], axis=1)   # (1,3H)

    vecs = jnp.concatenate([
        p['te_w1'], p['te_b1'], p['te_b2'],
        p['ce_b1'], p['ce_b2'], p['ce_b3'],
        p['at_bo'], p['np_b1'], p['np_b2'], pad(p['np_b3'], 1, H),
        p['ce_w1'],
        jnp.zeros((_N_VECS - 10 - CTX_DIM, H), f32),
    ], axis=0)                                                             # (16,H)

    small = jnp.concatenate([
        vecs, p['te_w2'], p['ce_w2'], p['ce_w3'], p['at_wo'],
        p['np_w1'][:H], p['np_w1'][H:2 * H], p['np_w1'][2 * H:],
        p['np_w2'], pad(p['np_w3'], H, H),
    ], axis=0)                                                             # (304,H)

    slab = jnp.concatenate([
        pad(prep_gates(p['l0_wih']), _round8(INPUT_DIM)),
        pad(prep_gates(p['l0_whh']), H),
        pad(prep_gates(p['l0_b']), 8),
        pad(prep_gates(p['l1_wih']), H),
        pad(prep_gates(p['l1_whh']), H),
        pad(prep_gates(p['l1_b']), 8),
        pad(wqkv, H),
        pad(bqkv, 8),
        pad(small, small.shape[0]),
    ], axis=0).astype(f32)                                                 # (464,128)
    assert slab.shape == (_W_ROWS, 128)
    return slab


# ---------------------------------------------------------------------------
# Forward: one fused pallas_call (2 input DMAs, 1 output DMA)
# ---------------------------------------------------------------------------
def timegrad_forward(params, x, t, context):
    B, S, D = x.shape
    H = HIDDEN
    assert S >= 4, "output packing assumes S*B >= 4*B"

    wslab = _prep_params(params)                         # constant under jit

    # Pack activations seq-major into one slab: [x | ctx | t/N_STEPS].
    t_scaled = (t.astype(jnp.float32) / N_STEPS).reshape(1, B, 1)
    act = jnp.concatenate([
        jnp.transpose(x, (1, 0, 2)),                     # (S,B,D)
        jnp.transpose(context, (1, 0, 2)),               # (S,B,3)
        jnp.broadcast_to(t_scaled, (S, B, 1)),
    ], axis=-1).reshape(S * B, D + CTX_DIM + 1)

    kernel = functools.partial(timegrad_fused_kernel, batch=B, seq=S, dim=D)
    out = pl.pallas_call(
        kernel,
        out_shape=jax.ShapeDtypeStruct((S * B, 2 * H), jnp.float32),
        in_specs=[_vmem(), _vmem()],
        out_specs=_vmem(),
    )(act, wslab)

    noise = jnp.transpose(out[:, :D].reshape(S, B, D), (1, 0, 2))    # (B,S,D)
    h_n = out[0:2 * B, H:2 * H].reshape(2, B, H)
    c_n = out[2 * B:4 * B, H:2 * H].reshape(2, B, H)
    return noise, (h_n, c_n)


if __name__ == "__main__":
    key = jax.random.PRNGKey(0)
    k_p, k_x, k_t, k_c = jax.random.split(key, 4)
    B, S = 2, 8
    params = init_params(k_p)
    x = jax.random.normal(k_x, (B, S, INPUT_DIM), jnp.float32)
    t = jax.random.randint(k_t, (B,), 0, N_STEPS, jnp.int32)
    context = jax.random.normal(k_c, (B, S, 3), jnp.float32)

    fwd = jax.jit(functools.partial(timegrad_forward, params))
    noise, (h_n, c_n) = fwd(x, t, context)
    jax.block_until_ready((noise, h_n, c_n))

    assert noise.shape == (B, S, INPUT_DIM)
    assert h_n.shape == (2, B, HIDDEN) and c_n.shape == (2, B, HIDDEN)
    assert noise.dtype == jnp.float32
    assert bool(jnp.all(jnp.isfinite(noise)))
    print("KERNEL_OK")
</pallas_src>

<mosaic_0001>
module attributes {stable_mosaic.version = 11 : i64} {
  func.func @timegrad_fused_kernel(%arg0: memref<16x8xf32, #tpu.memory_space<vmem>>, %arg1: memref<464x128xf32, #tpu.memory_space<vmem>>, %arg2: memref<16x64xf32, #tpu.memory_space<vmem>>) attributes {dimension_semantics = [], scalar_prefetch = 0 : i64, scratch_operands = 0 : i64, tpu.core_type = #tpu.core_type<tc>} {
    %c0 = arith.constant 0 : index
    %c0_0 = arith.constant 0 : index
    %0 = vector.load %arg0[%c0, %c0_0] : memref<16x8xf32, #tpu.memory_space<vmem>>, vector<16x8xf32>
    %1 = vector.extract_strided_slice %0 {offsets = [0, 0], sizes = [16, 4], strides = [1, 1]} : vector<16x8xf32> to vector<16x4xf32>
    %2 = vector.extract_strided_slice %0 {offsets = [0, 4], sizes = [16, 3], strides = [1, 1]} : vector<16x8xf32> to vector<16x3xf32>
    %3 = vector.extract_strided_slice %0 {offsets = [0, 7], sizes = [2, 1], strides = [1, 1]} : vector<16x8xf32> to vector<2x1xf32>
    %c160 = arith.constant 160 : index
    %c0_1 = arith.constant 0 : index
    %4 = vector.load %arg1[%c160, %c0_1] : memref<464x128xf32, #tpu.memory_space<vmem>>, vector<16x32xf32>
    %5 = vector.extract_strided_slice %4 {offsets = [0, 0], sizes = [1, 32], strides = [1, 1]} : vector<16x32xf32> to vector<1x32xf32>
    %6 = vector.extract_strided_slice %4 {offsets = [1, 0], sizes = [1, 32], strides = [1, 1]} : vector<16x32xf32> to vector<1x32xf32>
    %7 = vector.extract_strided_slice %4 {offsets = [2, 0], sizes = [1, 32], strides = [1, 1]} : vector<16x32xf32> to vector<1x32xf32>
    %8 = vector.extract_strided_slice %4 {offsets = [3, 0], sizes = [1, 32], strides = [1, 1]} : vector<16x32xf32> to vector<1x32xf32>
    %9 = vector.extract_strided_slice %4 {offsets = [4, 0], sizes = [1, 32], strides = [1, 1]} : vector<16x32xf32> to vector<1x32xf32>
    %10 = vector.extract_strided_slice %4 {offsets = [5, 0], sizes = [1, 32], strides = [1, 1]} : vector<16x32xf32> to vector<1x32xf32>
    %11 = vector.extract_strided_slice %4 {offsets = [6, 0], sizes = [1, 32], strides = [1, 1]} : vector<16x32xf32> to vector<1x32xf32>
    %12 = vector.extract_strided_slice %4 {offsets = [7, 0], sizes = [1, 32], strides = [1, 1]} : vector<16x32xf32> to vector<1x32xf32>
    %13 = vector.extract_strided_slice %4 {offsets = [8, 0], sizes = [1, 32], strides = [1, 1]} : vector<16x32xf32> to vector<1x32xf32>
    %14 = vector.extract_strided_slice %4 {offsets = [9, 0], sizes = [1, 32], strides = [1, 1]} : vector<16x32xf32> to vector<1x32xf32>
    %15 = vector.extract_strided_slice %4 {offsets = [10, 0], sizes = [3, 32], strides = [1, 1]} : vector<16x32xf32> to vector<3x32xf32>
    %c176 = arith.constant 176 : index
    %c0_2 = arith.constant 0 : index
    %16 = vector.load %arg1[%c176, %c0_2] : memref<464x128xf32, #tpu.memory_space<vmem>>, vector<32x32xf32>
    %c208 = arith.constant 208 : index
    %c0_3 = arith.constant 0 : index
    %17 = vector.load %arg1[%c208, %c0_3] : memref<464x128xf32, #tpu.memory_space<vmem>>, vector<32x32xf32>
    %c240 = arith.constant 240 : index
    %c0_4 = arith.constant 0 : index
    %18 = vector.load %arg1[%c240, %c0_4] : memref<464x128xf32, #tpu.memory_space<vmem>>, vector<32x32xf32>
    %c272 = arith.constant 272 : index
    %c0_5 = arith.constant 0 : index
    %19 = vector.load %arg1[%c272, %c0_5] : memref<464x128xf32, #tpu.memory_space<vmem>>, vector<32x32xf32>
    %c304 = arith.constant 304 : index
    %c0_6 = arith.constant 0 : index
    %20 = vector.load %arg1[%c304, %c0_6] : memref<464x128xf32, #tpu.memory_space<vmem>>, vector<32x32xf32>
    %c336 = arith.constant 336 : index
    %c0_7 = arith.constant 0 : index
    %21 = vector.load %arg1[%c336, %c0_7] : memref<464x128xf32, #tpu.memory_space<vmem>>, vector<32x32xf32>
    %c368 = arith.constant 368 : index
    %c0_8 = arith.constant 0 : index
    %22 = vector.load %arg1[%c368, %c0_8] : memref<464x128xf32, #tpu.memory_space<vmem>>, vector<32x32xf32>
    %c400 = arith.constant 400 : index
    %c0_9 = arith.constant 0 : index
    %23 = vector.load %arg1[%c400, %c0_9] : memref<464x128xf32, #tpu.memory_space<vmem>>, vector<32x32xf32>
    %c432 = arith.constant 432 : index
    %c0_10 = arith.constant 0 : index
    %24 = vector.load %arg1[%c432, %c0_10] : memref<464x128xf32, #tpu.memory_space<vmem>>, vector<32x32xf32>
    %c0_11 = arith.constant 0 : index
    %c0_12 = arith.constant 0 : index
    %25 = vector.load %arg1[%c0_11, %c0_12] : memref<464x128xf32, #tpu.memory_space<vmem>>, vector<4x128xf32>
    %c8 = arith.constant 8 : index
    %c0_13 = arith.constant 0 : index
    %26 = vector.load %arg1[%c8, %c0_13] : memref<464x128xf32, #tpu.memory_space<vmem>>, vector<32x128xf32>
    %c40 = arith.constant 40 : index
    %c0_14 = arith.constant 0 : index
    %27 = vector.load %arg1[%c40, %c0_14] : memref<464x128xf32, #tpu.memory_space<vmem>>, vector<1x128xf32>
    %c48 = arith.constant 48 : index
    %c0_15 = arith.constant 0 : index
    %28 = vector.load %arg1[%c48, %c0_15] : memref<464x128xf32, #tpu.memory_space<vmem>>, vector<32x128xf32>
    %c80 = arith.constant 80 : index
    %c0_16 = arith.constant 0 : index
    %29 = vector.load %arg1[%c80, %c0_16] : memref<464x128xf32, #tpu.memory_space<vmem>>, vector<32x128xf32>
    %c112 = arith.constant 112 : index
    %c0_17 = arith.constant 0 : index
    %30 = vector.load %arg1[%c112, %c0_17] : memref<464x128xf32, #tpu.memory_space<vmem>>, vector<1x128xf32>
    %c120 = arith.constant 120 : index
    %c0_18 = arith.constant 0 : index
    %31 = vector.load %arg1[%c120, %c0_18] : memref<464x128xf32, #tpu.memory_space<vmem>>, vector<32x128xf32>
    %c152 = arith.constant 152 : index
    %c0_19 = arith.constant 0 : index
    %32 = vector.load %arg1[%c152, %c0_19] : memref<464x128xf32, #tpu.memory_space<vmem>>, vector<1x128xf32>
    %33 = vector.broadcast %3 : vector<2x1xf32> to vector<2x32xf32>
    %34 = vector.broadcast %5 : vector<1x32xf32> to vector<2x32xf32>
    %35 = arith.mulf %33, %34 : vector<2x32xf32>
    %36 = vector.broadcast %6 : vector<1x32xf32> to vector<2x32xf32>
    %37 = arith.addf %35, %36 : vector<2x32xf32>
    %cst = arith.constant 5.000000e-01 : f32
    %38 = vector.broadcast %cst : f32 to vector<2x32xf32>
    %39 = arith.mulf %38, %37 : vector<2x32xf32>
    %40 = math.tanh %39 : vector<2x32xf32>
    %cst_20 = arith.constant 5.000000e-01 : f32
    %41 = vector.broadcast %cst_20 : f32 to vector<2x32xf32>
    %42 = arith.mulf %41, %40 : vector<2x32xf32>
    %cst_21 = arith.constant 5.000000e-01 : f32
    %43 = vector.broadcast %cst_21 : f32 to vector<2x32xf32>
    %44 = arith.addf %42, %43 : vector<2x32xf32>
    %45 = arith.mulf %37, %44 : vector<2x32xf32>
    %cst_22 = arith.constant dense<0.000000e+00> : vector<2x32xf32>
    %46 = tpu.matmul %45, %16, %cst_22 {dimension_numbers = #tpu.dot_dimension_numbers<[1], [0], [0], [1], [0, 0, 1, 1], [], []>} : vector<2x32xf32>, vector<32x32xf32>, vector<2x32xf32> -> vector<2x32xf32>
    %47 = vector.broadcast %7 : vector<1x32xf32> to vector<2x32xf32>
    %48 = arith.addf %46, %47 : vector<2x32xf32>
    %cst_23 = arith.constant dense<0.000000e+00> : vector<16x32xf32>
    %49 = tpu.matmul %2, %15, %cst_23 {dimension_numbers = #tpu.dot_dimension_numbers<[1], [0], [0], [1], [0, 0, 1, 1], [], []>} : vector<16x3xf32>, vector<3x32xf32>, vector<16x32xf32> -> vector<16x32xf32>
    %50 = vector.broadcast %8 : vector<1x32xf32> to vector<16x32xf32>
    %51 = arith.addf %49, %50 : vector<16x32xf32>
    %cst_24 = arith.constant 5.000000e-01 : f32
    %52 = vector.broadcast %cst_24 : f32 to vector<16x32xf32>
    %53 = arith.mulf %52, %51 : vector<16x32xf32>
    %54 = math.tanh %53 : vector<16x32xf32>
    %cst_25 = arith.constant 5.000000e-01 : f32
    %55 = vector.broadcast %cst_25 : f32 to vector<16x32xf32>
    %56 = arith.mulf %55, %54 : vector<16x32xf32>
    %cst_26 = arith.constant 5.000000e-01 : f32
    %57 = vector.broadcast %cst_26 : f32 to vector<16x32xf32>
    %58 = arith.addf %56, %57 : vector<16x32xf32>
    %59 = arith.mulf %51, %58 : vector<16x32xf32>
    %cst_27 = arith.constant dense<0.000000e+00> : vector<16x32xf32>
    %60 = tpu.matmul %59, %17, %cst_27 {dimension_numbers = #tpu.dot_dimension_numbers<[1], [0], [0], [1], [0, 0, 1, 1], [], []>} : vector<16x32xf32>, vector<32x32xf32>, vector<16x32xf32> -> vector<16x32xf32>
    %61 = vector.broadcast %9 : vector<1x32xf32> to vector<16x32xf32>
    %62 = arith.addf %60, %61 : vector<16x32xf32>
    %cst_28 = arith.constant 5.000000e-01 : f32
    %63 = vector.broadcast %cst_28 : f32 to vector<16x32xf32>
    %64 = arith.mulf %63, %62 : vector<16x32xf32>
    %65 = math.tanh %64 : vector<16x32xf32>
    %cst_29 = arith.constant 5.000000e-01 : f32
    %66 = vector.broadcast %cst_29 : f32 to vector<16x32xf32>
    %67 = arith.mulf %66, %65 : vector<16x32xf32>
    %cst_30 = arith.constant 5.000000e-01 : f32
    %68 = vector.broadcast %cst_30 : f32 to vector<16x32xf32>
    %69 = arith.addf %67, %68 : vector<16x32xf32>
    %70 = arith.mulf %62, %69 : vector<16x32xf32>
    %cst_31 = arith.constant dense<0.000000e+00> : vector<16x32xf32>
    %71 = tpu.matmul %70, %18, %cst_31 {dimension_numbers = #tpu.dot_dimension_numbers<[1], [0], [0], [1], [0, 0, 1, 1], [], []>} : vector<16x32xf32>, vector<32x32xf32>, vector<16x32xf32> -> vector<16x32xf32>
    %72 = vector.broadcast %10 : vector<1x32xf32> to vector<16x32xf32>
    %73 = arith.addf %71, %72 : vector<16x32xf32>
    %cst_32 = arith.constant dense<0.000000e+00> : vector<16x128xf32>
    %74 = tpu.matmul %1, %25, %cst_32 {dimension_numbers = #tpu.dot_dimension_numbers<[1], [0], [0], [1], [0, 0, 1, 1], [], []>} : vector<16x4xf32>, vector<4x128xf32>, vector<16x128xf32> -> vector<16x128xf32>
    %75 = vector.broadcast %27 : vector<1x128xf32> to vector<16x128xf32>
    %76 = arith.addf %74, %75 : vector<16x128xf32>
    %77 = vector.shape_cast %76 : vector<16x128xf32> to vector<8x2x128xf32>
    %78 = tpu.iota {dimensions = array<i32: 1>} : vector<2x128xi32>
    %c96_i32 = arith.constant 96 : i32
    %79 = vector.broadcast %c96_i32 : i32 to vector<2x128xi32>
    %80 = arith.cmpi slt, %78, %79 : vector<2x128xi32>
    %cst_33 = arith.constant 0.000000e+00 : f32
    %81 = vector.broadcast %cst_33 : f32 to vector<2x32xf32>
    %82 = vector.extract_strided_slice %77 {offsets = [0, 0, 0], sizes = [1, 2, 128], strides = [1, 1, 1]} : vector<8x2x128xf32> to vector<1x2x128xf32>
    %83 = vector.shape_cast %82 : vector<1x2x128xf32> to vector<2x128xf32>
    %cst_34 = arith.constant dense<0.000000e+00> : vector<2x128xf32>
    %84 = tpu.matmul %81, %26, %cst_34 {dimension_numbers = #tpu.dot_dimension_numbers<[1], [0], [0], [1], [0, 0, 1, 1], [], []>} : vector<2x32xf32>, vector<32x128xf32>, vector<2x128xf32> -> vector<2x128xf32>
    %85 = arith.addf %83, %84 : vector<2x128xf32>
    %cst_35 = arith.constant 5.000000e-01 : f32
    %86 = vector.broadcast %cst_35 : f32 to vector<2x128xf32>
    %87 = arith.mulf %86, %85 : vector<2x128xf32>
    %88 = math.tanh %87 : vector<2x128xf32>
    %cst_36 = arith.constant 5.000000e-01 : f32
    %89 = vector.broadcast %cst_36 : f32 to vector<2x128xf32>
    %90 = arith.mulf %89, %88 : vector<2x128xf32>
    %cst_37 = arith.constant 5.000000e-01 : f32
    %91 = vector.broadcast %cst_37 : f32 to vector<2x128xf32>
    %92 = arith.addf %90, %91 : vector<2x128xf32>
    %93 = arith.select %80, %92, %88 : vector<2x128xi1>, vector<2x128xf32>
    %94 = vector.extract_strided_slice %93 {offsets = [0, 0], sizes = [2, 32], strides = [1, 1]} : vector<2x128xf32> to vector<2x32xf32>
    %95 = vector.extract_strided_slice %93 {offsets = [0, 32], sizes = [2, 32], strides = [1, 1]} : vector<2x128xf32> to vector<2x32xf32>
    %96 = vector.extract_strided_slice %93 {offsets = [0, 64], sizes = [2, 32], strides = [1, 1]} : vector<2x128xf32> to vector<2x32xf32>
    %97 = vector.extract_strided_slice %93 {offsets = [0, 96], sizes = [2, 32], strides = [1, 1]} : vector<2x128xf32> to vector<2x32xf32>
    %98 = arith.mulf %95, %81 : vector<2x32xf32>
    %99 = arith.mulf %94, %97 : vector<2x32xf32>
    %100 = arith.addf %98, %99 : vector<2x32xf32>
    %101 = math.tanh %100 : vector<2x32xf32>
    %102 = arith.mulf %96, %101 : vector<2x32xf32>
    %cst_38 = arith.constant dense<0.000000e+00> : vector<2x128xf32>
    %103 = tpu.matmul %102, %28, %cst_38 {dimension_numbers = #tpu.dot_dimension_numbers<[1], [0], [0], [1], [0, 0, 1, 1], [], []>} : vector<2x32xf32>, vector<32x128xf32>, vector<2x128xf32> -> vector<2x128xf32>
    %104 = vector.broadcast %30 : vector<1x128xf32> to vector<2x128xf32>
    %105 = arith.addf %103, %104 : vector<2x128xf32>
    %cst_39 = arith.constant dense<0.000000e+00> : vector<2x128xf32>
    %106 = tpu.matmul %81, %29, %cst_39 {dimension_numbers = #tpu.dot_dimension_numbers<[1], [0], [0], [1], [0, 0, 1, 1], [], []>} : vector<2x32xf32>, vector<32x128xf32>, vector<2x128xf32> -> vector<2x128xf32>
    %107 = arith.addf %105, %106 : vector<2x128xf32>
    %cst_40 = arith.constant 5.000000e-01 : f32
    %108 = vector.broadcast %cst_40 : f32 to vector<2x128xf32>
    %109 = arith.mulf %108, %107 : vector<2x128xf32>
    %110 = math.tanh %109 : vector<2x128xf32>
    %cst_41 = arith.constant 5.000000e-01 : f32
    %111 = vector.broadcast %cst_41 : f32 to vector<2x128xf32>
    %112 = arith.mulf %111, %110 : vector<2x128xf32>
    %cst_42 = arith.constant 5.000000e-01 : f32
    %113 = vector.broadcast %cst_42 : f32 to vector<2x128xf32>
    %114 = arith.addf %112, %113 : vector<2x128xf32>
    %115 = arith.select %80, %114, %110 : vector<2x128xi1>, vector<2x128xf32>
    %116 = vector.extract_strided_slice %115 {offsets = [0, 0], sizes = [2, 32], strides = [1, 1]} : vector<2x128xf32> to vector<2x32xf32>
    %117 = vector.extract_strided_slice %115 {offsets = [0, 32], sizes = [2, 32], strides = [1, 1]} : vector<2x128xf32> to vector<2x32xf32>
    %118 = vector.extract_strided_slice %115 {offsets = [0, 64], sizes = [2, 32], strides = [1, 1]} : vector<2x128xf32> to vector<2x32xf32>
    %119 = vector.extract_strided_slice %115 {offsets = [0, 96], sizes = [2, 32], strides = [1, 1]} : vector<2x128xf32> to vector<2x32xf32>
    %120 = arith.mulf %117, %81 : vector<2x32xf32>
    %121 = arith.mulf %116, %119 : vector<2x32xf32>
    %122 = arith.addf %120, %121 : vector<2x32xf32>
    %123 = math.tanh %122 : vector<2x32xf32>
    %124 = arith.mulf %118, %123 : vector<2x32xf32>
    %125 = vector.extract_strided_slice %77 {offsets = [1, 0, 0], sizes = [1, 2, 128], strides = [1, 1, 1]} : vector<8x2x128xf32> to vector<1x2x128xf32>
    %126 = vector.shape_cast %125 : vector<1x2x128xf32> to vector<2x128xf32>
    %cst_43 = arith.constant dense<0.000000e+00> : vector<2x128xf32>
    %127 = tpu.matmul %102, %26, %cst_43 {dimension_numbers = #tpu.dot_dimension_numbers<[1], [0], [0], [1], [0, 0, 1, 1], [], []>} : vector<2x32xf32>, vector<32x128xf32>, vector<2x128xf32> -> vector<2x128xf32>
    %128 = arith.addf %126, %127 : vector<2x128xf32>
    %cst_44 = arith.constant 5.000000e-01 : f32
    %129 = vector.broadcast %cst_44 : f32 to vector<2x128xf32>
    %130 = arith.mulf %129, %128 : vector<2x128xf32>
    %131 = math.tanh %130 : vector<2x128xf32>
    %cst_45 = arith.constant 5.000000e-01 : f32
    %132 = vector.broadcast %cst_45 : f32 to vector<2x128xf32>
    %133 = arith.mulf %132, %131 : vector<2x128xf32>
    %cst_46 = arith.constant 5.000000e-01 : f32
    %134 = vector.broadcast %cst_46 : f32 to vector<2x128xf32>
    %135 = arith.addf %133, %134 : vector<2x128xf32>
    %136 = arith.select %80, %135, %131 : vector<2x128xi1>, vector<2x128xf32>
    %137 = vector.extract_strided_slice %136 {offsets = [0, 0], sizes = [2, 32], strides = [1, 1]} : vector<2x128xf32> to vector<2x32xf32>
    %138 = vector.extract_strided_slice %136 {offsets = [0, 32], sizes = [2, 32], strides = [1, 1]} : vector<2x128xf32> to vector<2x32xf32>
    %139 = vector.extract_strided_slice %136 {offsets = [0, 64], sizes = [2, 32], strides = [1, 1]} : vector<2x128xf32> to vector<2x32xf32>
    %140 = vector.extract_strided_slice %136 {offsets = [0, 96], sizes = [2, 32], strides = [1, 1]} : vector<2x128xf32> to vector<2x32xf32>
    %141 = arith.mulf %138, %100 : vector<2x32xf32>
    %142 = arith.mulf %137, %140 : vector<2x32xf32>
    %143 = arith.addf %141, %142 : vector<2x32xf32>
    %144 = math.tanh %143 : vector<2x32xf32>
    %145 = arith.mulf %139, %144 : vector<2x32xf32>
    %cst_47 = arith.constant dense<0.000000e+00> : vector<2x128xf32>
    %146 = tpu.matmul %145, %28, %cst_47 {dimension_numbers = #tpu.dot_dimension_numbers<[1], [0], [0], [1], [0, 0, 1, 1], [], []>} : vector<2x32xf32>, vector<32x128xf32>, vector<2x128xf32> -> vector<2x128xf32>
    %147 = vector.broadcast %30 : vector<1x128xf32> to vector<2x128xf32>
    %148 = arith.addf %146, %147 : vector<2x128xf32>
    %cst_48 = arith.constant dense<0.000000e+00> : vector<2x128xf32>
    %149 = tpu.matmul %124, %29, %cst_48 {dimension_numbers = #tpu.dot_dimension_numbers<[1], [0], [0], [1], [0, 0, 1, 1], [], []>} : vector<2x32xf32>, vector<32x128xf32>, vector<2x128xf32> -> vector<2x128xf32>
    %150 = arith.addf %148, %149 : vector<2x128xf32>
    %cst_49 = arith.constant 5.000000e-01 : f32
    %151 = vector.broadcast %cst_49 : f32 to vector<2x128xf32>
    %152 = arith.mulf %151, %150 : vector<2x128xf32>
    %153 = math.tanh %152 : vector<2x128xf32>
    %cst_50 = arith.constant 5.000000e-01 : f32
    %154 = vector.broadcast %cst_50 : f32 to vector<2x128xf32>
    %155 = arith.mulf %154, %153 : vector<2x128xf32>
    %cst_51 = arith.constant 5.000000e-01 : f32
    %156 = vector.broadcast %cst_51 : f32 to vector<2x128xf32>
    %157 = arith.addf %155, %156 : vector<2x128xf32>
    %158 = arith.select %80, %157, %153 : vector<2x128xi1>, vector<2x128xf32>
    %159 = vector.extract_strided_slice %158 {offsets = [0, 0], sizes = [2, 32], strides = [1, 1]} : vector<2x128xf32> to vector<2x32xf32>
    %160 = vector.extract_strided_slice %158 {offsets = [0, 32], sizes = [2, 32], strides = [1, 1]} : vector<2x128xf32> to vector<2x32xf32>
    %161 = vector.extract_strided_slice %158 {offsets = [0, 64], sizes = [2, 32], strides = [1, 1]} : vector<2x128xf32> to vector<2x32xf32>
    %162 = vector.extract_strided_slice %158 {offsets = [0, 96], sizes = [2, 32], strides = [1, 1]} : vector<2x128xf32> to vector<2x32xf32>
    %163 = arith.mulf %160, %122 : vector<2x32xf32>
    %164 = arith.mulf %159, %162 : vector<2x32xf32>
    %165 = arith.addf %163, %164 : vector<2x32xf32>
    %166 = math.tanh %165 : vector<2x32xf32>
    %167 = arith.mulf %161, %166 : vector<2x32xf32>
    %168 = vector.extract_strided_slice %77 {offsets = [2, 0, 0], sizes = [1, 2, 128], strides = [1, 1, 1]} : vector<8x2x128xf32> to vector<1x2x128xf32>
    %169 = vector.shape_cast %168 : vector<1x2x128xf32> to vector<2x128xf32>
    %cst_52 = arith.constant dense<0.000000e+00> : vector<2x128xf32>
    %170 = tpu.matmul %145, %26, %cst_52 {dimension_numbers = #tpu.dot_dimension_numbers<[1], [0], [0], [1], [0, 0, 1, 1], [], []>} : vector<2x32xf32>, vector<32x128xf32>, vector<2x128xf32> -> vector<2x128xf32>
    %171 = arith.addf %169, %170 : vector<2x128xf32>
    %cst_53 = arith.constant 5.000000e-01 : f32
    %172 = vector.broadcast %cst_53 : f32 to vector<2x128xf32>
    %173 = arith.mulf %172, %171 : vector<2x128xf32>
    %174 = math.tanh %173 : vector<2x128xf32>
    %cst_54 = arith.constant 5.000000e-01 : f32
    %175 = vector.broadcast %cst_54 : f32 to vector<2x128xf32>
    %176 = arith.mulf %175, %174 : vector<2x128xf32>
    %cst_55 = arith.constant 5.000000e-01 : f32
    %177 = vector.broadcast %cst_55 : f32 to vector<2x128xf32>
    %178 = arith.addf %176, %177 : vector<2x128xf32>
    %179 = arith.select %80, %178, %174 : vector<2x128xi1>, vector<2x128xf32>
    %180 = vector.extract_strided_slice %179 {offsets = [0, 0], sizes = [2, 32], strides = [1, 1]} : vector<2x128xf32> to vector<2x32xf32>
    %181 = vector.extract_strided_slice %179 {offsets = [0, 32], sizes = [2, 32], strides = [1, 1]} : vector<2x128xf32> to vector<2x32xf32>
    %182 = vector.extract_strided_slice %179 {offsets = [0, 64], sizes = [2, 32], strides = [1, 1]} : vector<2x128xf32> to vector<2x32xf32>
    %183 = vector.extract_strided_slice %179 {offsets = [0, 96], sizes = [2, 32], strides = [1, 1]} : vector<2x128xf32> to vector<2x32xf32>
    %184 = arith.mulf %181, %143 : vector<2x32xf32>
    %185 = arith.mulf %180, %183 : vector<2x32xf32>
    %186 = arith.addf %184, %185 : vector<2x32xf32>
    %187 = math.tanh %186 : vector<2x32xf32>
    %188 = arith.mulf %182, %187 : vector<2x32xf32>
    %cst_56 = arith.constant dense<0.000000e+00> : vector<2x128xf32>
    %189 = tpu.matmul %188, %28, %cst_56 {dimension_numbers = #tpu.dot_dimension_numbers<[1], [0], [0], [1], [0, 0, 1, 1], [], []>} : vector<2x32xf32>, vector<32x128xf32>, vector<2x128xf32> -> vector<2x128xf32>
    %190 = vector.broadcast %30 : vector<1x128xf32> to vector<2x128xf32>
    %191 = arith.addf %189, %190 : vector<2x128xf32>
    %cst_57 = arith.constant dense<0.000000e+00> : vector<2x128xf32>
    %192 = tpu.matmul %167, %29, %cst_57 {dimension_numbers = #tpu.dot_dimension_numbers<[1], [0], [0], [1], [0, 0, 1, 1], [], []>} : vector<2x32xf32>, vector<32x128xf32>, vector<2x128xf32> -> vector<2x128xf32>
    %193 = arith.addf %191, %192 : vector<2x128xf32>
    %cst_58 = arith.constant 5.000000e-01 : f32
    %194 = vector.broadcast %cst_58 : f32 to vector<2x128xf32>
    %195 = arith.mulf %194, %193 : vector<2x128xf32>
    %196 = math.tanh %195 : vector<2x128xf32>
    %cst_59 = arith.constant 5.000000e-01 : f32
    %197 = vector.broadcast %cst_59 : f32 to vector<2x128xf32>
    %198 = arith.mulf %197, %196 : vector<2x128xf32>
    %cst_60 = arith.constant 5.000000e-01 : f32
    %199 = vector.broadcast %cst_60 : f32 to vector<2x128xf32>
    %200 = arith.addf %198, %199 : vector<2x128xf32>
    %201 = arith.select %80, %200, %196 : vector<2x128xi1>, vector<2x128xf32>
    %202 = vector.extract_strided_slice %201 {offsets = [0, 0], sizes = [2, 32], strides = [1, 1]} : vector<2x128xf32> to vector<2x32xf32>
    %203 = vector.extract_strided_slice %201 {offsets = [0, 32], sizes = [2, 32], strides = [1, 1]} : vector<2x128xf32> to vector<2x32xf32>
    %204 = vector.extract_strided_slice %201 {offsets = [0, 64], sizes = [2, 32], strides = [1, 1]} : vector<2x128xf32> to vector<2x32xf32>
    %205 = vector.extract_strided_slice %201 {offsets = [0, 96], sizes = [2, 32], strides = [1, 1]} : vector<2x128xf32> to vector<2x32xf32>
    %206 = arith.mulf %203, %165 : vector<2x32xf32>
    %207 = arith.mulf %202, %205 : vector<2x32xf32>
    %208 = arith.addf %206, %207 : vector<2x32xf32>
    %209 = math.tanh %208 : vector<2x32xf32>
    %210 = arith.mulf %204, %209 : vector<2x32xf32>
    %211 = vector.extract_strided_slice %77 {offsets = [3, 0, 0], sizes = [1, 2, 128], strides = [1, 1, 1]} : vector<8x2x128xf32> to vector<1x2x128xf32>
    %212 = vector.shape_cast %211 : vector<1x2x128xf32> to vector<2x128xf32>
    %cst_61 = arith.constant dense<0.000000e+00> : vector<2x128xf32>
    %213 = tpu.matmul %188, %26, %cst_61 {dimension_numbers = #tpu.dot_dimension_numbers<[1], [0], [0], [1], [0, 0, 1, 1], [], []>} : vector<2x32xf32>, vector<32x128xf32>, vector<2x128xf32> -> vector<2x128xf32>
    %214 = arith.addf %212, %213 : vector<2x128xf32>
    %cst_62 = arith.constant 5.000000e-01 : f32
    %215 = vector.broadcast %cst_62 : f32 to vector<2x128xf32>
    %216 = arith.mulf %215, %214 : vector<2x128xf32>
    %217 = math.tanh %216 : vector<2x128xf32>
    %cst_63 = arith.constant 5.000000e-01 : f32
    %218 = vector.broadcast %cst_63 : f32 to vector<2x128xf32>
    %219 = arith.mulf %218, %217 : vector<2x128xf32>
    %cst_64 = arith.constant 5.000000e-01 : f32
    %220 = vector.broadcast %cst_64 : f32 to vector<2x128xf32>
    %221 = arith.addf %219, %220 : vector<2x128xf32>
    %222 = arith.select %80, %221, %217 : vector<2x128xi1>, vector<2x128xf32>
    %223 = vector.extract_strided_slice %222 {offsets = [0, 0], sizes = [2, 32], strides = [1, 1]} : vector<2x128xf32> to vector<2x32xf32>
    %224 = vector.extract_strided_slice %222 {offsets = [0, 32], sizes = [2, 32], strides = [1, 1]} : vector<2x128xf32> to vector<2x32xf32>
    %225 = vector.extract_strided_slice %222 {offsets = [0, 64], sizes = [2, 32], strides = [1, 1]} : vector<2x128xf32> to vector<2x32xf32>
    %226 = vector.extract_strided_slice %222 {offsets = [0, 96], sizes = [2, 32], strides = [1, 1]} : vector<2x128xf32> to vector<2x32xf32>
    %227 = arith.mulf %224, %186 : vector<2x32xf32>
    %228 = arith.mulf %223, %226 : vector<2x32xf32>
    %229 = arith.addf %227, %228 : vector<2x32xf32>
    %230 = math.tanh %229 : vector<2x32xf32>
    %231 = arith.mulf %225, %230 : vector<2x32xf32>
    %cst_65 = arith.constant dense<0.000000e+00> : vector<2x128xf32>
    %232 = tpu.matmul %231, %28, %cst_65 {dimension_numbers = #tpu.dot_dimension_numbers<[1], [0], [0], [1], [0, 0, 1, 1], [], []>} : vector<2x32xf32>, vector<32x128xf32>, vector<2x128xf32> -> vector<2x128xf32>
    %233 = vector.broadcast %30 : vector<1x128xf32> to vector<2x128xf32>
    %234 = arith.addf %232, %233 : vector<2x128xf32>
    %cst_66 = arith.constant dense<0.000000e+00> : vector<2x128xf32>
    %235 = tpu.matmul %210, %29, %cst_66 {dimension_numbers = #tpu.dot_dimension_numbers<[1], [0], [0], [1], [0, 0, 1, 1], [], []>} : vector<2x32xf32>, vector<32x128xf32>, vector<2x128xf32> -> vector<2x128xf32>
    %236 = arith.addf %234, %235 : vector<2x128xf32>
    %cst_67 = arith.constant 5.000000e-01 : f32
    %237 = vector.broadcast %cst_67 : f32 to vector<2x128xf32>
    %238 = arith.mulf %237, %236 : vector<2x128xf32>
    %239 = math.tanh %238 : vector<2x128xf32>
    %cst_68 = arith.constant 5.000000e-01 : f32
    %240 = vector.broadcast %cst_68 : f32 to vector<2x128xf32>
    %241 = arith.mulf %240, %239 : vector<2x128xf32>
    %cst_69 = arith.constant 5.000000e-01 : f32
    %242 = vector.broadcast %cst_69 : f32 to vector<2x128xf32>
    %243 = arith.addf %241, %242 : vector<2x128xf32>
    %244 = arith.select %80, %243, %239 : vector<2x128xi1>, vector<2x128xf32>
    %245 = vector.extract_strided_slice %244 {offsets = [0, 0], sizes = [2, 32], strides = [1, 1]} : vector<2x128xf32> to vector<2x32xf32>
    %246 = vector.extract_strided_slice %244 {offsets = [0, 32], sizes = [2, 32], strides = [1, 1]} : vector<2x128xf32> to vector<2x32xf32>
    %247 = vector.extract_strided_slice %244 {offsets = [0, 64], sizes = [2, 32], strides = [1, 1]} : vector<2x128xf32> to vector<2x32xf32>
    %248 = vector.extract_strided_slice %244 {offsets = [0, 96], sizes = [2, 32], strides = [1, 1]} : vector<2x128xf32> to vector<2x32xf32>
    %249 = arith.mulf %246, %208 : vector<2x32xf32>
    %250 = arith.mulf %245, %248 : vector<2x32xf32>
    %251 = arith.addf %249, %250 : vector<2x32xf32>
    %252 = math.tanh %251 : vector<2x32xf32>
    %253 = arith.mulf %247, %252 : vector<2x32xf32>
    %254 = vector.extract_strided_slice %77 {offsets = [4, 0, 0], sizes = [1, 2, 128], strides = [1, 1, 1]} : vector<8x2x128xf32> to vector<1x2x128xf32>
    %255 = vector.shape_cast %254 : vector<1x2x128xf32> to vector<2x128xf32>
    %cst_70 = arith.constant dense<0.000000e+00> : vector<2x128xf32>
    %256 = tpu.matmul %231, %26, %cst_70 {dimension_numbers = #tpu.dot_dimension_numbers<[1], [0], [0], [1], [0, 0, 1, 1], [], []>} : vector<2x32xf32>, vector<32x128xf32>, vector<2x128xf32> -> vector<2x128xf32>
    %257 = arith.addf %255, %256 : vector<2x128xf32>
    %cst_71 = arith.constant 5.000000e-01 : f32
    %258 = vector.broadcast %cst_71 : f32 to vector<2x128xf32>
    %259 = arith.mulf %258, %257 : vector<2x128xf32>
    %260 = math.tanh %259 : vector<2x128xf32>
    %cst_72 = arith.constant 5.000000e-01 : f32
    %261 = vector.broadcast %cst_72 : f32 to vector<2x128xf32>
    %262 = arith.mulf %261, %260 : vector<2x128xf32>
    %cst_73 = arith.constant 5.000000e-01 : f32
    %263 = vector.broadcast %cst_73 : f32 to vector<2x128xf32>
    %264 = arith.addf %262, %263 : vector<2x128xf32>
    %265 = arith.select %80, %264, %260 : vector<2x128xi1>, vector<2x128xf32>
    %266 = vector.extract_strided_slice %265 {offsets = [0, 0], sizes = [2, 32], strides = [1, 1]} : vector<2x128xf32> to vector<2x32xf32>
    %267 = vector.extract_strided_slice %265 {offsets = [0, 32], sizes = [2, 32], strides = [1, 1]} : vector<2x128xf32> to vector<2x32xf32>
    %268 = vector.extract_strided_slice %265 {offsets = [0, 64], sizes = [2, 32], strides = [1, 1]} : vector<2x128xf32> to vector<2x32xf32>
    %269 = vector.extract_strided_slice %265 {offsets = [0, 96], sizes = [2, 32], strides = [1, 1]} : vector<2x128xf32> to vector<2x32xf32>
    %270 = arith.mulf %267, %229 : vector<2x32xf32>
    %271 = arith.mulf %266, %269 : vector<2x32xf32>
    %272 = arith.addf %270, %271 : vector<2x32xf32>
    %273 = math.tanh %272 : vector<2x32xf32>
    %274 = arith.mulf %268, %273 : vector<2x32xf32>
    %cst_74 = arith.constant dense<0.000000e+00> : vector<2x128xf32>
    %275 = tpu.matmul %274, %28, %cst_74 {dimension_numbers = #tpu.dot_dimension_numbers<[1], [0], [0], [1], [0, 0, 1, 1], [], []>} : vector<2x32xf32>, vector<32x128xf32>, vector<2x128xf32> -> vector<2x128xf32>
    %276 = vector.broadcast %30 : vector<1x128xf32> to vector<2x128xf32>
    %277 = arith.addf %275, %276 : vector<2x128xf32>
    %cst_75 = arith.constant dense<0.000000e+00> : vector<2x128xf32>
    %278 = tpu.matmul %253, %29, %cst_75 {dimension_numbers = #tpu.dot_dimension_numbers<[1], [0], [0], [1], [0, 0, 1, 1], [], []>} : vector<2x32xf32>, vector<32x128xf32>, vector<2x128xf32> -> vector<2x128xf32>
    %279 = arith.addf %277, %278 : vector<2x128xf32>
    %cst_76 = arith.constant 5.000000e-01 : f32
    %280 = vector.broadcast %cst_76 : f32 to vector<2x128xf32>
    %281 = arith.mulf %280, %279 : vector<2x128xf32>
    %282 = math.tanh %281 : vector<2x128xf32>
    %cst_77 = arith.constant 5.000000e-01 : f32
    %283 = vector.broadcast %cst_77 : f32 to vector<2x128xf32>
    %284 = arith.mulf %283, %282 : vector<2x128xf32>
    %cst_78 = arith.constant 5.000000e-01 : f32
    %285 = vector.broadcast %cst_78 : f32 to vector<2x128xf32>
    %286 = arith.addf %284, %285 : vector<2x128xf32>
    %287 = arith.select %80, %286, %282 : vector<2x128xi1>, vector<2x128xf32>
    %288 = vector.extract_strided_slice %287 {offsets = [0, 0], sizes = [2, 32], strides = [1, 1]} : vector<2x128xf32> to vector<2x32xf32>
    %289 = vector.extract_strided_slice %287 {offsets = [0, 32], sizes = [2, 32], strides = [1, 1]} : vector<2x128xf32> to vector<2x32xf32>
    %290 = vector.extract_strided_slice %287 {offsets = [0, 64], sizes = [2, 32], strides = [1, 1]} : vector<2x128xf32> to vector<2x32xf32>
    %291 = vector.extract_strided_slice %287 {offsets = [0, 96], sizes = [2, 32], strides = [1, 1]} : vector<2x128xf32> to vector<2x32xf32>
    %292 = arith.mulf %289, %251 : vector<2x32xf32>
    %293 = arith.mulf %288, %291 : vector<2x32xf32>
    %294 = arith.addf %292, %293 : vector<2x32xf32>
    %295 = math.tanh %294 : vector<2x32xf32>
    %296 = arith.mulf %290, %295 : vector<2x32xf32>
    %297 = vector.extract_strided_slice %77 {offsets = [5, 0, 0], sizes = [1, 2, 128], strides = [1, 1, 1]} : vector<8x2x128xf32> to vector<1x2x128xf32>
    %298 = vector.shape_cast %297 : vector<1x2x128xf32> to vector<2x128xf32>
    %cst_79 = arith.constant dense<0.000000e+00> : vector<2x128xf32>
    %299 = tpu.matmul %274, %26, %cst_79 {dimension_numbers = #tpu.dot_dimension_numbers<[1], [0], [0], [1], [0, 0, 1, 1], [], []>} : vector<2x32xf32>, vector<32x128xf32>, vector<2x128xf32> -> vector<2x128xf32>
    %300 = arith.addf %298, %299 : vector<2x128xf32>
    %cst_80 = arith.constant 5.000000e-01 : f32
    %301 = vector.broadcast %cst_80 : f32 to vector<2x128xf32>
    %302 = arith.mulf %301, %300 : vector<2x128xf32>
    %303 = math.tanh %302 : vector<2x128xf32>
    %cst_81 = arith.constant 5.000000e-01 : f32
    %304 = vector.broadcast %cst_81 : f32 to vector<2x128xf32>
    %305 = arith.mulf %304, %303 : vector<2x128xf32>
    %cst_82 = arith.constant 5.000000e-01 : f32
    %306 = vector.broadcast %cst_82 : f32 to vector<2x128xf32>
    %307 = arith.addf %305, %306 : vector<2x128xf32>
    %308 = arith.select %80, %307, %303 : vector<2x128xi1>, vector<2x128xf32>
    %309 = vector.extract_strided_slice %308 {offsets = [0, 0], sizes = [2, 32], strides = [1, 1]} : vector<2x128xf32> to vector<2x32xf32>
    %310 = vector.extract_strided_slice %308 {offsets = [0, 32], sizes = [2, 32], strides = [1, 1]} : vector<2x128xf32> to vector<2x32xf32>
    %311 = vector.extract_strided_slice %308 {offsets = [0, 64], sizes = [2, 32], strides = [1, 1]} : vector<2x128xf32> to vector<2x32xf32>
    %312 = vector.extract_strided_slice %308 {offsets = [0, 96], sizes = [2, 32], strides = [1, 1]} : vector<2x128xf32> to vector<2x32xf32>
    %313 = arith.mulf %310, %272 : vector<2x32xf32>
    %314 = arith.mulf %309, %312 : vector<2x32xf32>
    %315 = arith.addf %313, %314 : vector<2x32xf32>
    %316 = math.tanh %315 : vector<2x32xf32>
    %317 = arith.mulf %311, %316 : vector<2x32xf32>
    %cst_83 = arith.constant dense<0.000000e+00> : vector<2x128xf32>
    %318 = tpu.matmul %317, %28, %cst_83 {dimension_numbers = #tpu.dot_dimension_numbers<[1], [0], [0], [1], [0, 0, 1, 1], [], []>} : vector<2x32xf32>, vector<32x128xf32>, vector<2x128xf32> -> vector<2x128xf32>
    %319 = vector.broadcast %30 : vector<1x128xf32> to vector<2x128xf32>
    %320 = arith.addf %318, %319 : vector<2x128xf32>
    %cst_84 = arith.constant dense<0.000000e+00> : vector<2x128xf32>
    %321 = tpu.matmul %296, %29, %cst_84 {dimension_numbers = #tpu.dot_dimension_numbers<[1], [0], [0], [1], [0, 0, 1, 1], [], []>} : vector<2x32xf32>, vector<32x128xf32>, vector<2x128xf32> -> vector<2x128xf32>
    %322 = arith.addf %320, %321 : vector<2x128xf32>
    %cst_85 = arith.constant 5.000000e-01 : f32
    %323 = vector.broadcast %cst_85 : f32 to vector<2x128xf32>
    %324 = arith.mulf %323, %322 : vector<2x128xf32>
    %325 = math.tanh %324 : vector<2x128xf32>
    %cst_86 = arith.constant 5.000000e-01 : f32
    %326 = vector.broadcast %cst_86 : f32 to vector<2x128xf32>
    %327 = arith.mulf %326, %325 : vector<2x128xf32>
    %cst_87 = arith.constant 5.000000e-01 : f32
    %328 = vector.broadcast %cst_87 : f32 to vector<2x128xf32>
    %329 = arith.addf %327, %328 : vector<2x128xf32>
    %330 = arith.select %80, %329, %325 : vector<2x128xi1>, vector<2x128xf32>
    %331 = vector.extract_strided_slice %330 {offsets = [0, 0], sizes = [2, 32], strides = [1, 1]} : vector<2x128xf32> to vector<2x32xf32>
    %332 = vector.extract_strided_slice %330 {offsets = [0, 32], sizes = [2, 32], strides = [1, 1]} : vector<2x128xf32> to vector<2x32xf32>
    %333 = vector.extract_strided_slice %330 {offsets = [0, 64], sizes = [2, 32], strides = [1, 1]} : vector<2x128xf32> to vector<2x32xf32>
    %334 = vector.extract_strided_slice %330 {offsets = [0, 96], sizes = [2, 32], strides = [1, 1]} : vector<2x128xf32> to vector<2x32xf32>
    %335 = arith.mulf %332, %294 : vector<2x32xf32>
    %336 = arith.mulf %331, %334 : vector<2x32xf32>
    %337 = arith.addf %335, %336 : vector<2x32xf32>
    %338 = math.tanh %337 : vector<2x32xf32>
    %339 = arith.mulf %333, %338 : vector<2x32xf32>
    %340 = vector.extract_strided_slice %77 {offsets = [6, 0, 0], sizes = [1, 2, 128], strides = [1, 1, 1]} : vector<8x2x128xf32> to vector<1x2x128xf32>
    %341 = vector.shape_cast %340 : vector<1x2x128xf32> to vector<2x128xf32>
    %cst_88 = arith.constant dense<0.000000e+00> : vector<2x128xf32>
    %342 = tpu.matmul %317, %26, %cst_88 {dimension_numbers = #tpu.dot_dimension_numbers<[1], [0], [0], [1], [0, 0, 1, 1], [], []>} : vector<2x32xf32>, vector<32x128xf32>, vector<2x128xf32> -> vector<2x128xf32>
    %343 = arith.addf %341, %342 : vector<2x128xf32>
    %cst_89 = arith.constant 5.000000e-01 : f32
    %344 = vector.broadcast %cst_89 : f32 to vector<2x128xf32>
    %345 = arith.mulf %344, %343 : vector<2x128xf32>
    %346 = math.tanh %345 : vector<2x128xf32>
    %cst_90 = arith.constant 5.000000e-01 : f32
    %347 = vector.broadcast %cst_90 : f32 to vector<2x128xf32>
    %348 = arith.mulf %347, %346 : vector<2x128xf32>
    %cst_91 = arith.constant 5.000000e-01 : f32
    %349 = vector.broadcast %cst_91 : f32 to vector<2x128xf32>
    %350 = arith.addf %348, %349 : vector<2x128xf32>
    %351 = arith.select %80, %350, %346 : vector<2x128xi1>, vector<2x128xf32>
    %352 = vector.extract_strided_slice %351 {offsets = [0, 0], sizes = [2, 32], strides = [1, 1]} : vector<2x128xf32> to vector<2x32xf32>
    %353 = vector.extract_strided_slice %351 {offsets = [0, 32], sizes = [2, 32], strides = [1, 1]} : vector<2x128xf32> to vector<2x32xf32>
    %354 = vector.extract_strided_slice %351 {offsets = [0, 64], sizes = [2, 32], strides = [1, 1]} : vector<2x128xf32> to vector<2x32xf32>
    %355 = vector.extract_strided_slice %351 {offsets = [0, 96], sizes = [2, 32], strides = [1, 1]} : vector<2x128xf32> to vector<2x32xf32>
    %356 = arith.mulf %353, %315 : vector<2x32xf32>
    %357 = arith.mulf %352, %355 : vector<2x32xf32>
    %358 = arith.addf %356, %357 : vector<2x32xf32>
    %359 = math.tanh %358 : vector<2x32xf32>
    %360 = arith.mulf %354, %359 : vector<2x32xf32>
    %cst_92 = arith.constant dense<0.000000e+00> : vector<2x128xf32>
    %361 = tpu.matmul %360, %28, %cst_92 {dimension_numbers = #tpu.dot_dimension_numbers<[1], [0], [0], [1], [0, 0, 1, 1], [], []>} : vector<2x32xf32>, vector<32x128xf32>, vector<2x128xf32> -> vector<2x128xf32>
    %362 = vector.broadcast %30 : vector<1x128xf32> to vector<2x128xf32>
    %363 = arith.addf %361, %362 : vector<2x128xf32>
    %cst_93 = arith.constant dense<0.000000e+00> : vector<2x128xf32>
    %364 = tpu.matmul %339, %29, %cst_93 {dimension_numbers = #tpu.dot_dimension_numbers<[1], [0], [0], [1], [0, 0, 1, 1], [], []>} : vector<2x32xf32>, vector<32x128xf32>, vector<2x128xf32> -> vector<2x128xf32>
    %365 = arith.addf %363, %364 : vector<2x128xf32>
    %cst_94 = arith.constant 5.000000e-01 : f32
    %366 = vector.broadcast %cst_94 : f32 to vector<2x128xf32>
    %367 = arith.mulf %366, %365 : vector<2x128xf32>
    %368 = math.tanh %367 : vector<2x128xf32>
    %cst_95 = arith.constant 5.000000e-01 : f32
    %369 = vector.broadcast %cst_95 : f32 to vector<2x128xf32>
    %370 = arith.mulf %369, %368 : vector<2x128xf32>
    %cst_96 = arith.constant 5.000000e-01 : f32
    %371 = vector.broadcast %cst_96 : f32 to vector<2x128xf32>
    %372 = arith.addf %370, %371 : vector<2x128xf32>
    %373 = arith.select %80, %372, %368 : vector<2x128xi1>, vector<2x128xf32>
    %374 = vector.extract_strided_slice %373 {offsets = [0, 0], sizes = [2, 32], strides = [1, 1]} : vector<2x128xf32> to vector<2x32xf32>
    %375 = vector.extract_strided_slice %373 {offsets = [0, 32], sizes = [2, 32], strides = [1, 1]} : vector<2x128xf32> to vector<2x32xf32>
    %376 = vector.extract_strided_slice %373 {offsets = [0, 64], sizes = [2, 32], strides = [1, 1]} : vector<2x128xf32> to vector<2x32xf32>
    %377 = vector.extract_strided_slice %373 {offsets = [0, 96], sizes = [2, 32], strides = [1, 1]} : vector<2x128xf32> to vector<2x32xf32>
    %378 = arith.mulf %375, %337 : vector<2x32xf32>
    %379 = arith.mulf %374, %377 : vector<2x32xf32>
    %380 = arith.addf %378, %379 : vector<2x32xf32>
    %381 = math.tanh %380 : vector<2x32xf32>
    %382 = arith.mulf %376, %381 : vector<2x32xf32>
    %383 = vector.extract_strided_slice %77 {offsets = [7, 0, 0], sizes = [1, 2, 128], strides = [1, 1, 1]} : vector<8x2x128xf32> to vector<1x2x128xf32>
    %384 = vector.shape_cast %383 : vector<1x2x128xf32> to vector<2x128xf32>
    %cst_97 = arith.constant dense<0.000000e+00> : vector<2x128xf32>
    %385 = tpu.matmul %360, %26, %cst_97 {dimension_numbers = #tpu.dot_dimension_numbers<[1], [0], [0], [1], [0, 0, 1, 1], [], []>} : vector<2x32xf32>, vector<32x128xf32>, vector<2x128xf32> -> vector<2x128xf32>
    %386 = arith.addf %384, %385 : vector<2x128xf32>
    %cst_98 = arith.constant 5.000000e-01 : f32
    %387 = vector.broadcast %cst_98 : f32 to vector<2x128xf32>
    %388 = arith.mulf %387, %386 : vector<2x128xf32>
    %389 = math.tanh %388 : vector<2x128xf32>
    %cst_99 = arith.constant 5.000000e-01 : f32
    %390 = vector.broadcast %cst_99 : f32 to vector<2x128xf32>
    %391 = arith.mulf %390, %389 : vector<2x128xf32>
    %cst_100 = arith.constant 5.000000e-01 : f32
    %392 = vector.broadcast %cst_100 : f32 to vector<2x128xf32>
    %393 = arith.addf %391, %392 : vector<2x128xf32>
    %394 = arith.select %80, %393, %389 : vector<2x128xi1>, vector<2x128xf32>
    %395 = vector.extract_strided_slice %394 {offsets = [0, 0], sizes = [2, 32], strides = [1, 1]} : vector<2x128xf32> to vector<2x32xf32>
    %396 = vector.extract_strided_slice %394 {offsets = [0, 32], sizes = [2, 32], strides = [1, 1]} : vector<2x128xf32> to vector<2x32xf32>
    %397 = vector.extract_strided_slice %394 {offsets = [0, 64], sizes = [2, 32], strides = [1, 1]} : vector<2x128xf32> to vector<2x32xf32>
    %398 = vector.extract_strided_slice %394 {offsets = [0, 96], sizes = [2, 32], strides = [1, 1]} : vector<2x128xf32> to vector<2x32xf32>
    %399 = arith.mulf %396, %358 : vector<2x32xf32>
    %400 = arith.mulf %395, %398 : vector<2x32xf32>
    %401 = arith.addf %399, %400 : vector<2x32xf32>
    %402 = math.tanh %401 : vector<2x32xf32>
    %403 = arith.mulf %397, %402 : vector<2x32xf32>
    %cst_101 = arith.constant dense<0.000000e+00> : vector<2x128xf32>
    %404 = tpu.matmul %403, %28, %cst_101 {dimension_numbers = #tpu.dot_dimension_numbers<[1], [0], [0], [1], [0, 0, 1, 1], [], []>} : vector<2x32xf32>, vector<32x128xf32>, vector<2x128xf32> -> vector<2x128xf32>
    %405 = vector.broadcast %30 : vector<1x128xf32> to vector<2x128xf32>
    %406 = arith.addf %404, %405 : vector<2x128xf32>
    %cst_102 = arith.constant dense<0.000000e+00> : vector<2x128xf32>
    %407 = tpu.matmul %382, %29, %cst_102 {dimension_numbers = #tpu.dot_dimension_numbers<[1], [0], [0], [1], [0, 0, 1, 1], [], []>} : vector<2x32xf32>, vector<32x128xf32>, vector<2x128xf32> -> vector<2x128xf32>
    %408 = arith.addf %406, %407 : vector<2x128xf32>
    %cst_103 = arith.constant 5.000000e-01 : f32
    %409 = vector.broadcast %cst_103 : f32 to vector<2x128xf32>
    %410 = arith.mulf %409, %408 : vector<2x128xf32>
    %411 = math.tanh %410 : vector<2x128xf32>
    %cst_104 = arith.constant 5.000000e-01 : f32
    %412 = vector.broadcast %cst_104 : f32 to vector<2x128xf32>
    %413 = arith.mulf %412, %411 : vector<2x128xf32>
    %cst_105 = arith.constant 5.000000e-01 : f32
    %414 = vector.broadcast %cst_105 : f32 to vector<2x128xf32>
    %415 = arith.addf %413, %414 : vector<2x128xf32>
    %416 = arith.select %80, %415, %411 : vector<2x128xi1>, vector<2x128xf32>
    %417 = vector.extract_strided_slice %416 {offsets = [0, 0], sizes = [2, 32], strides = [1, 1]} : vector<2x128xf32> to vector<2x32xf32>
    %418 = vector.extract_strided_slice %416 {offsets = [0, 32], sizes = [2, 32], strides = [1, 1]} : vector<2x128xf32> to vector<2x32xf32>
    %419 = vector.extract_strided_slice %416 {offsets = [0, 64], sizes = [2, 32], strides = [1, 1]} : vector<2x128xf32> to vector<2x32xf32>
    %420 = vector.extract_strided_slice %416 {offsets = [0, 96], sizes = [2, 32], strides = [1, 1]} : vector<2x128xf32> to vector<2x32xf32>
    %421 = arith.mulf %418, %380 : vector<2x32xf32>
    %422 = arith.mulf %417, %420 : vector<2x32xf32>
    %423 = arith.addf %421, %422 : vector<2x32xf32>
    %424 = math.tanh %423 : vector<2x32xf32>
    %425 = arith.mulf %419, %424 : vector<2x32xf32>
    %426 = vector.shape_cast %124 : vector<2x32xf32> to vector<1x2x32xf32>
    %427 = vector.shape_cast %167 : vector<2x32xf32> to vector<1x2x32xf32>
    %428 = vector.shape_cast %210 : vector<2x32xf32> to vector<1x2x32xf32>
    %429 = vector.shape_cast %253 : vector<2x32xf32> to vector<1x2x32xf32>
    %430 = vector.shape_cast %296 : vector<2x32xf32> to vector<1x2x32xf32>
    %431 = vector.shape_cast %339 : vector<2x32xf32> to vector<1x2x32xf32>
    %432 = vector.shape_cast %382 : vector<2x32xf32> to vector<1x2x32xf32>
    %433 = vector.shape_cast %425 : vector<2x32xf32> to vector<1x2x32xf32>
    %434 = tpu.concatenate %426, %427, %428, %429, %430, %431, %432, %433 in 0 : vector<1x2x32xf32>, vector<1x2x32xf32>, vector<1x2x32xf32>, vector<1x2x32xf32>, vector<1x2x32xf32>, vector<1x2x32xf32>, vector<1x2x32xf32>, vector<1x2x32xf32> -> vector<8x2x32xf32>
    %435 = vector.shape_cast %434 : vector<8x2x32xf32> to vector<16x32xf32>
    %cst_106 = arith.constant dense<0.000000e+00> : vector<16x128xf32>
    %436 = tpu.matmul %435, %31, %cst_106 {dimension_numbers = #tpu.dot_dimension_numbers<[1], [0], [0], [1], [0, 0, 1, 1], [], []>} : vector<16x32xf32>, vector<32x128xf32>, vector<16x128xf32> -> vector<16x128xf32>
    %437 = vector.broadcast %32 : vector<1x128xf32> to vector<16x128xf32>
    %438 = arith.addf %436, %437 : vector<16x128xf32>
    %439 = vector.shape_cast %438 : vector<16x128xf32> to vector<8x2x128xf32>
    %440 = vector.extract_strided_slice %439 {offsets = [0, 0, 0], sizes = [8, 2, 8], strides = [1, 1, 1]} : vector<8x2x128xf32> to vector<8x2x8xf32>
    %441 = vector.extract_strided_slice %439 {offsets = [0, 0, 32], sizes = [8, 2, 8], strides = [1, 1, 1]} : vector<8x2x128xf32> to vector<8x2x8xf32>
    %442 = vector.extract_strided_slice %439 {offsets = [0, 0, 64], sizes = [8, 2, 8], strides = [1, 1, 1]} : vector<8x2x128xf32> to vector<8x2x8xf32>
    "tpu.trace_start"() <{level = 10 : i32, message = "nqd,nkd->nqk"}> : () -> ()
    %cst_107 = arith.constant dense<0.000000e+00> : vector<8x2x2xf32>
    %443 = tpu.matmul %440, %441, %cst_107 {dimension_numbers = #tpu.dot_dimension_numbers<[2], [2], [1], [1], [0, 0, 0, 1, 1, 1], [0], [0]>} : vector<8x2x8xf32>, vector<8x2x8xf32>, vector<8x2x2xf32> -> vector<8x2x2xf32>
    "tpu.trace_stop"() : () -> ()
    %cst_108 = arith.constant 0.353553385 : f32
    %444 = vector.broadcast %cst_108 : f32 to vector<8x2x2xf32>
    %445 = arith.mulf %443, %444 : vector<8x2x2xf32>
    %cst_109 = arith.constant dense<0xFF800000> : vector<8x2xf32>
    %446 = vector.multi_reduction <maximumf>, %445, %cst_109 [2] : vector<8x2x2xf32> to vector<8x2xf32>
    %447 = vector.shape_cast %446 : vector<8x2xf32> to vector<8x2x1xf32>
    %448 = vector.broadcast %447 : vector<8x2x1xf32> to vector<8x2x2xf32>
    %449 = arith.subf %445, %448 : vector<8x2x2xf32>
    %450 = math.exp %449 : vector<8x2x2xf32>
    %cst_110 = arith.constant dense<0.000000e+00> : vector<8x2xf32>
    %451 = vector.multi_reduction <add>, %450, %cst_110 [2] : vector<8x2x2xf32> to vector<8x2xf32>
    %452 = vector.shape_cast %451 : vector<8x2xf32> to vector<8x2x1xf32>
    %453 = vector.broadcast %452 : vector<8x2x1xf32> to vector<8x2x2xf32>
    %454 = arith.divf %450, %453 : vector<8x2x2xf32>
    "tpu.trace_start"() <{level = 10 : i32, message = "nqk,nkd->nqd"}> : () -> ()
    %cst_111 = arith.constant dense<0.000000e+00> : vector<8x2x8xf32>
    %455 = tpu.matmul %454, %442, %cst_111 {dimension_numbers = #tpu.dot_dimension_numbers<[2], [1], [1], [2], [0, 0, 0, 1, 1, 2], [0], [0]>} : vector<8x2x2xf32>, vector<8x2x8xf32>, vector<8x2x8xf32> -> vector<8x2x8xf32>
    "tpu.trace_stop"() : () -> ()
    %456 = vector.extract_strided_slice %439 {offsets = [0, 0, 8], sizes = [8, 2, 8], strides = [1, 1, 1]} : vector<8x2x128xf32> to vector<8x2x8xf32>
    %457 = vector.extract_strided_slice %439 {offsets = [0, 0, 40], sizes = [8, 2, 8], strides = [1, 1, 1]} : vector<8x2x128xf32> to vector<8x2x8xf32>
    %458 = vector.extract_strided_slice %439 {offsets = [0, 0, 72], sizes = [8, 2, 8], strides = [1, 1, 1]} : vector<8x2x128xf32> to vector<8x2x8xf32>
    "tpu.trace_start"() <{level = 10 : i32, message = "nqd,nkd->nqk"}> : () -> ()
    %cst_112 = arith.constant dense<0.000000e+00> : vector<8x2x2xf32>
    %459 = tpu.matmul %456, %457, %cst_112 {dimension_numbers = #tpu.dot_dimension_numbers<[2], [2], [1], [1], [0, 0, 0, 1, 1, 1], [0], [0]>} : vector<8x2x8xf32>, vector<8x2x8xf32>, vector<8x2x2xf32> -> vector<8x2x2xf32>
    "tpu.trace_stop"() : () -> ()
    %cst_113 = arith.constant 0.353553385 : f32
    %460 = vector.broadcast %cst_113 : f32 to vector<8x2x2xf32>
    %461 = arith.mulf %459, %460 : vector<8x2x2xf32>
    %cst_114 = arith.constant dense<0xFF800000> : vector<8x2xf32>
    %462 = vector.multi_reduction <maximumf>, %461, %cst_114 [2] : vector<8x2x2xf32> to vector<8x2xf32>
    %463 = vector.shape_cast %462 : vector<8x2xf32> to vector<8x2x1xf32>
    %464 = vector.broadcast %463 : vector<8x2x1xf32> to vector<8x2x2xf32>
    %465 = arith.subf %461, %464 : vector<8x2x2xf32>
    %466 = math.exp %465 : vector<8x2x2xf32>
    %cst_115 = arith.constant dense<0.000000e+00> : vector<8x2xf32>
    %467 = vector.multi_reduction <add>, %466, %cst_115 [2] : vector<8x2x2xf32> to vector<8x2xf32>
    %468 = vector.shape_cast %467 : vector<8x2xf32> to vector<8x2x1xf32>
    %469 = vector.broadcast %468 : vector<8x2x1xf32> to vector<8x2x2xf32>
    %470 = arith.divf %466, %469 : vector<8x2x2xf32>
    "tpu.trace_start"() <{level = 10 : i32, message = "nqk,nkd->nqd"}> : () -> ()
    %cst_116 = arith.constant dense<0.000000e+00> : vector<8x2x8xf32>
    %471 = tpu.matmul %470, %458, %cst_116 {dimension_numbers = #tpu.dot_dimension_numbers<[2], [1], [1], [2], [0, 0, 0, 1, 1, 2], [0], [0]>} : vector<8x2x2xf32>, vector<8x2x8xf32>, vector<8x2x8xf32> -> vector<8x2x8xf32>
    "tpu.trace_stop"() : () -> ()
    %472 = vector.extract_strided_slice %439 {offsets = [0, 0, 16], sizes = [8, 2, 8], strides = [1, 1, 1]} : vector<8x2x128xf32> to vector<8x2x8xf32>
    %473 = vector.extract_strided_slice %439 {offsets = [0, 0, 48], sizes = [8, 2, 8], strides = [1, 1, 1]} : vector<8x2x128xf32> to vector<8x2x8xf32>
    %474 = vector.extract_strided_slice %439 {offsets = [0, 0, 80], sizes = [8, 2, 8], strides = [1, 1, 1]} : vector<8x2x128xf32> to vector<8x2x8xf32>
    "tpu.trace_start"() <{level = 10 : i32, message = "nqd,nkd->nqk"}> : () -> ()
    %cst_117 = arith.constant dense<0.000000e+00> : vector<8x2x2xf32>
    %475 = tpu.matmul %472, %473, %cst_117 {dimension_numbers = #tpu.dot_dimension_numbers<[2], [2], [1], [1], [0, 0, 0, 1, 1, 1], [0], [0]>} : vector<8x2x8xf32>, vector<8x2x8xf32>, vector<8x2x2xf32> -> vector<8x2x2xf32>
    "tpu.trace_stop"() : () -> ()
    %cst_118 = arith.constant 0.353553385 : f32
    %476 = vector.broadcast %cst_118 : f32 to vector<8x2x2xf32>
    %477 = arith.mulf %475, %476 : vector<8x2x2xf32>
    %cst_119 = arith.constant dense<0xFF800000> : vector<8x2xf32>
    %478 = vector.multi_reduction <maximumf>, %477, %cst_119 [2] : vector<8x2x2xf32> to vector<8x2xf32>
    %479 = vector.shape_cast %478 : vector<8x2xf32> to vector<8x2x1xf32>
    %480 = vector.broadcast %479 : vector<8x2x1xf32> to vector<8x2x2xf32>
    %481 = arith.subf %477, %480 : vector<8x2x2xf32>
    %482 = math.exp %481 : vector<8x2x2xf32>
    %cst_120 = arith.constant dense<0.000000e+00> : vector<8x2xf32>
    %483 = vector.multi_reduction <add>, %482, %cst_120 [2] : vector<8x2x2xf32> to vector<8x2xf32>
    %484 = vector.shape_cast %483 : vector<8x2xf32> to vector<8x2x1xf32>
    %485 = vector.broadcast %484 : vector<8x2x1xf32> to vector<8x2x2xf32>
    %486 = arith.divf %482, %485 : vector<8x2x2xf32>
    "tpu.trace_start"() <{level = 10 : i32, message = "nqk,nkd->nqd"}> : () -> ()
    %cst_121 = arith.constant dense<0.000000e+00> : vector<8x2x8xf32>
    %487 = tpu.matmul %486, %474, %cst_121 {dimension_numbers = #tpu.dot_dimension_numbers<[2], [1], [1], [2], [0, 0, 0, 1, 1, 2], [0], [0]>} : vector<8x2x2xf32>, vector<8x2x8xf32>, vector<8x2x8xf32> -> vector<8x2x8xf32>
    "tpu.trace_stop"() : () -> ()
    %488 = vector.extract_strided_slice %439 {offsets = [0, 0, 24], sizes = [8, 2, 8], strides = [1, 1, 1]} : vector<8x2x128xf32> to vector<8x2x8xf32>
    %489 = vector.extract_strided_slice %439 {offsets = [0, 0, 56], sizes = [8, 2, 8], strides = [1, 1, 1]} : vector<8x2x128xf32> to vector<8x2x8xf32>
    %490 = vector.extract_strided_slice %439 {offsets = [0, 0, 88], sizes = [8, 2, 8], strides = [1, 1, 1]} : vector<8x2x128xf32> to vector<8x2x8xf32>
    "tpu.trace_start"() <{level = 10 : i32, message = "nqd,nkd->nqk"}> : () -> ()
    %cst_122 = arith.constant dense<0.000000e+00> : vector<8x2x2xf32>
    %491 = tpu.matmul %488, %489, %cst_122 {dimension_numbers = #tpu.dot_dimension_numbers<[2], [2], [1], [1], [0, 0, 0, 1, 1, 1], [0], [0]>} : vector<8x2x8xf32>, vector<8x2x8xf32>, vector<8x2x2xf32> -> vector<8x2x2xf32>
    "tpu.trace_stop"() : () -> ()
    %cst_123 = arith.constant 0.353553385 : f32
    %492 = vector.broadcast %cst_123 : f32 to vector<8x2x2xf32>
    %493 = arith.mulf %491, %492 : vector<8x2x2xf32>
    %cst_124 = arith.constant dense<0xFF800000> : vector<8x2xf32>
    %494 = vector.multi_reduction <maximumf>, %493, %cst_124 [2] : vector<8x2x2xf32> to vector<8x2xf32>
    %495 = vector.shape_cast %494 : vector<8x2xf32> to vector<8x2x1xf32>
    %496 = vector.broadcast %495 : vector<8x2x1xf32> to vector<8x2x2xf32>
    %497 = arith.subf %493, %496 : vector<8x2x2xf32>
    %498 = math.exp %497 : vector<8x2x2xf32>
    %cst_125 = arith.constant dense<0.000000e+00> : vector<8x2xf32>
    %499 = vector.multi_reduction <add>, %498, %cst_125 [2] : vector<8x2x2xf32> to vector<8x2xf32>
    %500 = vector.shape_cast %499 : vector<8x2xf32> to vector<8x2x1xf32>
    %501 = vector.broadcast %500 : vector<8x2x1xf32> to vector<8x2x2xf32>
    %502 = arith.divf %498, %501 : vector<8x2x2xf32>
    "tpu.trace_start"() <{level = 10 : i32, message = "nqk,nkd->nqd"}> : () -> ()
    %cst_126 = arith.constant dense<0.000000e+00> : vector<8x2x8xf32>
    %503 = tpu.matmul %502, %490, %cst_126 {dimension_numbers = #tpu.dot_dimension_numbers<[2], [1], [1], [2], [0, 0, 0, 1, 1, 2], [0], [0]>} : vector<8x2x2xf32>, vector<8x2x8xf32>, vector<8x2x8xf32> -> vector<8x2x8xf32>
    "tpu.trace_stop"() : () -> ()
    %504 = tpu.concatenate %455, %471, %487, %503 in 2 : vector<8x2x8xf32>, vector<8x2x8xf32>, vector<8x2x8xf32>, vector<8x2x8xf32> -> vector<8x2x32xf32>
    %505 = vector.shape_cast %504 : vector<8x2x32xf32> to vector<16x32xf32>
    %cst_127 = arith.constant dense<0.000000e+00> : vector<16x32xf32>
    %506 = tpu.matmul %505, %19, %cst_127 {dimension_numbers = #tpu.dot_dimension_numbers<[1], [0], [0], [1], [0, 0, 1, 1], [], []>} : vector<16x32xf32>, vector<32x32xf32>, vector<16x32xf32> -> vector<16x32xf32>
    %507 = vector.broadcast %11 : vector<1x32xf32> to vector<16x32xf32>
    %508 = arith.addf %506, %507 : vector<16x32xf32>
    %509 = arith.addf %435, %508 : vector<16x32xf32>
    %cst_128 = arith.constant dense<0.000000e+00> : vector<2x32xf32>
    %510 = tpu.matmul %48, %21, %cst_128 {dimension_numbers = #tpu.dot_dimension_numbers<[1], [0], [0], [1], [0, 0, 1, 1], [], []>} : vector<2x32xf32>, vector<32x32xf32>, vector<2x32xf32> -> vector<2x32xf32>
    %511 = vector.shape_cast %510 : vector<2x32xf32> to vector<1x2x32xf32>
    %512 = vector.shape_cast %511 : vector<1x2x32xf32> to vector<1x2x32xf32>
    %513 = vector.broadcast %512 : vector<1x2x32xf32> to vector<8x2x32xf32>
    %514 = vector.shape_cast %513 : vector<8x2x32xf32> to vector<16x32xf32>
    %cst_129 = arith.constant dense<0.000000e+00> : vector<16x32xf32>
    %515 = tpu.matmul %509, %20, %cst_129 {dimension_numbers = #tpu.dot_dimension_numbers<[1], [0], [0], [1], [0, 0, 1, 1], [], []>} : vector<16x32xf32>, vector<32x32xf32>, vector<16x32xf32> -> vector<16x32xf32>
    %cst_130 = arith.constant dense<0.000000e+00> : vector<16x32xf32>
    %516 = tpu.matmul %73, %22, %cst_130 {dimension_numbers = #tpu.dot_dimension_numbers<[1], [0], [0], [1], [0, 0, 1, 1], [], []>} : vector<16x32xf32>, vector<32x32xf32>, vector<16x32xf32> -> vector<16x32xf32>
    %517 = arith.addf %515, %516 : vector<16x32xf32>
    %518 = arith.addf %517, %514 : vector<16x32xf32>
    %519 = vector.broadcast %12 : vector<1x32xf32> to vector<16x32xf32>
    %520 = arith.addf %518, %519 : vector<16x32xf32>
    %cst_131 = arith.constant 5.000000e-01 : f32
    %521 = vector.broadcast %cst_131 : f32 to vector<16x32xf32>
    %522 = arith.mulf %521, %520 : vector<16x32xf32>
    %523 = math.tanh %522 : vector<16x32xf32>
    %cst_132 = arith.constant 5.000000e-01 : f32
    %524 = vector.broadcast %cst_132 : f32 to vector<16x32xf32>
    %525 = arith.mulf %524, %523 : vector<16x32xf32>
    %cst_133 = arith.constant 5.000000e-01 : f32
    %526 = vector.broadcast %cst_133 : f32 to vector<16x32xf32>
    %527 = arith.addf %525, %526 : vector<16x32xf32>
    %528 = arith.mulf %520, %527 : vector<16x32xf32>
    %cst_134 = arith.constant dense<0.000000e+00> : vector<16x32xf32>
    %529 = tpu.matmul %528, %23, %cst_134 {dimension_numbers = #tpu.dot_dimension_numbers<[1], [0], [0], [1], [0, 0, 1, 1], [], []>} : vector<16x32xf32>, vector<32x32xf32>, vector<16x32xf32> -> vector<16x32xf32>
    %530 = vector.broadcast %13 : vector<1x32xf32> to vector<16x32xf32>
    %531 = arith.addf %529, %530 : vector<16x32xf32>
    %cst_135 = arith.constant 5.000000e-01 : f32
    %532 = vector.broadcast %cst_135 : f32 to vector<16x32xf32>
    %533 = arith.mulf %532, %531 : vector<16x32xf32>
    %534 = math.tanh %533 : vector<16x32xf32>
    %cst_136 = arith.constant 5.000000e-01 : f32
    %535 = vector.broadcast %cst_136 : f32 to vector<16x32xf32>
    %536 = arith.mulf %535, %534 : vector<16x32xf32>
    %cst_137 = arith.constant 5.000000e-01 : f32
    %537 = vector.broadcast %cst_137 : f32 to vector<16x32xf32>
    %538 = arith.addf %536, %537 : vector<16x32xf32>
    %539 = arith.mulf %531, %538 : vector<16x32xf32>
    %cst_138 = arith.constant dense<0.000000e+00> : vector<16x32xf32>
    %540 = tpu.matmul %539, %24, %cst_138 {dimension_numbers = #tpu.dot_dimension_numbers<[1], [0], [0], [1], [0, 0, 1, 1], [], []>} : vector<16x32xf32>, vector<32x32xf32>, vector<16x32xf32> -> vector<16x32xf32>
    %541 = vector.broadcast %14 : vector<1x32xf32> to vector<16x32xf32>
    %542 = arith.addf %540, %541 : vector<16x32xf32>
    %543 = vector.shape_cast %403 : vector<2x32xf32> to vector<1x2x32xf32>
    %544 = vector.shape_cast %425 : vector<2x32xf32> to vector<1x2x32xf32>
    %545 = tpu.concatenate %543, %544 in 0 : vector<1x2x32xf32>, vector<1x2x32xf32> -> vector<2x2x32xf32>
    %546 = vector.shape_cast %545 : vector<2x2x32xf32> to vector<4x32xf32>
    %547 = vector.shape_cast %401 : vector<2x32xf32> to vector<1x2x32xf32>
    %548 = vector.shape_cast %423 : vector<2x32xf32> to vector<1x2x32xf32>
    %549 = tpu.concatenate %547, %548 in 0 : vector<1x2x32xf32>, vector<1x2x32xf32> -> vector<2x2x32xf32>
    %550 = vector.shape_cast %549 : vector<2x2x32xf32> to vector<4x32xf32>
    %551 = tpu.concatenate %546, %550 in 0 : vector<4x32xf32>, vector<4x32xf32> -> vector<8x32xf32>
    %cst_139 = arith.constant 0.000000e+00 : f32
    %552 = vector.broadcast %cst_139 : f32 to vector<8x32xf32>
    %553 = tpu.concatenate %551, %552 in 0 : vector<8x32xf32>, vector<8x32xf32> -> vector<16x32xf32>
    %554 = tpu.concatenate %542, %553 in 1 : vector<16x32xf32>, vector<16x32xf32> -> vector<16x64xf32>
    %c0_140 = arith.constant 0 : index
    %c0_141 = arith.constant 0 : index
    %555 = vector.load %arg2[%c0_140, %c0_141] : memref<16x64xf32, #tpu.memory_space<vmem>>, vector<16x64xf32>
    tpu.vector_store %arg2[%c0_140, %c0_141], %554 {strides = array<i32>} : memref<16x64xf32, #tpu.memory_space<vmem>>, vector<16x64xf32>,
    return
  }
}

</mosaic_0001>

<bundles_post_ra>
// kernel: timegrad_forward.1
= control target key start
LH: loop header
LB: loop body
LE: loop exit
PB: predicated region body
PF: predicated region fallthrough
CT: control target
= control target key end

     0   :  { %7 = vsyncpa [#allocation3], 0  ;;  %s10822_s9 = smov [#allocation2]   ;;  %s12313_s0 = inlined_call_operand.vmem [shape: f32[16,8], index: 0, kind: input, shape index: {}]   ;;  %s12314_s1 = inlined_call_operand.hbm [shape: f32[464,128], index: 1, kind: input, shape index: {}]   ;;  %s12315_s2 = inlined_call_operand.vmem [shape: f32[16,64], index: 2, kind: output, shape index: {}]  }
   0x1   :  { %s15_s10 = sshll.u32 %s10822_s9, 4  ;;  %s10798_s13 = scalar_lea.hbm %s12314_s1, 7424  ;;  %s16_s10 = int_to_ptr.vmem [resolvable:$true] %s15_s10 }
   0x2   :  { %p10799_p0 = scmp.ne.s32.totalorder %s12314_s1, %s10798_s13  ;;  %p10802_p1 = scmp.lt.u32.totalorder %s10798_s13, %s12314_s1 }
   0x4   :  { %p10804_p2 = pnand %p10802_p1, %p10799_p0 }
   0x6   :  { %10807 = shalt.err (!%p10804_p2)
}
   0x7   :  { %s10808_s18 = scalar_lea.vmem %s16_s10, 7424  ;;  %p10813_p4 = scmp.lt.s32.totalorder %s16_s10, %s16_s10 }
   0x8   :  { %p10809_p3 = scmp.ne.s32.totalorder %s16_s10, %s10808_s18  ;;  %p10814_p5 = scmp.lt.s32.totalorder %s10808_s18, %s10808_s18 }
   0xa   :  { %p10815_p6 = por %p10814_p5, %p10813_p4 }
   0xc   :  { %p10816_p7 = pnand %p10815_p6, %p10809_p3 }
   0xe   :  { %10819 = shalt.err (!%p10816_p7)
}
   0xf   :  { %s10823_s19 = smov 128   ;;  %s10824_s20 = smov 8  }
  0x10   :  { %21 = dma.hbm_to_vmem [thread:$0]  %s12314_s1, 7424, %s16_s10, [#allocation3], %s10823_s19, %s10823_s19, %s10824_s20  }
  0x11   :  { %10820 = dma.done.wait [#allocation3], 7424  }
  0x12   :  { %10821 = vsyncadd [#allocation3], 4294959872  ;;  %v10876_v0 = vld [vmem:[%s12313_s0] sm:$0xff]  ;;  %v28_v1 = vld [vmem:[#allocation2 + $0xa8] sm:$0xff]  ;;  %vm199_vm0 = vcmask 1042432   ;;  %s10825_s25 = smov 124   ;;  %v90_v15 = vlaneseq }
  0x13   :  { %188 = vrot.lane.b32.xlu0 %v10876_v0, %s10825_s25  ;;  %v193_v2 = vrot.slane %v28_v1, 2  ;;  %v26_v3 = vld [vmem:[%s12313_s0 + $0x8] sm:$0xff]  ;;  %vm194_vm1 = vcmask 23552   ;;  %v33_v6 = vld [vmem:[#allocation2 + $0xd0] sm:$0xff]  ;;  %v34_v7 = vld [vmem:[#allocation2 + $0xd8] sm:$0xff]  ;;  %vm476_vm2 = vcmask 1043456  }
  0x14   :  { %v10321_v8 = vpack.c.bf16 %v34_v7, %v33_v6  ;;  %v35_v9 = vld [vmem:[#allocation2 + $0xe0] sm:$0xff]  ;;  %v36_v10 = vld [vmem:[#allocation2 + $0xe8] sm:$0xff]  ;;  %v12318_v13 = vmov 0.0|0.0   ;;  %vm10827_vm3 = vmmov 0   ;;  %v12320_v14 = vmov 0.0   ;;  %v67_v35 = vld [vmem:[#allocation2 + $0x10] sm:$0xff] }
  0x15   :  { %9622 = vmatprep.subr.msk.mxu1 %vm199_vm0, %v193_v2  ;;  %v10325_v11 = vpack.c.bf16 %v36_v10, %v35_v9  ;;  %v65_v12 = vld [vmem:[#allocation2] sm:$0xf]  ;;  %10315 = vmatprep.subr.bf16.mxu0 %v12318_v13  ;;  %v10887_v16 = vshrl.u32 %v90_v15, 7  ;;  %vm109_vm4 = vcmask 261120   ;;  %vm471_vm5 = vcmask 31744   ;;  %v66_v34 = vld [vmem:[#allocation2 + $0x8] sm:$0xff] }
  0x16   :  { %9623 = vmatpush3.msk.msra.mxu1 %vm199_vm0, %v193_v2  ;;  %9619 = vmatprep.mubr.msk.f32.mxu0 %vm10827_vm3, %v12320_v14  ;;  %v10890_v18 = vld [vmem:[#allocation2 + $0xa0] sm:$0xff]  ;;  %v10897_v36 = vpack.c.bf16 %v67_v35, %v66_v34  ;;  %v68_v37 = vld [vmem:[#allocation2 + $0x18] sm:$0xff]  ;;  %v10829_v40 = vmov 1983009808   ;;  %v9130_v44 = vld [vmem:[#allocation2 + $0x28] ss:$0 sm:$0xff] }
  0x17   :  { %190 = vrot.lane.b32.xlu0 %v26_v3, %s10825_s25  ;;  %10322 = vmatprep.subr.bf16.mxu1 %v10321_v8  ;;  %v185_v17 = vsub.s32 3, %v10887_v16  ;;  %v69_v38 = vld [vmem:[#allocation2 + $0x20] sm:$0xff]  ;;  %v559_v41 = vunpack.c.l.s4 %v10829_v40  ;;  %v10830_v56 = vmov 7   ;;  %v10928_v57 = vand.u32 127, %v90_v15  ;;  %s10831_s0 = smov 32   ;;  %v29_v1 = vld [vmem:[#allocation2 + $0xb0] sm:$0xff] }
  0x18   :  { %v10901_v39 = vpack.c.bf16 %v69_v38, %v68_v37  ;;  %10584 = vset.pattern.permute.xlu1 %v10830_v56  ;;  %10585 = vset.pattern.permute.xlu0 %v10830_v56  ;;  %v30_v2 = vld [vmem:[#allocation2 + $0xb8] sm:$0xff]  ;;  %v37_v7 = vld [vmem:[#allocation2 + $0xf0] sm:$0xff]  ;;  %v39_v38 = vld [vmem:[#allocation2 + $0x100] sm:$0xff]  ;;  %s10832_s1 = smov 64   ;;  %s10833_s28 = smov 96   ;;  %vm2899_vm7 = vcmask 64512  }
  0x19   :  { %v186_v19 = vrot.slane %v10890_v18, %v185_v17  ;;  %v560_v45 = vunpack.c.0.s8 %v559_v41  ;;  %vm601_vm6 = vcmp.lt.s32.totalorder %v10928_v57, 96  ;;  %v12317_v17 = vsub.s32 0, %v10887_v16  ;;  %v40_v40 = vld [vmem:[#allocation2 + $0x108] sm:$0xff]  ;;  %s10834_s29 = smov 88   ;;  %s10835_s30 = smov 120  }
  0x1a   :  { %vm3563_vm8 = vcmask 9216   ;;  %vm3658_vm9 = vcmask 1041408   ;;  %vm3654_vm10 = vcmask 15360   ;;  %s10836_s3 = smov 56   ;;  %s10837_s4 = smov 80   ;;  %vm8382_vm11 = vcmask 130048  }
  0x1b   :  { %v10918_v49 = vsub.s32 %v560_v45, %v10887_v16  ;;  %s10838_s5 = smov 112   ;;  %s10839_s6 = smov 48   ;;  %vm8391_vm12 = vcmask 195584   ;;  %vm9114_vm13 = vcmask 523264  }
  0x1c   :  { %s10840_s7 = smov 72   ;;  %s10841_s8 = smov 104  }
  0x1d   :  { %s10842_s9 = smov 40   ;;  %s10843_s10 = smov 16  }
  0x1e   :  { %s10844_s11 = smov 24  }
  0x85   :  { %v189_v4 = vpop.permute.xlu0 %188 }
  0x86   :  { %9624 = vmatprep.mubr.msk.f32.mxu1 %vm194_vm1, %v189_v4  ;;  %v31_v4 = vld [vmem:[#allocation2 + $0xc0] sm:$0xff] }
  0x89   :  { %v191_v5 = vpop.permute.xlu0 %190 }
  0x8a   :  { %9625 = vmatmul.mubr.msk.f32.vlgmr.msra.gmra.mrb[0].mxu1 %vm194_vm1, %v191_v5  ;;  %v32_v5 = vld [vmem:[#allocation2 + $0xc8] sm:$0xff] }
  0x8b   :  { %10324 = vmatpush3.bf16.msra.mxu1 %v10321_v8  ;;  %v10319_v6 = vpack.c.bf16 %v32_v5, %v31_v4  ;;  %v38_v8 = vld [vmem:[#allocation2 + $0xf8] sm:$0xff] }
  0x8c   :  { %10326 = vmatprep.subr.bf16.mxu1 %v10325_v11  ;;  %v10329_v9 = vpack.c.bf16 %v38_v8, %v37_v7 }
  0x8f   :  { %10328 = vmatpush3.bf16.msra.mxu1 %v10325_v11 }
  0x90   :  { %9649 = vmatprep.subr.msk.mxu1 %vm476_vm2, %v65_v12 }
 0x15d   :  { %v9626_v20 = vpop.f32.mrb[0].mxu1 }
 0x15e   :  { %v274_v21 = vadd.f32 %v9626_v20, %v186_v19  ;;  %v268_v22 = vpop.f32.mrb[1].mxu1  ;;  %v12316_v20 = vsub.s32 1, %v10887_v16 }
 0x15f   :  { %v269_v23 = vadd.f32 %v268_v22, %v186_v19  ;;  %v93_v22 = vrot.slane %v10890_v18, %v12317_v17 }
 0x160   :  { %v278_v24 = vmul.f32 0.5, %v274_v21 }
 0x161   :  { %v277_v25 = vmul.f32 0.5, %v269_v23 }
 0x162   :  { %10586 = vtanh.f32 %v278_v24  ;;  %v98_v24 = vrot.slane %v10890_v18, %v12316_v20 }
 0x163   :  { %10588 = vtanh.f32 %v277_v25 }
 0x16c   :  { %v10587_v26 = vpop.eup %10586 }
 0x16d   :  { %v10589_v27 = vpop.eup %10588  ;;  %v282_v28 = vmul.f32 0.5, %v10587_v26 }
 0x16e   :  { %v281_v29 = vmul.f32 0.5, %v10589_v27 }
 0x16f   :  { %v284_v30 = vadd.f32 0.5, %v282_v28 }
 0x170   :  { %v283_v31 = vadd.f32 0.5, %v281_v29 }
 0x171   :  { %v286_v33 = vmul.f32 %v284_v30, %v274_v21 }
 0x172   :  { %v285_v32 = vmul.f32 %v283_v31, %v269_v23 }
 0x174   :  { %9635 = vmatprep.mubr.msk.f32.mxu1 %vm109_vm4, %v285_v32 }
 0x175   :  { %9636 = vmatmul.mubr.msk.f32.vlgmr.msra.gmra.mrb[2].mxu1 %vm109_vm4, %v286_v33 }
 0x176   :  { %9650 = vmatpush3.msk.msra.mxu1 %vm476_vm2, %v65_v12  ;;  %9651 = vmatprep.mubr.msk.f32.mxu1 %vm471_vm5, %v10876_v0 }
 0x177   :  { %10337 = vmatprep.subr.bf16.mxu1 %v12318_v13 }
 0x179   :  { %9652 = vmatmul.mubr.msk.f32.vlgmr.msra.gmra.mrb[4].mxu1 %vm471_vm5, %v26_v3  ;;  %v10316_v3 = vpack.c.bf16 %v30_v2, %v29_v1  ;;  %v77_v1 = vld [vmem:[#allocation2 + $0x60] sm:$0xff]  ;;  %v78_v2 = vld [vmem:[#allocation2 + $0x68] sm:$0xff] }
 0x17a   :  { %10339 = vmatpush3.bf16.msra.mxu1 %v10897_v36  ;;  %9662 = vmatprep.mubr.msk.f32.mxu1 %vm10827_vm3, %v12320_v14  ;;  %v10977_v4 = vpack.c.bf16 %v78_v2, %v77_v1 }
 0x17b   :  { %10340 = vmatprep.subr.bf16.mxu1 %v12318_v13  ;;  %10317 = vmatpush3.bf16.msra.mxu0 %v10316_v3 }
 0x17c   :  { %10318 = vmatprep.subr.bf16.mxu0 %v12318_v13 }
 0x17e   :  { %10342 = vmatpush3.bf16.msra.mxu1 %v10901_v39 }
 0x17f   :  { %10355 = vmatprep.subr.bf16.mxu1 %v12318_v13  ;;  %10320 = vmatpush3.bf16.msra.mxu0 %v10319_v6 }
 0x180   :  { %10330 = vmatprep.subr.bf16.mxu0 %v10329_v9 }
 0x181   :  { %9663 = vmatmul.mubr.f32.vlgmr.msra.gmra.mrb[6].mxu1 %v12320_v14 }
 0x182   :  { %10357 = vmatpush3.bf16.msra.mxu1 %v10897_v36  ;;  %9695 = vmatprep.mubr.msk.f32.mxu1 %vm10827_vm3, %v12320_v14 }
 0x183   :  { %10358 = vmatprep.subr.bf16.mxu1 %v12318_v13 }
 0x186   :  { %10360 = vmatpush3.bf16.msra.mxu1 %v10901_v39 }
 0x187   :  { %10361 = vmatprep.subr.bf16.mxu1 %v12318_v13 }
 0x248   :  { %v9637_v42 = vpop.f32.mrb[2].mxu1 }
 0x249   :  { %v363_v43 = vpop.f32.mrb[3].mxu1 }
 0x24c   :  { %v9653_v46 = vpop.f32.mrb[4].mxu1 }
 0x24d   :  { %v10915_v47 = vadd.f32 %v9653_v46, %v9130_v44  ;;  %v546_v48 = vpop.f32.mrb[5].mxu1  ;;  %v71_v46 = vld [vmem:[#allocation2 + $0x30] sm:$0xff] }
 0x24e   :  { %v10920_v50 = vadd.f32 %v9130_v44, %v546_v48  ;;  %v10333_v44 = vpack.c.bf16 %v40_v40, %v39_v38  ;;  %v72_v48 = vld [vmem:[#allocation2 + $0x38] sm:$0xff] }
 0x250   :  { %v10924_v51 = vrot.slane %v10920_v50, %v10918_v49 }
 0x252   :  { %v572_v8 = vcombine.high %v10924_v51, %v10924_v51 }
 0x254   :  { %v671_v52 = vpop.f32.mrb[6].mxu1 }
 0x255   :  { %v675_v53 = vadd.f32 %v671_v52, %v10924_v51  ;;  %v9664_v54 = vpop.f32.mrb[7].mxu1  ;;  %v10958_v52 = vpack.c.bf16 %v72_v48, %v71_v46 }
 0x256   :  { %v73_v54 = vld [vmem:[#allocation2 + $0x40] sm:$0xff] }
 0x257   :  { %v676_v55 = vmul.f32 0.5, %v675_v53 }
 0x259   :  { %10590 = vtanh.f32 %v676_v55  ;;  %v74_v55 = vld [vmem:[#allocation2 + $0x48] sm:$0xff] }
 0x25a   :  { %v10963_v56 = vpack.c.bf16 %v74_v55, %v73_v54  ;;  %v557_v54 = vcombine.high %v10920_v50, %v10920_v50 }
 0x25c   :  { %v11054_v55 = vrot.slane %v557_v54, %v10918_v49 }
 0x263   :  { %v10591_v58 = vpop.eup %10590 }
 0x264   :  { %v678_v59 = vmul.f32 0.5, %v10591_v58 }
 0x266   :  { %v679_v60 = vadd.f32 0.5, %v678_v59 }
 0x268   :  { %v10933_v61 = vsel %vm601_vm6, %v679_v60, %v10591_v58  ;;  %v75_v60 = vld [vmem:[#allocation2 + $0x50] sm:$0xff] }
 0x269   :  { %683 = vrot.lane.b32.xlu1 %v10933_v61, %s10831_s0  ;;  %v681_v10 = vmul.f32 0.0, %v10933_v61 }
 0x2db   :  { %v684_v62 = vpop.permute.xlu1 %683 }
 0x2dc   :  { %v686_v63 = vmul.f32 %v684_v62, %v10933_v61  ;;  %v76_v62 = vld [vmem:[#allocation2 + $0x58] sm:$0xff] }
 0x2de   :  { %688 = vrot.lane.b32.xlu1 %v686_v63, %s10831_s0  ;;  %v10972_v63 = vpack.c.bf16 %v76_v62, %v75_v60 }
 0x2e2   :  { %87 = vperm.xlu1 %10584, %v10876_v0   ;;  %v289_v0 = vsub.s32 4, %v10887_v16 }
 0x2e4   :  { %v290_v15 = vrot.slane %v10890_v18, %v289_v0 }
 0x2e6   :  { %v364_v19 = vadd.f32 %v363_v43, %v290_v15  ;;  %v369_v26 = vadd.f32 %v9637_v42, %v290_v15  ;;  %v11005_v15 = vld [vmem:[#allocation2 + $0x70] ss:$0 sm:$0xff] }
 0x2e8   :  { %v372_v23 = vmul.f32 0.5, %v364_v19  ;;  %v373_v29 = vmul.f32 0.5, %v369_v26 }
 0x350   :  { %v689_v11 = vpop.permute.xlu1 %688 }
 0x351   :  { %v10942_v12 = vadd.f32 %v689_v11, %v681_v10 }
 0x353   :  { %10592 = vtanh.f32 %v10942_v12 }
 0x354   :  { %10594 = vtanh.f32 %v372_v23 }
 0x35d   :  { %v10593_v21 = vpop.eup %10592 }
 0x35e   :  { %694 = vrot.lane.b32.xlu0 %v10593_v21, %s10831_s0  ;;  %v10595_v31 = vpop.eup %10594 }
 0x35f   :  { %v376_v32 = vmul.f32 0.5, %v10595_v31 }
 0x361   :  { %v88_v25 = vpop.permute.xlu1 %87  ;;  %v378_v37 = vadd.f32 0.5, %v376_v32 }
 0x362   :  { %v94_v27 = vmul.f32 %v93_v22, %v88_v25 }
 0x363   :  { %v380_v42 = vmul.f32 %v378_v37, %v364_v19 }
 0x364   :  { %v99_v28 = vadd.f32 %v98_v24, %v94_v27 }
 0x366   :  { %v100_v30 = vmul.f32 0.5, %v99_v28 }
 0x368   :  { %10596 = vtanh.f32 %v100_v30 }
 0x369   :  { %10598 = vtanh.f32 %v373_v29 }
 0x372   :  { %v10597_v33 = vpop.eup %10596 }
 0x373   :  { %v102_v34 = vmul.f32 0.5, %v10597_v33  ;;  %v10599_v35 = vpop.eup %10598 }
 0x374   :  { %v377_v43 = vmul.f32 0.5, %v10599_v35 }
 0x375   :  { %v103_v41 = vadd.f32 0.5, %v102_v34 }
 0x376   :  { %v379_v45 = vadd.f32 0.5, %v377_v43 }
 0x377   :  { %v104_v18 = vmul.f32 %v103_v41, %v99_v28 }
 0x378   :  { %v381_v53 = vmul.f32 %v379_v45, %v369_v26 }
 0x379   :  { %9620 = vmatmul.mubr.msk.f32.vlgmr.msra.gmra.mrb[0].mxu0 %vm109_vm4, %v104_v18 }
 0x37a   :  { %10332 = vmatpush3.bf16.msra.mxu0 %v10329_v9  ;;  %9646 = vmatprep.mubr.msk.f32.mxu0 %vm109_vm4, %v380_v42 }
 0x37b   :  { %10334 = vmatprep.subr.bf16.mxu0 %v10333_v44 }
 0x37e   :  { %10336 = vmatpush3.bf16.msra.mxu0 %v10333_v44 }
 0x37f   :  { %10343 = vmatprep.subr.bf16.mxu0 %v12318_v13 }
 0x381   :  { %9647 = vmatmul.mubr.msk.f32.vlgmr.msra.gmra.mrb[2].mxu0 %vm109_vm4, %v381_v53 }
 0x382   :  { %10345 = vmatpush3.bf16.msra.mxu0 %v10958_v52  ;;  %9673 = vmatprep.mubr.msk.f32.mxu0 %vm10827_vm3, %v12320_v14 }
 0x383   :  { %10346 = vmatprep.subr.bf16.mxu0 %v12318_v13 }
 0x386   :  { %10348 = vmatpush3.bf16.msra.mxu0 %v10963_v56 }
 0x387   :  { %10349 = vmatprep.subr.bf16.mxu0 %v12318_v13 }
 0x3d0   :  { %v695_v58 = vpop.permute.xlu0 %694 }
 0x3d1   :  { %v697_v59 = vmul.f32 %v695_v58, %v10933_v61 }
 0x3d3   :  { %703 = vrot.lane.b32.xlu0 %v697_v59, %s10832_s1 }
 0x445   :  { %v704_v3 = vpop.permute.xlu0 %703 }
 0x446   :  { %9674 = vmatmul.mubr.msk.f32.vlgmr.msra.gmra.mrb[4].mxu0 %vm109_vm4, %v704_v3  ;;  %9696 = vmatmul.mubr.msk.f32.vlgmr.msra.gmra.mrb[8].mxu1 %vm109_vm4, %v704_v3 }
 0x447   :  { %10351 = vmatpush3.bf16.msra.mxu0 %v10972_v63  ;;  %9684 = vmatprep.mubr.msk.f32.mxu0 %vm10827_vm3, %v12320_v14 }
 0x448   :  { %10352 = vmatprep.subr.bf16.mxu0 %v12318_v13  ;;  %10363 = vmatpush3.bf16.msra.mxu1 %v10958_v52 }
 0x449   :  { %10364 = vmatprep.subr.bf16.mxu1 %v12318_v13  ;;  %9706 = vmatprep.mubr.msk.f32.mxu1 %vm10827_vm3, %v12320_v14 }
 0x44b   :  { %10354 = vmatpush3.bf16.msra.mxu0 %v10977_v4 }
 0x44c   :  { %v10987_v61 = vpop.f32.mrb[0].mxu0  ;;  %10373 = vmatprep.subr.bf16.mxu0 %v12318_v13  ;;  %10366 = vmatpush3.bf16.msra.mxu1 %v10963_v56 }
 0x44d   :  { %v9621_v5 = vpop.f32.mrb[1].mxu0  ;;  %10367 = vmatprep.subr.bf16.mxu1 %v12318_v13 }
 0x44e   :  { %9685 = vmatmul.mubr.f32.vlgmr.msra.gmra.mrb[4].mxu0 %v12320_v14 }
 0x44f   :  { %10375 = vmatpush3.bf16.msra.mxu0 %v10897_v36  ;;  %9728 = vmatprep.mubr.msk.f32.mxu0 %vm10827_vm3, %v12320_v14 }
 0x450   :  { %10376 = vmatprep.subr.bf16.mxu0 %v12318_v13 }
 0x453   :  { %10378 = vmatpush3.bf16.msra.mxu0 %v10901_v39 }
 0x454   :  { %v10998_v6 = vpop.f32.mrb[2].mxu0  ;;  %10379 = vmatprep.subr.bf16.mxu0 %v12318_v13 }
 0x455   :  { %v11001_v7 = vpop.f32.mrb[3].mxu0 }
 0x519   :  { %v936_v9 = vpop.f32.mrb[8].mxu1 }
 0x51a   :  { %v940_v10 = vadd.f32 %v936_v9, %v572_v8  ;;  %v9697_v11 = vpop.f32.mrb[9].mxu1 }
 0x51c   :  { %v941_v0 = vmul.f32 0.5, %v940_v10 }
 0x51e   :  { %10600 = vtanh.f32 %v941_v0 }
 0x521   :  { %v843_v19 = vpop.f32.mrb[4].mxu0 }
 0x522   :  { %v10535_v21 = vadd.f32 %v11005_v15, %v843_v19  ;;  %v9686_v22 = vpop.f32.mrb[5].mxu0 }
 0x524   :  { %v848_v23 = vmul.f32 0.5, %v10535_v21 }
 0x526   :  { %10602 = vtanh.f32 %v848_v23 }
 0x528   :  { %v10601_v24 = vpop.eup %10600 }
 0x529   :  { %v943_v25 = vmul.f32 0.5, %v10601_v24 }
 0x52b   :  { %v944_v26 = vadd.f32 0.5, %v943_v25 }
 0x52d   :  { %v945_v27 = vsel %vm601_vm6, %v944_v26, %v10601_v24 }
 0x52e   :  { %948 = vrot.lane.b32.xlu1 %v945_v27, %s10831_s0  ;;  %v946_v35 = vmul.f32 %v945_v27, %v10942_v12 }
 0x530   :  { %v10603_v51 = vpop.eup %10602 }
 0x531   :  { %v850_v28 = vmul.f32 0.5, %v10603_v51 }
 0x533   :  { %v851_v29 = vadd.f32 0.5, %v850_v28 }
 0x535   :  { %v852_v30 = vsel %vm601_vm6, %v851_v29, %v10603_v51 }
 0x536   :  { %855 = vrot.lane.b32.xlu0 %v852_v30, %s10831_s0  ;;  %v853_v40 = vmul.f32 0.0, %v852_v30 }
 0x5a0   :  { %v949_v31 = vpop.permute.xlu1 %948 }
 0x5a1   :  { %v951_v32 = vmul.f32 %v949_v31, %v945_v27 }
 0x5a3   :  { %953 = vrot.lane.b32.xlu1 %v951_v32, %s10831_s0 }
 0x5a8   :  { %v856_v33 = vpop.permute.xlu0 %855 }
 0x5a9   :  { %v858_v34 = vmul.f32 %v856_v33, %v852_v30 }
 0x5ab   :  { %860 = vrot.lane.b32.xlu0 %v858_v34, %s10831_s0 }
 0x615   :  { %v954_v37 = vpop.permute.xlu1 %953 }
 0x616   :  { %v11017_v38 = vadd.f32 %v954_v37, %v946_v35 }
 0x618   :  { %10604 = vtanh.f32 %v11017_v38 }
 0x61d   :  { %v861_v41 = vpop.permute.xlu0 %860 }
 0x61e   :  { %v11020_v43 = vadd.f32 %v861_v41, %v853_v40  ;;  %v573_v41 = vcombine.high %v11054_v55, %v11054_v55 }
 0x620   :  { %10606 = vtanh.f32 %v11020_v43 }
 0x622   :  { %v10605_v18 = vpop.eup %10604 }
 0x623   :  { %959 = vrot.lane.b32.xlu1 %v10605_v18, %s10831_s0 }
 0x62a   :  { %v10607_v44 = vpop.eup %10606 }
 0x62b   :  { %866 = vrot.lane.b32.xlu0 %v10607_v44, %s10831_s0 }
 0x695   :  { %v960_v42 = vpop.permute.xlu1 %959 }
 0x696   :  { %v962_v45 = vmul.f32 %v960_v42, %v945_v27 }
 0x698   :  { %964 = vrot.lane.b32.xlu1 %v962_v45, %s10832_s1 }
 0x69d   :  { %v867_v12 = vpop.permute.xlu0 %866 }
 0x69e   :  { %v11026_v46 = vmul.f32 %v867_v12, %v852_v30 }
 0x6a0   :  { %12334 = vst [vmem:[#allocation5_spill] sm:$0xff] %v11026_v46  ;;  %1039 = vrot.lane.b32.xlu0 %v11026_v46, %s10832_s1 }
 0x70a   :  { %v965_v48 = vpop.permute.xlu1 %964 }
 0x70b   :  { %9707 = vmatmul.mubr.msk.f32.vlgmr.msra.gmra.mrb[10].mxu1 %vm109_vm4, %v965_v48  ;;  %9729 = vmatmul.mubr.msk.f32.vlgmr.msra.gmra.mrb[6].mxu0 %vm109_vm4, %v965_v48 }
 0x70c   :  { %10369 = vmatpush3.bf16.msra.mxu1 %v10972_v63  ;;  %9717 = vmatprep.mubr.msk.f32.mxu1 %vm10827_vm3, %v12320_v14 }
 0x70d   :  { %10370 = vmatprep.subr.bf16.mxu1 %v12318_v13  ;;  %10381 = vmatpush3.bf16.msra.mxu0 %v10958_v52 }
 0x70e   :  { %10382 = vmatprep.subr.bf16.mxu0 %v12318_v13  ;;  %9739 = vmatprep.mubr.msk.f32.mxu0 %vm10827_vm3, %v12320_v14 }
 0x710   :  { %10372 = vmatpush3.bf16.msra.mxu1 %v10977_v4 }
 0x711   :  { %10391 = vmatprep.subr.bf16.mxu1 %v12318_v13  ;;  %10384 = vmatpush3.bf16.msra.mxu0 %v10963_v56 }
 0x712   :  { %v1040_v53 = vpop.permute.xlu0 %1039  ;;  %10385 = vmatprep.subr.bf16.mxu0 %v12318_v13 }
 0x713   :  { %9718 = vmatmul.mubr.msk.f32.vlgmr.msra.gmra.mrb[10].mxu1 %vm109_vm4, %v1040_v53 }
 0x714   :  { %10393 = vmatpush3.bf16.msra.mxu1 %v10897_v36  ;;  %9761 = vmatprep.mubr.msk.f32.mxu1 %vm10827_vm3, %v12320_v14 }
 0x715   :  { %10394 = vmatprep.subr.bf16.mxu1 %v12318_v13 }
 0x718   :  { %10396 = vmatpush3.bf16.msra.mxu1 %v10901_v39 }
 0x719   :  { %10397 = vmatprep.subr.bf16.mxu1 %v12318_v13 }
 0x7de   :  { %v1202_v58 = vpop.f32.mrb[6].mxu0 }
 0x7df   :  { %v1206_v59 = vadd.f32 %v1202_v58, %v11054_v55  ;;  %v9730_v60 = vpop.f32.mrb[7].mxu0 }
 0x7e1   :  { %v1207_v62 = vmul.f32 0.5, %v1206_v59 }
 0x7e3   :  { %10608 = vtanh.f32 %v1207_v62 }
 0x7e6   :  { %v1109_v1 = vpop.f32.mrb[10].mxu1 }
 0x7e7   :  { %v10536_v2 = vadd.f32 %v11005_v15, %v1109_v1  ;;  %v9719_v3 = vpop.f32.mrb[11].mxu1 }
 0x7e9   :  { %v1114_v5 = vmul.f32 0.5, %v10536_v2 }
 0x7eb   :  { %10610 = vtanh.f32 %v1114_v5 }
 0x7ed   :  { %v10609_v8 = vpop.eup %10608 }
 0x7ee   :  { %v1209_v9 = vmul.f32 0.5, %v10609_v8 }
 0x7f0   :  { %v1210_v10 = vadd.f32 0.5, %v1209_v9 }
 0x7f2   :  { %v1211_v50 = vsel %vm601_vm6, %v1210_v10, %v10609_v8 }
 0x7f3   :  { %1214 = vrot.lane.b32.xlu1 %v1211_v50, %s10831_s0  ;;  %v1212_v26 = vmul.f32 %v1211_v50, %v11017_v38 }
 0x7f5   :  { %v10611_v11 = vpop.eup %10610 }
 0x7f6   :  { %v1116_v0 = vmul.f32 0.5, %v10611_v11 }
 0x7f8   :  { %v1117_v19 = vadd.f32 0.5, %v1116_v0 }
 0x7fa   :  { %v1118_v21 = vsel %vm601_vm6, %v1117_v19, %v10611_v11 }
 0x7fb   :  { %1121 = vrot.lane.b32.xlu0 %v1118_v21, %s10831_s0  ;;  %v1119_v28 = vmul.f32 %v1118_v21, %v11020_v43 }
 0x865   :  { %v1215_v22 = vpop.permute.xlu1 %1214 }
 0x866   :  { %v1217_v23 = vmul.f32 %v1215_v22, %v1211_v50 }
 0x868   :  { %1219 = vrot.lane.b32.xlu1 %v1217_v23, %s10831_s0 }
 0x86d   :  { %v1122_v24 = vpop.permute.xlu0 %1121 }
 0x86e   :  { %v1124_v25 = vmul.f32 %v1122_v24, %v1118_v21 }
 0x870   :  { %1126 = vrot.lane.b32.xlu0 %v1124_v25, %s10831_s0 }
 0x8da   :  { %v1220_v27 = vpop.permute.xlu1 %1219 }
 0x8db   :  { %v11067_v51 = vadd.f32 %v1220_v27, %v1212_v26 }
 0x8dd   :  { %10612 = vtanh.f32 %v11067_v51 }
 0x8e2   :  { %v1127_v29 = vpop.permute.xlu0 %1126 }
 0x8e3   :  { %v11071_v30 = vadd.f32 %v1127_v29, %v1119_v28  ;;  %v11151_v29 = vrot.slane %v10915_v47, %v10918_v49 }
 0x8e5   :  { %10614 = vtanh.f32 %v11071_v30 }
 0x8e7   :  { %v10613_v31 = vpop.eup %10612 }
 0x8e8   :  { %1225 = vrot.lane.b32.xlu1 %v10613_v31, %s10831_s0 }
 0x8ef   :  { %v10615_v32 = vpop.eup %10614 }
 0x8f0   :  { %1132 = vrot.lane.b32.xlu0 %v10615_v32, %s10831_s0 }
 0x95a   :  { %v1226_v33 = vpop.permute.xlu1 %1225 }
 0x95b   :  { %v1228_v34 = vmul.f32 %v1226_v33, %v1211_v50 }
 0x95d   :  { %1230 = vrot.lane.b32.xlu1 %v1228_v34, %s10832_s1 }
 0x962   :  { %v1133_v35 = vpop.permute.xlu0 %1132 }
 0x963   :  { %v11077_v37 = vmul.f32 %v1133_v35, %v1118_v21 }
 0x965   :  { %12335 = vst [vmem:[#allocation6_spill] sm:$0xff] %v11077_v37  ;;  %1305 = vrot.lane.b32.xlu0 %v11077_v37, %s10832_s1 }
 0x9cf   :  { %v1231_v38 = vpop.permute.xlu1 %1230 }
 0x9d0   :  { %9740 = vmatmul.mubr.msk.f32.vlgmr.msra.gmra.mrb[8].mxu0 %vm109_vm4, %v1231_v38  ;;  %9762 = vmatmul.mubr.msk.f32.vlgmr.msra.gmra.mrb[12].mxu1 %vm109_vm4, %v1231_v38 }
 0x9d1   :  { %10387 = vmatpush3.bf16.msra.mxu0 %v10972_v63  ;;  %9750 = vmatprep.mubr.msk.f32.mxu0 %vm10827_vm3, %v12320_v14 }
 0x9d2   :  { %10388 = vmatprep.subr.bf16.mxu0 %v12318_v13  ;;  %10399 = vmatpush3.bf16.msra.mxu1 %v10958_v52 }
 0x9d3   :  { %10400 = vmatprep.subr.bf16.mxu1 %v12318_v13  ;;  %9772 = vmatprep.mubr.msk.f32.mxu1 %vm10827_vm3, %v12320_v14 }
 0x9d5   :  { %10390 = vmatpush3.bf16.msra.mxu0 %v10977_v4 }
 0x9d6   :  { %10409 = vmatprep.subr.bf16.mxu0 %v12318_v13  ;;  %10402 = vmatpush3.bf16.msra.mxu1 %v10963_v56 }
 0x9d7   :  { %v1306_v40 = vpop.permute.xlu0 %1305  ;;  %10403 = vmatprep.subr.bf16.mxu1 %v12318_v13 }
 0x9d8   :  { %9751 = vmatmul.mubr.msk.f32.vlgmr.msra.gmra.mrb[8].mxu0 %vm109_vm4, %v1306_v40 }
 0x9d9   :  { %10411 = vmatpush3.bf16.msra.mxu0 %v10897_v36  ;;  %9794 = vmatprep.mubr.msk.f32.mxu0 %vm10827_vm3, %v12320_v14 }
 0x9da   :  { %10412 = vmatprep.subr.bf16.mxu0 %v12318_v13 }
 0x9dd   :  { %10414 = vmatpush3.bf16.msra.mxu0 %v10901_v39 }
 0x9de   :  { %10415 = vmatprep.subr.bf16.mxu0 %v12318_v13 }
 0xaa3   :  { %v1468_v43 = vpop.f32.mrb[12].mxu1 }
 0xaa4   :  { %v1472_v18 = vadd.f32 %v1468_v43, %v573_v41  ;;  %v9763_v44 = vpop.f32.mrb[13].mxu1 }
 0xaa6   :  { %v1473_v42 = vmul.f32 0.5, %v1472_v18 }
 0xaa8   :  { %10616 = vtanh.f32 %v1473_v42 }
 0xaab   :  { %v1375_v45 = vpop.f32.mrb[8].mxu0 }
 0xaac   :  { %v10537_v12 = vadd.f32 %v11005_v15, %v1375_v45  ;;  %v9752_v48 = vpop.f32.mrb[9].mxu0 }
 0xaae   :  { %v1380_v53 = vmul.f32 0.5, %v10537_v12 }
 0xab0   :  { %10618 = vtanh.f32 %v1380_v53 }
 0xab2   :  { %v10617_v54 = vpop.eup %10616 }
 0xab3   :  { %v1475_v58 = vmul.f32 0.5, %v10617_v54 }
 0xab5   :  { %v1476_v59 = vadd.f32 0.5, %v1475_v58 }
 0xab7   :  { %v1477_v60 = vsel %vm601_vm6, %v1476_v59, %v10617_v54 }
 0xab8   :  { %1480 = vrot.lane.b32.xlu1 %v1477_v60, %s10831_s0  ;;  %v1478_v10 = vmul.f32 %v1477_v60, %v11067_v51 }
 0xaba   :  { %v10619_v55 = vpop.eup %10618 }
 0xabb   :  { %v1382_v62 = vmul.f32 0.5, %v10619_v55 }
 0xabd   :  { %v1383_v1 = vadd.f32 0.5, %v1382_v62 }
 0xabf   :  { %v1384_v2 = vsel %vm601_vm6, %v1383_v1, %v10619_v55 }
 0xac0   :  { %1387 = vrot.lane.b32.xlu0 %v1384_v2, %s10831_s0  ;;  %v1385_v0 = vmul.f32 %v1384_v2, %v11071_v30 }
 0xb2a   :  { %v1481_v3 = vpop.permute.xlu1 %1480 }
 0xb2b   :  { %v1483_v5 = vmul.f32 %v1481_v3, %v1477_v60 }
 0xb2d   :  { %1485 = vrot.lane.b32.xlu1 %v1483_v5, %s10831_s0 }
 0xb32   :  { %v1388_v8 = vpop.permute.xlu0 %1387 }
 0xb33   :  { %v1390_v9 = vmul.f32 %v1388_v8, %v1384_v2 }
 0xb35   :  { %1392 = vrot.lane.b32.xlu0 %v1390_v9, %s10831_s0 }
 0xb9f   :  { %v1486_v50 = vpop.permute.xlu1 %1485 }
 0xba0   :  { %v11114_v11 = vadd.f32 %v1486_v50, %v1478_v10 }
 0xba2   :  { %10620 = vtanh.f32 %v11114_v11 }
 0xba7   :  { %v1393_v19 = vpop.permute.xlu0 %1392 }
 0xba8   :  { %v11118_v21 = vadd.f32 %v1393_v19, %v1385_v0 }
 0xbaa   :  { %10622 = vtanh.f32 %v11118_v21 }
 0xbac   :  { %v10621_v22 = vpop.eup %10620 }
 0xbad   :  { %1491 = vrot.lane.b32.xlu1 %v10621_v22, %s10831_s0 }
 0xbb4   :  { %v10623_v23 = vpop.eup %10622 }
 0xbb5   :  { %1398 = vrot.lane.b32.xlu0 %v10623_v23, %s10831_s0 }
 0xc1f   :  { %v1492_v24 = vpop.permute.xlu1 %1491 }
 0xc20   :  { %v1494_v25 = vmul.f32 %v1492_v24, %v1477_v60 }
 0xc22   :  { %1496 = vrot.lane.b32.xlu1 %v1494_v25, %s10832_s1 }
 0xc27   :  { %v1399_v26 = vpop.permute.xlu0 %1398 }
 0xc28   :  { %v11124_v27 = vmul.f32 %v1399_v26, %v1384_v2 }
 0xc2a   :  { %12336 = vst [vmem:[#allocation7_spill] sm:$0xff] %v11124_v27  ;;  %1571 = vrot.lane.b32.xlu0 %v11124_v27, %s10832_s1 }
 0xc94   :  { %v1497_v51 = vpop.permute.xlu1 %1496 }
 0xc95   :  { %9773 = vmatmul.mubr.msk.f32.vlgmr.msra.gmra.mrb[14].mxu1 %vm109_vm4, %v1497_v51  ;;  %9795 = vmatmul.mubr.msk.f32.vlgmr.msra.gmra.mrb[10].mxu0 %vm109_vm4, %v1497_v51 }
 0xc96   :  { %10405 = vmatpush3.bf16.msra.mxu1 %v10972_v63  ;;  %9783 = vmatprep.mubr.msk.f32.mxu1 %vm10827_vm3, %v12320_v14 }
 0xc97   :  { %10406 = vmatprep.subr.bf16.mxu1 %v12318_v13  ;;  %10417 = vmatpush3.bf16.msra.mxu0 %v10958_v52 }
 0xc98   :  { %10418 = vmatprep.subr.bf16.mxu0 %v12318_v13  ;;  %9805 = vmatprep.mubr.msk.f32.mxu0 %vm10827_vm3, %v12320_v14 }
 0xc9a   :  { %10408 = vmatpush3.bf16.msra.mxu1 %v10977_v4 }
 0xc9b   :  { %10427 = vmatprep.subr.bf16.mxu1 %v12318_v13  ;;  %10420 = vmatpush3.bf16.msra.mxu0 %v10963_v56 }
 0xc9c   :  { %v1572_v28 = vpop.permute.xlu0 %1571  ;;  %10421 = vmatprep.subr.bf16.mxu0 %v12318_v13 }
 0xc9d   :  { %9784 = vmatmul.mubr.msk.f32.vlgmr.msra.gmra.mrb[14].mxu1 %vm109_vm4, %v1572_v28 }
 0xc9e   :  { %10429 = vmatpush3.bf16.msra.mxu1 %v10897_v36  ;;  %9827 = vmatprep.mubr.msk.f32.mxu1 %vm10827_vm3, %v12320_v14 }
 0xc9f   :  { %10430 = vmatprep.subr.bf16.mxu1 %v12318_v13 }
 0xca2   :  { %10432 = vmatpush3.bf16.msra.mxu1 %v10901_v39 }
 0xca3   :  { %10433 = vmatprep.subr.bf16.mxu1 %v12318_v13 }
 0xd68   :  { %v1734_v30 = vpop.f32.mrb[10].mxu0 }
 0xd69   :  { %v1738_v31 = vadd.f32 %v1734_v30, %v11151_v29  ;;  %v9796_v32 = vpop.f32.mrb[11].mxu0 }
 0xd6b   :  { %v1739_v33 = vmul.f32 0.5, %v1738_v31 }
 0xd6d   :  { %10624 = vtanh.f32 %v1739_v33 }
 0xd70   :  { %v1641_v34 = vpop.f32.mrb[14].mxu1 }
 0xd71   :  { %v10538_v35 = vadd.f32 %v11005_v15, %v1641_v34  ;;  %v9785_v38 = vpop.f32.mrb[15].mxu1 }
 0xd73   :  { %v1646_v40 = vmul.f32 0.5, %v10538_v35 }
 0xd75   :  { %10626 = vtanh.f32 %v1646_v40 }
 0xd77   :  { %v10625_v41 = vpop.eup %10624 }
 0xd78   :  { %v1741_v43 = vmul.f32 0.5, %v10625_v41 }
 0xd7a   :  { %v1742_v18 = vadd.f32 0.5, %v1741_v43 }
 0xd7c   :  { %v1743_v44 = vsel %vm601_vm6, %v1742_v18, %v10625_v41 }
 0xd7d   :  { %1746 = vrot.lane.b32.xlu1 %v1743_v44, %s10831_s0  ;;  %v1744_v60 = vmul.f32 %v1743_v44, %v11114_v11 }
 0xd7f   :  { %v10627_v42 = vpop.eup %10626 }
 0xd80   :  { %v1648_v45 = vmul.f32 0.5, %v10627_v42 }
 0xd82   :  { %v1649_v12 = vadd.f32 0.5, %v1648_v45 }
 0xd84   :  { %v1650_v48 = vsel %vm601_vm6, %v1649_v12, %v10627_v42 }
 0xd85   :  { %1653 = vrot.lane.b32.xlu0 %v1650_v48, %s10831_s0  ;;  %v1651_v1 = vmul.f32 %v1650_v48, %v11118_v21  ;;  %v589_v21 = vcombine.high %v11151_v29, %v11151_v29 }
 0xdef   :  { %v1747_v53 = vpop.permute.xlu1 %1746 }
 0xdf0   :  { %v1749_v54 = vmul.f32 %v1747_v53, %v1743_v44 }
 0xdf2   :  { %1751 = vrot.lane.b32.xlu1 %v1749_v54, %s10831_s0 }
 0xdf7   :  { %v1654_v58 = vpop.permute.xlu0 %1653 }
 0xdf8   :  { %v1656_v59 = vmul.f32 %v1654_v58, %v1650_v48 }
 0xdfa   :  { %1658 = vrot.lane.b32.xlu0 %v1656_v59, %s10831_s0 }
 0xe64   :  { %v1752_v55 = vpop.permute.xlu1 %1751 }
 0xe65   :  { %v11164_v62 = vadd.f32 %v1752_v55, %v1744_v60 }
 0xe67   :  { %10628 = vtanh.f32 %v11164_v62 }
 0xe6c   :  { %v1659_v2 = vpop.permute.xlu0 %1658 }
 0xe6d   :  { %v11168_v3 = vadd.f32 %v1659_v2, %v1651_v1 }
 0xe6f   :  { %10630 = vtanh.f32 %v11168_v3 }
 0xe71   :  { %v10629_v5 = vpop.eup %10628 }
 0xe72   :  { %1757 = vrot.lane.b32.xlu1 %v10629_v5, %s10831_s0  ;;  %v574_v5 = vcombine.high %v10915_v47, %v10915_v47 }
 0xe79   :  { %v10631_v8 = vpop.eup %10630 }
 0xe7a   :  { %1664 = vrot.lane.b32.xlu0 %v10631_v8, %s10831_s0  ;;  %v588_v8 = vrot.slane %v574_v5, %v10918_v49 }
 0xee4   :  { %v1758_v9 = vpop.permute.xlu1 %1757 }
 0xee5   :  { %v1760_v10 = vmul.f32 %v1758_v9, %v1743_v44 }
 0xee7   :  { %1762 = vrot.lane.b32.xlu1 %v1760_v10, %s10832_s1 }
 0xeec   :  { %v1665_v50 = vpop.permute.xlu0 %1664 }
 0xeed   :  { %v11174_v11 = vmul.f32 %v1665_v50, %v1650_v48 }
 0xeef   :  { %12337 = vst [vmem:[#allocation8_spill] sm:$0xff] %v11174_v11  ;;  %1837 = vrot.lane.b32.xlu0 %v11174_v11, %s10832_s1 }
 0xf59   :  { %v1763_v0 = vpop.permute.xlu1 %1762 }
 0xf5a   :  { %9806 = vmatmul.mubr.msk.f32.vlgmr.msra.gmra.mrb[12].mxu0 %vm109_vm4, %v1763_v0  ;;  %9828 = vmatmul.mubr.msk.f32.vlgmr.msra.gmra.mrb[16].mxu1 %vm109_vm4, %v1763_v0 }
 0xf5b   :  { %10423 = vmatpush3.bf16.msra.mxu0 %v10972_v63  ;;  %9816 = vmatprep.mubr.msk.f32.mxu0 %vm10827_vm3, %v12320_v14 }
 0xf5c   :  { %10424 = vmatprep.subr.bf16.mxu0 %v12318_v13  ;;  %10435 = vmatpush3.bf16.msra.mxu1 %v10958_v52 }
 0xf5d   :  { %10436 = vmatprep.subr.bf16.mxu1 %v12318_v13  ;;  %9838 = vmatprep.mubr.msk.f32.mxu1 %vm10827_vm3, %v12320_v14 }
 0xf5f   :  { %10426 = vmatpush3.bf16.msra.mxu0 %v10977_v4 }
 0xf60   :  { %10445 = vmatprep.subr.bf16.mxu0 %v12318_v13  ;;  %10438 = vmatpush3.bf16.msra.mxu1 %v10963_v56 }
 0xf61   :  { %v1838_v19 = vpop.permute.xlu0 %1837  ;;  %10439 = vmatprep.subr.bf16.mxu1 %v12318_v13 }
 0xf62   :  { %9817 = vmatmul.mubr.msk.f32.vlgmr.msra.gmra.mrb[12].mxu0 %vm109_vm4, %v1838_v19 }
 0xf63   :  { %10447 = vmatpush3.bf16.msra.mxu0 %v10897_v36  ;;  %9860 = vmatprep.mubr.msk.f32.mxu0 %vm10827_vm3, %v12320_v14 }
 0xf64   :  { %10448 = vmatprep.subr.bf16.mxu0 %v12318_v13 }
 0xf67   :  { %10450 = vmatpush3.bf16.msra.mxu0 %v10901_v39 }
 0xf68   :  { %10451 = vmatprep.subr.bf16.mxu0 %v12318_v13 }
0x102d   :  { %v2000_v22 = vpop.f32.mrb[16].mxu1 }
0x102e   :  { %v2004_v23 = vadd.f32 %v2000_v22, %v589_v21  ;;  %v9829_v24 = vpop.f32.mrb[17].mxu1 }
0x1030   :  { %v2005_v25 = vmul.f32 0.5, %v2004_v23 }
0x1032   :  { %10632 = vtanh.f32 %v2005_v25 }
0x1035   :  { %v1907_v26 = vpop.f32.mrb[12].mxu0 }
0x1036   :  { %v10539_v51 = vadd.f32 %v11005_v15, %v1907_v26  ;;  %v9818_v28 = vpop.f32.mrb[13].mxu0 }
0x1038   :  { %v1912_v30 = vmul.f32 0.5, %v10539_v51 }
0x103a   :  { %10634 = vtanh.f32 %v1912_v30 }
0x103c   :  { %v10633_v31 = vpop.eup %10632 }
0x103d   :  { %v2007_v32 = vmul.f32 0.5, %v10633_v31 }
0x103f   :  { %v2008_v33 = vadd.f32 0.5, %v2007_v32 }
0x1041   :  { %v2009_v34 = vsel %vm601_vm6, %v2008_v33, %v10633_v31 }
0x1042   :  { %2012 = vrot.lane.b32.xlu1 %v2009_v34, %s10831_s0  ;;  %v2010_v42 = vmul.f32 %v2009_v34, %v11164_v62 }
0x1044   :  { %v10635_v29 = vpop.eup %10634 }
0x1045   :  { %v1914_v35 = vmul.f32 0.5, %v10635_v29 }
0x1047   :  { %v1915_v38 = vadd.f32 0.5, %v1914_v35 }
0x1049   :  { %v1916_v40 = vsel %vm601_vm6, %v1915_v38, %v10635_v29 }
0x104a   :  { %1919 = vrot.lane.b32.xlu0 %v1916_v40, %s10831_s0  ;;  %v1917_v48 = vmul.f32 %v1916_v40, %v11168_v3 }
0x10b4   :  { %v2013_v41 = vpop.permute.xlu1 %2012 }
0x10b5   :  { %v2015_v43 = vmul.f32 %v2013_v41, %v2009_v34 }
0x10b7   :  { %2017 = vrot.lane.b32.xlu1 %v2015_v43, %s10831_s0 }
0x10bc   :  { %v1920_v18 = vpop.permute.xlu0 %1919 }
0x10bd   :  { %v1922_v44 = vmul.f32 %v1920_v18, %v1916_v40 }
0x10bf   :  { %1924 = vrot.lane.b32.xlu0 %v1922_v44, %s10831_s0 }
0x1129   :  { %v2018_v45 = vpop.permute.xlu1 %2017 }
0x112a   :  { %v11211_v12 = vadd.f32 %v2018_v45, %v2010_v42 }
0x112c   :  { %10636 = vtanh.f32 %v11211_v12 }
0x1131   :  { %v1925_v53 = vpop.permute.xlu0 %1924 }
0x1132   :  { %v11215_v54 = vadd.f32 %v1925_v53, %v1917_v48 }
0x1134   :  { %10638 = vtanh.f32 %v11215_v54 }
0x1136   :  { %v10637_v58 = vpop.eup %10636 }
0x1137   :  { %2023 = vrot.lane.b32.xlu1 %v10637_v58, %s10831_s0 }
0x113e   :  { %v10639_v59 = vpop.eup %10638 }
0x113f   :  { %1930 = vrot.lane.b32.xlu0 %v10639_v59, %s10831_s0 }
0x11a9   :  { %v2024_v60 = vpop.permute.xlu1 %2023 }
0x11aa   :  { %v2026_v55 = vmul.f32 %v2024_v60, %v2009_v34 }
0x11ac   :  { %2028 = vrot.lane.b32.xlu1 %v2026_v55, %s10832_s1 }
0x11b1   :  { %v1931_v62 = vpop.permute.xlu0 %1930 }
0x11b2   :  { %v11221_v1 = vmul.f32 %v1931_v62, %v1916_v40 }
0x11b4   :  { %12338 = vst [vmem:[#allocation9_spill] sm:$0xff] %v11221_v1  ;;  %2103 = vrot.lane.b32.xlu0 %v11221_v1, %s10832_s1 }
0x121e   :  { %v2029_v2 = vpop.permute.xlu1 %2028 }
0x121f   :  { %9839 = vmatmul.mubr.msk.f32.vlgmr.msra.gmra.mrb[18].mxu1 %vm109_vm4, %v2029_v2  ;;  %9861 = vmatmul.mubr.msk.f32.vlgmr.msra.gmra.mrb[14].mxu0 %vm109_vm4, %v2029_v2 }
0x1220   :  { %10441 = vmatpush3.bf16.msra.mxu1 %v10972_v63  ;;  %9849 = vmatprep.mubr.msk.f32.mxu1 %vm10827_vm3, %v12320_v14 }
0x1221   :  { %10442 = vmatprep.subr.bf16.mxu1 %v12318_v13  ;;  %10453 = vmatpush3.bf16.msra.mxu0 %v10958_v52 }
0x1222   :  { %10454 = vmatprep.subr.bf16.mxu0 %v12318_v13  ;;  %9871 = vmatprep.mubr.msk.f32.mxu0 %vm10827_vm3, %v12320_v14 }
0x1224   :  { %10444 = vmatpush3.bf16.msra.mxu1 %v10977_v4 }
0x1225   :  { %10463 = vmatprep.subr.bf16.mxu1 %v12318_v13  ;;  %10456 = vmatpush3.bf16.msra.mxu0 %v10963_v56 }
0x1226   :  { %v2104_v3 = vpop.permute.xlu0 %2103  ;;  %10457 = vmatprep.subr.bf16.mxu0 %v12318_v13 }
0x1227   :  { %9850 = vmatmul.mubr.msk.f32.vlgmr.msra.gmra.mrb[18].mxu1 %vm109_vm4, %v2104_v3 }
0x1228   :  { %10465 = vmatpush3.bf16.msra.mxu1 %v10897_v36  ;;  %9893 = vmatprep.mubr.msk.f32.mxu1 %vm10827_vm3, %v12320_v14 }
0x1229   :  { %10466 = vmatprep.subr.bf16.mxu1 %v12318_v13 }
0x122c   :  { %10468 = vmatpush3.bf16.msra.mxu1 %v10901_v39 }
0x122d   :  { %10469 = vmatprep.subr.bf16.mxu1 %v12318_v13 }
0x12f2   :  { %v2266_v9 = vpop.f32.mrb[14].mxu0 }
0x12f3   :  { %v2270_v10 = vadd.f32 %v2266_v9, %v588_v8  ;;  %v9862_v50 = vpop.f32.mrb[15].mxu0 }
0x12f5   :  { %v2271_v0 = vmul.f32 0.5, %v2270_v10 }
0x12f7   :  { %10640 = vtanh.f32 %v2271_v0 }
0x12fa   :  { %v2173_v36 = vpop.f32.mrb[18].mxu1 }
0x12fb   :  { %v10540_v19 = vadd.f32 %v11005_v15, %v2173_v36  ;;  %v9851_v21 = vpop.f32.mrb[19].mxu1 }
0x12fd   :  { %v2178_v22 = vmul.f32 0.5, %v10540_v19 }
0x12ff   :  { %10642 = vtanh.f32 %v2178_v22 }
0x1301   :  { %v10641_v23 = vpop.eup %10640 }
0x1302   :  { %v2273_v39 = vmul.f32 0.5, %v10641_v23 }
0x1304   :  { %v2274_v24 = vadd.f32 0.5, %v2273_v39 }
0x1306   :  { %v2275_v25 = vsel %vm601_vm6, %v2274_v24, %v10641_v23 }
0x1307   :  { %2278 = vrot.lane.b32.xlu1 %v2275_v25, %s10831_s0  ;;  %v2276_v34 = vmul.f32 %v2275_v25, %v11211_v12 }
0x1309   :  { %v10643_v47 = vpop.eup %10642 }
0x130a   :  { %v2180_v26 = vmul.f32 0.5, %v10643_v47 }
0x130c   :  { %v2181_v51 = vadd.f32 0.5, %v2180_v26 }
0x130e   :  { %v2182_v28 = vsel %vm601_vm6, %v2181_v51, %v10643_v47 }
0x130f   :  { %2185 = vrot.lane.b32.xlu0 %v2182_v28, %s10831_s0  ;;  %v2183_v38 = vmul.f32 %v2182_v28, %v11215_v54  ;;  %v590_v54 = vcombine.high %v588_v8, %v588_v8 }
0x1379   :  { %v2279_v30 = vpop.permute.xlu1 %2278 }
0x137a   :  { %v2281_v31 = vmul.f32 %v2279_v30, %v2275_v25 }
0x137c   :  { %2283 = vrot.lane.b32.xlu1 %v2281_v31, %s10831_s0 }
0x1381   :  { %v2186_v32 = vpop.permute.xlu0 %2185 }
0x1382   :  { %v2188_v33 = vmul.f32 %v2186_v32, %v2182_v28 }
0x1384   :  { %2190 = vrot.lane.b32.xlu0 %v2188_v33, %s10831_s0 }
0x13ee   :  { %v2284_v29 = vpop.permute.xlu1 %2283 }
0x13ef   :  { %v2286_v35 = vadd.f32 %v2284_v29, %v2276_v34 }
0x13f1   :  { %10644 = vtanh.f32 %v2286_v35 }
0x13f6   :  { %v2191_v40 = vpop.permute.xlu0 %2190 }
0x13f7   :  { %v2193_v41 = vadd.f32 %v2191_v40, %v2183_v38 }
0x13f9   :  { %10646 = vtanh.f32 %v2193_v41 }
0x13fb   :  { %v10645_v43 = vpop.eup %10644 }
0x13fc   :  { %2289 = vrot.lane.b32.xlu1 %v10645_v43, %s10831_s0 }
0x1403   :  { %v10647_v18 = vpop.eup %10646 }
0x1404   :  { %2196 = vrot.lane.b32.xlu0 %v10647_v18, %s10831_s0 }
0x146e   :  { %v2290_v44 = vpop.permute.xlu1 %2289 }
0x146f   :  { %v2292_v42 = vmul.f32 %v2290_v44, %v2275_v25 }
0x1471   :  { %2294 = vrot.lane.b32.xlu1 %v2292_v42, %s10832_s1  ;;  %v2738_v42 = vcombine.low %v11124_v27, %v11174_v11 }
0x1476   :  { %v2197_v45 = vpop.permute.xlu0 %2196 }
0x1477   :  { %v11263_v12 = vmul.f32 %v2197_v45, %v2182_v28  ;;  %v2737_v45 = vcombine.low %v11026_v46, %v11077_v37 }
0x1479   :  { %12339 = vst [vmem:[#allocation10_spill] sm:$0xff] %v11263_v12  ;;  %2369 = vrot.lane.b32.xlu0 %v11263_v12, %s10832_s1 }
0x14e3   :  { %v2295_v48 = vpop.permute.xlu1 %2294 }
0x14e4   :  { %9872 = vmatmul.mubr.msk.f32.vlgmr.msra.gmra.mrb[16].mxu0 %vm109_vm4, %v2295_v48  ;;  %9894 = vmatmul.mubr.msk.f32.vlgmr.msra.gmra.mrb[20].mxu1 %vm109_vm4, %v2295_v48 }
0x14e5   :  { %10459 = vmatpush3.bf16.msra.mxu0 %v10972_v63  ;;  %9882 = vmatprep.mubr.msk.f32.mxu0 %vm10827_vm3, %v12320_v14 }
0x14e6   :  { %10460 = vmatprep.subr.bf16.mxu0 %v12318_v13  ;;  %10471 = vmatpush3.bf16.msra.mxu1 %v10958_v52 }
0x14e7   :  { %10472 = vmatprep.subr.bf16.mxu1 %v12318_v13  ;;  %9904 = vmatprep.mubr.msk.f32.mxu1 %vm10827_vm3, %v12320_v14 }
0x14e9   :  { %10462 = vmatpush3.bf16.msra.mxu0 %v10977_v4 }
0x14ea   :  { %10474 = vmatpush3.bf16.msra.mxu1 %v10963_v56 }
0x14eb   :  { %v2370_v53 = vpop.permute.xlu0 %2369  ;;  %10475 = vmatprep.subr.bf16.mxu1 %v12318_v13 }
0x14ec   :  { %9883 = vmatmul.mubr.msk.f32.vlgmr.msra.gmra.mrb[16].mxu0 %vm109_vm4, %v2370_v53 }
0x15b7   :  { %v2532_v58 = vpop.f32.mrb[20].mxu1 }
0x15b8   :  { %v2536_v59 = vadd.f32 %v2532_v58, %v590_v54  ;;  %v9895_v60 = vpop.f32.mrb[21].mxu1  ;;  %v2745_v54 = vrot.slane %v2737_v45, %v10918_v49 }
0x15ba   :  { %v2537_v55 = vmul.f32 0.5, %v2536_v59 }
0x15bc   :  { %10648 = vtanh.f32 %v2537_v55 }
0x15bf   :  { %v2439_v52 = vpop.f32.mrb[16].mxu0 }
0x15c0   :  { %v10541_v62 = vadd.f32 %v11005_v15, %v2439_v52  ;;  %v9884_v2 = vpop.f32.mrb[17].mxu0  ;;  %v80_v52 = vld [vmem:[#allocation2 + $0x78] sm:$0xff] }
0x15c1   :  { %v82_v2 = vld [vmem:[#allocation2 + $0x88] sm:$0xff] }
0x15c2   :  { %v2444_v3 = vmul.f32 0.5, %v10541_v62  ;;  %v81_v62 = vld [vmem:[#allocation2 + $0x80] sm:$0xff] }
0x15c4   :  { %10650 = vtanh.f32 %v2444_v3  ;;  %v10481_v3 = vpack.c.bf16 %v81_v62, %v80_v52 }
0x15c6   :  { %v10649_v5 = vpop.eup %10648  ;;  %10482 = vmatprep.subr.bf16.mxu0 %v10481_v3 }
0x15c7   :  { %v2539_v9 = vmul.f32 0.5, %v10649_v5  ;;  %10484 = vmatpush3.bf16.msra.mxu0 %v10481_v3 }
0x15c9   :  { %v2540_v56 = vadd.f32 0.5, %v2539_v9 }
0x15cb   :  { %v2541_v10 = vsel %vm601_vm6, %v2540_v56, %v10649_v5  ;;  %v83_v5 = vld [vmem:[#allocation2 + $0x90] sm:$0xff] }
0x15cc   :  { %2544 = vrot.lane.b32.xlu1 %v2541_v10, %s10831_s0  ;;  %v2542_v39 = vmul.f32 %v2541_v10, %v2286_v35  ;;  %v10485_v9 = vpack.c.bf16 %v83_v5, %v82_v2 }
0x15ce   :  { %v10651_v8 = vpop.eup %10650  ;;  %10486 = vmatprep.subr.bf16.mxu0 %v10485_v9 }
0x15cf   :  { %v2446_v50 = vmul.f32 0.5, %v10651_v8  ;;  %10488 = vmatpush3.bf16.msra.mxu0 %v10485_v9 }
0x15d0   :  { %9929 = vmatprep.subr.mxu0 %v12320_v14 }
0x15d1   :  { %v2447_v0 = vadd.f32 0.5, %v2446_v50 }
0x15d3   :  { %v2448_v36 = vsel %vm601_vm6, %v2447_v0, %v10651_v8  ;;  %v2754_v8 = vcombine.low %v11221_v1, %v11263_v12 }
0x15d4   :  { %2451 = vrot.lane.b32.xlu0 %v2448_v36, %s10831_s0  ;;  %v2449_v47 = vmul.f32 %v2448_v36, %v2193_v41 }
0x163e   :  { %v2545_v19 = vpop.permute.xlu1 %2544 }
0x163f   :  { %v2547_v21 = vmul.f32 %v2545_v19, %v2541_v10 }
0x1641   :  { %2549 = vrot.lane.b32.xlu1 %v2547_v21, %s10831_s0 }
0x1646   :  { %v2452_v22 = vpop.permute.xlu0 %2451 }
0x1647   :  { %v2454_v23 = vmul.f32 %v2452_v22, %v2448_v36 }
0x1649   :  { %2456 = vrot.lane.b32.xlu0 %v2454_v23, %s10831_s0  ;;  %v9157_v23 = vld [vmem:[#allocation2 + $0x98] ss:$0 sm:$0xff] }
0x16b3   :  { %v2550_v24 = vpop.permute.xlu1 %2549 }
0x16b4   :  { %v11290_v25 = vadd.f32 %v2550_v24, %v2542_v39 }
0x16b6   :  { %12340 = vst [vmem:[#allocation11_spill] sm:$0xff] %v11290_v25  ;;  %10652 = vtanh.f32 %v11290_v25 }
0x16bb   :  { %v2457_v26 = vpop.permute.xlu0 %2456 }
0x16bc   :  { %v2459_v51 = vadd.f32 %v2457_v26, %v2449_v47 }
0x16be   :  { %10654 = vtanh.f32 %v2459_v51 }
0x16c0   :  { %v10653_v28 = vpop.eup %10652 }
0x16c1   :  { %2555 = vrot.lane.b32.xlu1 %v10653_v28, %s10831_s0 }
0x16c8   :  { %v10655_v30 = vpop.eup %10654 }
0x16c9   :  { %2462 = vrot.lane.b32.xlu0 %v10655_v30, %s10831_s0 }
0x1733   :  { %v2556_v31 = vpop.permute.xlu1 %2555 }
0x1734   :  { %v11295_v32 = vmul.f32 %v2556_v31, %v2541_v10 }
0x1736   :  { %12341 = vst [vmem:[#allocation12_spill] sm:$0xff] %v11295_v32  ;;  %2560 = vrot.lane.b32.xlu1 %v11295_v32, %s10832_s1 }
0x173b   :  { %v2463_v33 = vpop.permute.xlu0 %2462 }
0x173c   :  { %v11299_v34 = vmul.f32 %v2463_v33, %v2448_v36  ;;  %v2762_v36 = vrot.slane %v2754_v8, %v10918_v49 }
0x173e   :  { %12342 = vst [vmem:[#allocation13_spill] sm:$0xff] %v11299_v34  ;;  %2635 = vrot.lane.b32.xlu0 %v11299_v34, %s10832_s1 }
0x17a8   :  { %v2561_v29 = vpop.permute.xlu1 %2560 }
0x17a9   :  { %9905 = vmatmul.mubr.msk.f32.vlgmr.msra.gmra.mrb[22].mxu1 %vm109_vm4, %v2561_v29 }
0x17aa   :  { %10477 = vmatpush3.bf16.msra.mxu1 %v10972_v63  ;;  %9915 = vmatprep.mubr.msk.f32.mxu1 %vm10827_vm3, %v12320_v14 }
0x17ab   :  { %10478 = vmatprep.subr.bf16.mxu1 %v12318_v13 }
0x17ae   :  { %10480 = vmatpush3.bf16.msra.mxu1 %v10977_v4 }
0x17af   :  { %9939 = vmatprep.subr.mxu1 %v12320_v14 }
0x17b0   :  { %v2636_v35 = vpop.permute.xlu0 %2635 }
0x17b1   :  { %9916 = vmatmul.mubr.msk.f32.vlgmr.msra.gmra.mrb[22].mxu1 %vm109_vm4, %v2636_v35 }
0x17b2   :  { %9941 = vmatprep.mubr.msk.f32.mxu1 %vm10827_vm3, %v12320_v14 }
0x1884   :  { %v2705_v38 = vpop.f32.mrb[22].mxu1 }
0x1885   :  { %v10542_v40 = vadd.f32 %v11005_v15, %v2705_v38  ;;  %v9917_v41 = vpop.f32.mrb[23].mxu1  ;;  %v2752_v15 = vrot.slane %v2738_v42, %v10918_v49 }
0x1887   :  { %v2710_v63 = vmul.f32 0.5, %v10542_v40  ;;  %v2753_v58 = vcombine.low %v2745_v54, %v2752_v15 }
0x1889   :  { %10656 = vtanh.f32 %v2710_v63 }
0x1893   :  { %v10657_v43 = vpop.eup %10656 }
0x1894   :  { %v2712_v18 = vmul.f32 0.5, %v10657_v43 }
0x1896   :  { %v2713_v44 = vadd.f32 0.5, %v2712_v18 }
0x1898   :  { %v2714_v4 = vsel %vm601_vm6, %v2713_v44, %v10657_v43 }
0x1899   :  { %2717 = vrot.lane.b32.xlu1 %v2714_v4, %s10831_s0  ;;  %v2715_v57 = vmul.f32 %v2714_v4, %v2459_v51 }
0x190b   :  { %v2718_v48 = vpop.permute.xlu1 %2717 }
0x190c   :  { %v2720_v53 = vmul.f32 %v2718_v48, %v2714_v4 }
0x190e   :  { %2722 = vrot.lane.b32.xlu0 %v2720_v53, %s10831_s0 }
0x1912   :  { %2771 = vrot.lane.b32.xlu0 %v2753_v58, %s10832_s1 }
0x1980   :  { %v2723_v59 = vpop.permute.xlu0 %2722 }
0x1981   :  { %v11325_v60 = vadd.f32 %v2723_v59, %v2715_v57 }
0x1983   :  { %12343 = vst [vmem:[#allocation14_spill] sm:$0xff] %v11325_v60  ;;  %10658 = vtanh.f32 %v11325_v60 }
0x1984   :  { %v2772_v55 = vpop.permute.xlu0 %2771 }
0x1985   :  { %9926 = vmatprep.mubr.msk.f32.mxu0 %vm109_vm4, %v2772_v55 }
0x198d   :  { %v10659_v56 = vpop.eup %10658 }
0x198e   :  { %2728 = vrot.lane.b32.xlu1 %v10659_v56, %s10831_s0 }
0x1a00   :  { %v2729_v10 = vpop.permute.xlu1 %2728 }
0x1a01   :  { %v11333_v50 = vmul.f32 %v2729_v10, %v2714_v4 }
0x1a03   :  { %12344 = vst [vmem:[#allocation15_spill] sm:$0xff] %v11333_v50  ;;  %v2755_v0 = vcombine.low %v11299_v34, %v11333_v50 }
0x1a05   :  { %v2769_v19 = vrot.slane %v2755_v0, %v10918_v49 }
0x1a07   :  { %v2770_v21 = vcombine.low %v2762_v36, %v2769_v19 }
0x1a09   :  { %2773 = vrot.lane.b32.xlu1 %v2770_v21, %s10832_s1 }
0x1a7b   :  { %v2774_v22 = vpop.permute.xlu1 %2773 }
0x1a7c   :  { %9927 = vmatmul.mubr.msk.f32.vlgmr.msra.gmra.mrb[18].mxu0 %vm109_vm4, %v2774_v22 }
0x1a7d   :  { %9931 = vmatprep.mubr.msk.f32.mxu0 %vm10827_vm3, %v12320_v14 }
0x1b4f   :  { %v9928_v39 = vpop.f32.mrb[18].mxu0 }
0x1b50   :  { %v2845_v24 = vpop.f32.mrb[19].mxu0  ;;  %v2851_v26 = vadd.f32 %v9928_v39, %v9157_v23 }
0x1b51   :  { %v2846_v47 = vadd.f32 %v9157_v23, %v2845_v24 }
0x1b52   :  { %v2873_v29 = vcombine.high %v2851_v26, %v2851_v26  ;;  %v2880_v35 = vrot.slane %v2851_v26, %v10918_v49 }
0x1b53   :  { %v2856_v51 = vcombine.high %v2846_v47, %v2846_v47  ;;  %v2863_v28 = vrot.slane %v2846_v47, %v10918_v49 }
0x1b54   :  { %v2887_v63 = vrot.slane %v2873_v29, %v10918_v49  ;;  %v2888_v43 = vcombine.high %v2880_v35, %v2880_v35  ;;  %v11366_v44 = vrot.slane %v2880_v35, %v10918_v49 }
0x1b55   :  { %v2870_v30 = vrot.slane %v2856_v51, %v10918_v49  ;;  %v2871_v31 = vcombine.high %v2863_v28, %v2863_v28  ;;  %v11346_v33 = vrot.slane %v2863_v28, %v10918_v49 }
0x1b56   :  { %v2889_v4 = vcombine.high %v2887_v63, %v2887_v63  ;;  %v11371_v42 = vrot.slane %v2888_v43, %v10918_v49  ;;  %v11376_v45 = vrot.slane %v2887_v63, %v10918_v49 }
0x1b57   :  { %v2872_v38 = vcombine.high %v2870_v30, %v2870_v30  ;;  %v11350_v40 = vrot.slane %v2871_v31, %v10918_v49  ;;  %2897 = vrot.lane.b32.xlu0 %v11346_v33, %s10833_s28  ;;  %v11355_v41 = vrot.slane %v2870_v30, %v10918_v49 }
0x1b58   :  { %v11381_v48 = vrot.slane %v2889_v4, %v10918_v49 }
0x1b59   :  { %2981 = vrot.lane.b32.xlu1 %v11350_v40, %s10833_s28  ;;  %v11361_v18 = vrot.slane %v2872_v38, %v10918_v49 }
0x1b5b   :  { %3064 = vrot.lane.b32.xlu0 %v11355_v41, %s10833_s28 }
0x1b5d   :  { %3147 = vrot.lane.b32.xlu1 %v11361_v18, %s10833_s28 }
0x1b5f   :  { %3230 = vrot.lane.b32.xlu0 %v11366_v44, %s10833_s28 }
0x1b61   :  { %3313 = vrot.lane.b32.xlu1 %v11371_v42, %s10833_s28 }
0x1b63   :  { %3396 = vrot.lane.b32.xlu0 %v11376_v45, %s10833_s28 }
0x1b65   :  { %3479 = vrot.lane.b32.xlu1 %v11381_v48, %s10833_s28 }
0x1bc9   :  { %v2898_v53 = vpop.permute.xlu0 %2897 }
0x1bca   :  { %9930 = vmatpush3.xpose.msk.msra.mxu0 %vm2899_vm7, %v2898_v53 }
0x1bcb   :  { %v2982_v15 = vpop.permute.xlu1 %2981  ;;  %9934 = vmatprep.subr.mxu0 %v12320_v14 }
0x1bcd   :  { %9932 = vmatmul.mubr.msk.f32.vlgmr.msra.gmra.mrb[20].mxu0 %vm2899_vm7, %v2863_v28  ;;  %v3065_v54 = vpop.permute.xlu0 %3064 }
0x1bce   :  { %9935 = vmatpush3.xpose.msk.msra.mxu0 %vm2899_vm7, %v2982_v15  ;;  %9940 = vmatpush3.xpose.msk.msra.mxu1 %vm2899_vm7, %v3065_v54 }
0x1bcf   :  { %v3148_v58 = vpop.permute.xlu1 %3147  ;;  %9936 = vmatprep.mubr.msk.f32.mxu0 %vm10827_vm3, %v12320_v14  ;;  %9944 = vmatprep.subr.mxu0 %v12320_v14 }
0x1bd0   :  { %9949 = vmatprep.subr.mxu1 %v12320_v14 }
0x1bd1   :  { %9937 = vmatmul.mubr.msk.f32.vlgmr.msra.gmra.mrb[22].mxu0 %vm2899_vm7, %v2871_v31  ;;  %9942 = vmatmul.mubr.msk.f32.vlgmr.msra.gmra.mrb[24].mxu1 %vm2899_vm7, %v2870_v30  ;;  %v3231_v57 = vpop.permute.xlu0 %3230 }
0x1bd2   :  { %9945 = vmatpush3.xpose.msk.msra.mxu0 %vm2899_vm7, %v3148_v58  ;;  %9950 = vmatpush3.xpose.msk.msra.mxu1 %vm2899_vm7, %v3231_v57 }
0x1bd3   :  { %v3314_v59 = vpop.permute.xlu1 %3313  ;;  %9946 = vmatprep.mubr.msk.f32.mxu0 %vm10827_vm3, %v12320_v14  ;;  %9951 = vmatprep.mubr.msk.f32.mxu1 %vm10827_vm3, %v12320_v14 }
0x1bd4   :  { %9959 = vmatprep.subr.mxu1 %v12320_v14  ;;  %9954 = vmatprep.subr.mxu0 %v12320_v14 }
0x1bd5   :  { %9952 = vmatmul.mubr.msk.f32.vlgmr.msra.gmra.mrb[26].mxu1 %vm2899_vm7, %v2880_v35  ;;  %v3397_v55 = vpop.permute.xlu0 %3396  ;;  %9947 = vmatmul.mubr.msk.f32.vlgmr.msra.gmra.mrb[24].mxu0 %vm2899_vm7, %v2872_v38 }
0x1bd6   :  { %9955 = vmatpush3.xpose.msk.msra.mxu0 %vm2899_vm7, %v3314_v59  ;;  %9960 = vmatpush3.xpose.msk.msra.mxu1 %vm2899_vm7, %v3397_v55 }
0x1bd7   :  { %9956 = vmatprep.mubr.msk.f32.mxu0 %vm10827_vm3, %v12320_v14  ;;  %9961 = vmatprep.mubr.msk.f32.mxu1 %vm10827_vm3, %v12320_v14  ;;  %v3480_v52 = vpop.permute.xlu1 %3479 }
0x1bd8   :  { %9964 = vmatprep.subr.mxu0 %v12320_v14  ;;  %9969 = vmatprep.subr.mxu1 %v12320_v14 }
0x1bd9   :  { %9957 = vmatmul.mubr.msk.f32.vlgmr.msra.gmra.mrb[26].mxu0 %vm2899_vm7, %v2888_v43  ;;  %9962 = vmatmul.mubr.msk.f32.vlgmr.msra.gmra.mrb[28].mxu1 %vm2899_vm7, %v2887_v63 }
0x1bda   :  { %9965 = vmatpush3.xpose.msk.msra.mxu0 %vm2899_vm7, %v3480_v52  ;;  %9966 = vmatprep.mubr.msk.f32.mxu0 %vm10827_vm3, %v12320_v14 }
0x1bdb   :  { %9974 = vmatprep.subr.mxu0 %v12320_v14  ;;  %9971 = vmatprep.mubr.msk.f32.mxu1 %vm10827_vm3, %v12320_v14 }
0x1bdd   :  { %9967 = vmatmul.mubr.msk.f32.vlgmr.msra.gmra.mrb[28].mxu0 %vm2899_vm7, %v2889_v4 }
0x1bde   :  { %9976 = vmatprep.mubr.msk.f32.mxu0 %vm10827_vm3, %v12320_v14 }
0x1ca0   :  { %v2970_v62 = vpop.f32.mrb[20].mxu0 }
0x1ca1   :  { %v3555_v2 = vmul.f32 0.35355338, %v2970_v62  ;;  %v9933_v3 = vpop.f32.mrb[21].mxu0 }
0x1ca3   :  { %v3564_v5 = vsel %vm3563_vm8, %v3555_v2, -inf }
0x1ca4   :  { %v3053_v9 = vpop.f32.mrb[22].mxu0  ;;  %3565 = vmax.xlane.f32.xlu0 %v3564_v5  ;;  %v3136_v56 = vpop.f32.mrb[24].mxu1 }
0x1ca5   :  { %v3556_v10 = vmul.f32 0.35355338, %v3053_v9  ;;  %v3557_v8 = vmul.f32 0.35355338, %v3136_v56  ;;  %v9938_v0 = vpop.f32.mrb[23].mxu0  ;;  %v9943_v36 = vpop.f32.mrb[25].mxu1 }
0x1ca7   :  { %v3570_v19 = vsel %vm3563_vm8, %v3557_v8, -inf  ;;  %v3567_v21 = vsel %vm3563_vm8, %v3556_v10, -inf }
0x1ca8   :  { %3571 = vmax.xlane.f32.xlu0 %v3570_v19  ;;  %v3302_v22 = vpop.f32.mrb[26].mxu1  ;;  %3568 = vmax.xlane.f32.xlu1 %v3567_v21  ;;  %v3219_v23 = vpop.f32.mrb[24].mxu0 }
0x1ca9   :  { %v3559_v39 = vmul.f32 0.35355338, %v3302_v22  ;;  %v3558_v24 = vmul.f32 0.35355338, %v3219_v23  ;;  %v9948_v47 = vpop.f32.mrb[25].mxu0  ;;  %v9953_v26 = vpop.f32.mrb[27].mxu1 }
0x1cab   :  { %v3576_v51 = vsel %vm3563_vm8, %v3559_v39, -inf  ;;  %v3573_v28 = vsel %vm3563_vm8, %v3558_v24, -inf }
0x1cac   :  { %v3468_v30 = vpop.f32.mrb[28].mxu1  ;;  %3577 = vmax.xlane.f32.xlu1 %v3576_v51  ;;  %3574 = vmax.xlane.f32.xlu0 %v3573_v28  ;;  %v3385_v31 = vpop.f32.mrb[26].mxu0 }
0x1cad   :  { %v3561_v29 = vmul.f32 0.35355338, %v3468_v30  ;;  %v3560_v35 = vmul.f32 0.35355338, %v3385_v31  ;;  %v9958_v38 = vpop.f32.mrb[27].mxu0  ;;  %v9963_v63 = vpop.f32.mrb[29].mxu1 }
0x1caf   :  { %v3582_v43 = vsel %vm3563_vm8, %v3561_v29, -inf  ;;  %v3579_v4 = vsel %vm3563_vm8, %v3560_v35, -inf }
0x1cb0   :  { %3583 = vmax.xlane.f32.xlu1 %v3582_v43  ;;  %3580 = vmax.xlane.f32.xlu0 %v3579_v4  ;;  %v3551_v53 = vpop.f32.mrb[28].mxu0 }
0x1cb1   :  { %v3562_v15 = vmul.f32 0.35355338, %v3551_v53  ;;  %v9968_v54 = vpop.f32.mrb[29].mxu0 }
0x1cb3   :  { %v3585_v58 = vsel %vm3563_vm8, %v3562_v15, -inf }
0x1cb4   :  { %3586 = vmax.xlane.f32.xlu0 %v3585_v58 }
0x1cc1   :  { %3652 = vrot.lane.b32.xlu1 %v11346_v33, %s10832_s1 }
0x1cc5   :  { %3808 = vrot.lane.b32.xlu1 %v11355_v41, %s10832_s1 }
0x1cc9   :  { %3885 = vrot.lane.b32.xlu1 %v11361_v18, %s10832_s1 }
0x1cca   :  { %3731 = vrot.lane.b32.xlu0 %v11350_v40, %s10832_s1 }
0x1ccd   :  { %4039 = vrot.lane.b32.xlu1 %v11371_v42, %s10832_s1 }
0x1cce   :  { %3962 = vrot.lane.b32.xlu0 %v11366_v44, %s10832_s1 }
0x1cd1   :  { %4193 = vrot.lane.b32.xlu1 %v11381_v48, %s10832_s1 }
0x1cd2   :  { %4116 = vrot.lane.b32.xlu0 %v11376_v45, %s10832_s1 }
0x1cd5   :  { %4350 = vrot.lane.b32.xlu1 %v11350_v40, %s10834_s29 }
0x1cd6   :  { %4272 = vrot.lane.b32.xlu0 %v11346_v33, %s10834_s29 }
0x1cd9   :  { %4348 = vrot.lane.b32.xlu1 %v11350_v40, %s10835_s30 }
0x1cda   :  { %4270 = vrot.lane.b32.xlu0 %v11346_v33, %s10835_s30 }
0x1cdd   :  { %4506 = vrot.lane.b32.xlu1 %v11361_v18, %s10834_s29 }
0x1cde   :  { %4428 = vrot.lane.b32.xlu0 %v11355_v41, %s10834_s29 }
0x1d31   :  { %v3566_v57 = vpop.xlane.xlu0 %3565 }
0x1d32   :  { %v3588_v59 = vsub.f32 %v3555_v2, %v3566_v57 }
0x1d34   :  { %v3596_v55 = vmul.f32 1.442695, %v3588_v59 }
0x1d35   :  { %v3572_v52 = vpop.xlane.xlu0 %3571  ;;  %v3569_v62 = vpop.xlane.xlu1 %3568 }
0x1d36   :  { %10660 = vpow2.f32 %v3596_v55  ;;  %v3590_v3 = vsub.f32 %v3557_v8, %v3572_v52  ;;  %v3589_v5 = vsub.f32 %v3556_v10, %v3569_v62 }
0x1d38   :  { %v3600_v9 = vmul.f32 1.442695, %v3590_v3  ;;  %v3598_v56 = vmul.f32 1.442695, %v3589_v5 }
0x1d39   :  { %v3575_v0 = vpop.xlane.xlu0 %3574  ;;  %v3578_v36 = vpop.xlane.xlu1 %3577 }
0x1d3a   :  { %10662 = vpow2.f32 %v3600_v9  ;;  %v3591_v19 = vsub.f32 %v3558_v24, %v3575_v0  ;;  %v3592_v21 = vsub.f32 %v3559_v39, %v3578_v36 }
0x1d3b   :  { %10664 = vpow2.f32 %v3598_v56 }
0x1d3c   :  { %v3602_v22 = vmul.f32 1.442695, %v3591_v19  ;;  %v3604_v23 = vmul.f32 1.442695, %v3592_v21 }
0x1d3d   :  { %v3581_v47 = vpop.xlane.xlu0 %3580  ;;  %v3584_v26 = vpop.xlane.xlu1 %3583 }
0x1d3e   :  { %10666 = vpow2.f32 %v3602_v22  ;;  %v3593_v2 = vsub.f32 %v3560_v35, %v3581_v47  ;;  %v3594_v51 = vsub.f32 %v3561_v29, %v3584_v26 }
0x1d3f   :  { %10668 = vpow2.f32 %v3604_v23 }
0x1d40   :  { %v11463_v28 = vpop.eup %10660  ;;  %v3606_v10 = vmul.f32 1.442695, %v3593_v2  ;;  %v3608_v8 = vmul.f32 1.442695, %v3594_v51 }
0x1d41   :  { %v3587_v30 = vpop.xlane.xlu0 %3586  ;;  %v3653_v31 = vpop.permute.xlu1 %3652  ;;  %v3612_v24 = vsel %vm3563_vm8, %v11463_v28, 0.0 }
0x1d42   :  { %10670 = vpow2.f32 %v3606_v10  ;;  %v3595_v39 = vsub.f32 %v3562_v15, %v3587_v30  ;;  %3613 = vadd.xlane.f32.xlu1 %v3612_v24  ;;  %9970 = vmatpush3.msk.msra.mxu1 %vm3658_vm9, %v3653_v31 }
0x1d43   :  { %10672 = vpow2.f32 %v3608_v8  ;;  %9979 = vmatprep.subr.mxu1 %v12320_v14 }
0x1d44   :  { %v11469_v29 = vpop.eup %10662  ;;  %v3610_v35 = vmul.f32 1.442695, %v3595_v39 }
0x1d45   :  { %v11471_v38 = vpop.eup %10664  ;;  %v3732_v63 = vpop.permute.xlu0 %3731  ;;  %v3618_v43 = vsel %vm3563_vm8, %v11469_v29, 0.0 }
0x1d46   :  { %10674 = vpow2.f32 %v3610_v35  ;;  %3619 = vadd.xlane.f32.xlu1 %v3618_v43  ;;  %9975 = vmatpush3.msk.msra.mxu0 %vm3658_vm9, %v3732_v63  ;;  %v3615_v4 = vsel %vm3563_vm8, %v11471_v38, 0.0  ;;  %v3809_v5 = vpop.permute.xlu1 %3808 }
0x1d47   :  { %3616 = vadd.xlane.f32.xlu0 %v3615_v4  ;;  %9984 = vmatprep.subr.mxu0 %v12320_v14 }
0x1d48   :  { %v11479_v53 = vpop.eup %10666 }
0x1d49   :  { %v11481_v15 = vpop.eup %10668  ;;  %v3621_v54 = vsel %vm3563_vm8, %v11479_v53, 0.0  ;;  %v3963_v0 = vpop.permute.xlu0 %3962 }
0x1d4a   :  { %v3624_v58 = vsel %vm3563_vm8, %v11481_v15, 0.0  ;;  %v3886_v9 = vpop.permute.xlu1 %3885 }
0x1d4b   :  { %3622 = vadd.xlane.f32.xlu0 %v3621_v54  ;;  %3625 = vadd.xlane.f32.xlu1 %v3624_v58 }
0x1d4c   :  { %v11487_v57 = vpop.eup %10670 }
0x1d4d   :  { %v11489_v59 = vpop.eup %10672  ;;  %v3627_v55 = vsel %vm3563_vm8, %v11487_v57, 0.0  ;;  %v4117_v19 = vpop.permute.xlu0 %4116 }
0x1d4e   :  { %v3630_v52 = vsel %vm3563_vm8, %v11489_v59, 0.0  ;;  %v4040_v56 = vpop.permute.xlu1 %4039 }
0x1d4f   :  { %3628 = vadd.xlane.f32.xlu0 %v3627_v55  ;;  %3631 = vadd.xlane.f32.xlu1 %v3630_v52 }
0x1d50   :  { %v11495_v62 = vpop.eup %10674 }
0x1d51   :  { %v3633_v3 = vsel %vm3563_vm8, %v11495_v62, 0.0  ;;  %v11523_v22 = vpop.permute.xlu0 %4272 }
0x1d52   :  { %v11519_v36 = vpop.permute.xlu1 %4193 }
0x1d53   :  { %3634 = vadd.xlane.f32.xlu0 %v3633_v3 }
0x1d55   :  { %v11527_v47 = vpop.permute.xlu0 %4270 }
0x1d56   :  { %v11521_v21 = vpop.permute.xlu1 %4350 }
0x1d59   :  { %v11531_v51 = vpop.permute.xlu0 %4428 }
0x1d5a   :  { %v11525_v23 = vpop.permute.xlu1 %4348 }
0x1d5e   :  { %v11529_v26 = vpop.permute.xlu1 %4506 }
0x1d60   :  { %4504 = vrot.lane.b32.xlu1 %v11361_v18, %s10835_s30 }
0x1d64   :  { %4662 = vrot.lane.b32.xlu1 %v11371_v42, %s10834_s29 }
0x1d68   :  { %4660 = vrot.lane.b32.xlu1 %v11371_v42, %s10835_s30 }
0x1d69   :  { %4426 = vrot.lane.b32.xlu0 %v11355_v41, %s10835_s30 }
0x1d6c   :  { %4818 = vrot.lane.b32.xlu1 %v11381_v48, %s10834_s29 }
0x1d6d   :  { %4584 = vrot.lane.b32.xlu0 %v11366_v44, %s10834_s29 }
0x1d70   :  { %4816 = vrot.lane.b32.xlu1 %v11381_v48, %s10835_s30 }
0x1d71   :  { %4582 = vrot.lane.b32.xlu0 %v11366_v44, %s10835_s30 }
0x1d75   :  { %4740 = vrot.lane.b32.xlu0 %v11376_v45, %s10834_s29 }
0x1d79   :  { %4738 = vrot.lane.b32.xlu0 %v11376_v45, %s10835_s30 }
0x1dcf   :  { %v3614_v2 = vpop.xlane.xlu1 %3613 }
0x1dd0   :  { %10676 = vrcp.f32 %v3614_v2 }
0x1dd3   :  { %v3620_v10 = vpop.xlane.xlu1 %3619 }
0x1dd4   :  { %v3617_v8 = vpop.xlane.xlu0 %3616  ;;  %10678 = vrcp.f32 %v3620_v10 }
0x1dd5   :  { %10680 = vrcp.f32 %v3617_v8 }
0x1dd8   :  { %v3623_v30 = vpop.xlane.xlu0 %3622  ;;  %v3626_v31 = vpop.xlane.xlu1 %3625 }
0x1dd9   :  { %10682 = vrcp.f32 %v3623_v30 }
0x1dda   :  { %v10677_v24 = vpop.eup %10676  ;;  %10684 = vrcp.f32 %v3626_v31 }
0x1ddb   :  { %v3637_v39 = vmul.f32 %v10677_v24, %v11463_v28 }
0x1ddc   :  { %v3629_v35 = vpop.xlane.xlu0 %3628  ;;  %v3632_v63 = vpop.xlane.xlu1 %3631 }
0x1ddd   :  { %10686 = vrcp.f32 %v3629_v35  ;;  %9972 = vmatmul.mubr.msk.f32.vlgmr.msra.gmra.mrb[30].mxu1 %vm3654_vm10, %v3637_v39 }
0x1dde   :  { %v10679_v43 = vpop.eup %10678  ;;  %10688 = vrcp.f32 %v3632_v63  ;;  %9980 = vmatpush3.msk.msra.mxu1 %vm3658_vm9, %v3809_v5  ;;  %9981 = vmatprep.mubr.msk.f32.mxu1 %vm10827_vm3, %v12320_v14 }
0x1ddf   :  { %v10681_v4 = vpop.eup %10680  ;;  %9989 = vmatprep.subr.mxu1 %v12320_v14  ;;  %v3641_v54 = vmul.f32 %v10679_v43, %v11469_v29 }
0x1de0   :  { %v3635_v58 = vpop.xlane.xlu0 %3634  ;;  %v3639_v28 = vmul.f32 %v10681_v4, %v11471_v38 }
0x1de1   :  { %10690 = vrcp.f32 %v3635_v58  ;;  %9982 = vmatmul.mubr.msk.f32.vlgmr.msra.gmra.mrb[32].mxu1 %vm3654_vm10, %v3641_v54 }
0x1de2   :  { %9977 = vmatmul.mubr.msk.f32.vlgmr.msra.gmra.mrb[30].mxu0 %vm3654_vm10, %v3639_v28  ;;  %9990 = vmatpush3.msk.msra.mxu1 %vm3658_vm9, %v3963_v0  ;;  %v4505_v0 = vpop.permute.xlu1 %4504 }
0x1de3   :  { %v10683_v55 = vpop.eup %10682  ;;  %9985 = vmatpush3.msk.msra.mxu0 %vm3658_vm9, %v3886_v9  ;;  %9986 = vmatprep.mubr.msk.f32.mxu0 %vm10827_vm3, %v12320_v14 }
0x1de4   :  { %v10685_v52 = vpop.eup %10684  ;;  %9991 = vmatprep.mubr.msk.f32.mxu1 %vm10827_vm3, %v12320_v14  ;;  %9994 = vmatprep.subr.mxu0 %v12320_v14  ;;  %v3643_v29 = vmul.f32 %v10683_v55, %v11479_v53  ;;  %v4427_v38 = vpop.permute.xlu0 %4426 }
0x1de5   :  { %9999 = vmatprep.subr.mxu1 %v12320_v14  ;;  %v3645_v3 = vmul.f32 %v10685_v52, %v11481_v15 }
0x1de6   :  { %9987 = vmatmul.mubr.msk.f32.vlgmr.msra.gmra.mrb[32].mxu0 %vm3654_vm10, %v3643_v29 }
0x1de7   :  { %v10687_v5 = vpop.eup %10686  ;;  %9992 = vmatmul.mubr.msk.f32.vlgmr.msra.gmra.mrb[34].mxu1 %vm3654_vm10, %v3645_v3  ;;  %9995 = vmatpush3.msk.msra.mxu0 %vm3658_vm9, %v4040_v56 }
0x1de8   :  { %v10689_v9 = vpop.eup %10688  ;;  %10000 = vmatpush3.msk.msra.mxu1 %vm3658_vm9, %v4117_v19  ;;  %9996 = vmatprep.mubr.msk.f32.mxu0 %vm10827_vm3, %v12320_v14  ;;  %v3647_v53 = vmul.f32 %v10687_v5, %v11487_v57  ;;  %v4585_v2 = vpop.permute.xlu0 %4584 }
0x1de9   :  { %10001 = vmatprep.mubr.msk.f32.mxu1 %vm10827_vm3, %v12320_v14  ;;  %10004 = vmatprep.subr.mxu0 %v12320_v14  ;;  %v3649_v15 = vmul.f32 %v10689_v9, %v11489_v59  ;;  %v4663_v59 = vpop.permute.xlu1 %4662 }
0x1dea   :  { %9997 = vmatmul.mubr.msk.f32.vlgmr.msra.gmra.mrb[34].mxu0 %vm3654_vm10, %v3647_v53  ;;  %10009 = vmatprep.subr.mxu1 %v12320_v14 }
0x1deb   :  { %v10691_v56 = vpop.eup %10690  ;;  %10002 = vmatmul.mubr.msk.f32.vlgmr.msra.gmra.mrb[36].mxu1 %vm3654_vm10, %v3649_v15  ;;  %10005 = vmatpush3.msk.msra.mxu0 %vm3658_vm9, %v11519_v36 }
0x1dec   :  { %10006 = vmatprep.mubr.msk.f32.mxu0 %vm10827_vm3, %v12320_v14  ;;  %v3651_v57 = vmul.f32 %v10691_v56, %v11495_v62  ;;  %10011 = vmatprep.mubr.msk.f32.mxu1 %vm10827_vm3, %v12320_v14  ;;  %v4583_v36 = vpop.permute.xlu0 %4582 }
0x1ded   :  { %10014 = vmatprep.subr.mxu0 %v12320_v14  ;;  %v4661_v62 = vpop.permute.xlu1 %4660 }
0x1dee   :  { %10007 = vmatmul.mubr.msk.f32.vlgmr.msra.gmra.mrb[36].mxu0 %vm3654_vm10, %v3651_v57 }
0x1def   :  { %10010 = vmatpush3.xpose.msk.msra.mxu1 %vm2899_vm7, %v11523_v22  ;;  %10016 = vmatprep.mubr.msk.f32.mxu0 %vm10827_vm3, %v12320_v14 }
0x1df0   :  { %10019 = vmatprep.subr.mxu1 %v12320_v14  ;;  %v4741_v19 = vpop.permute.xlu0 %4740 }
0x1df2   :  { %10012 = vmatmul.mubr.msk.f32.vlgmr.msra.gmra.mrb[38].mxu1 %vm2899_vm7, %v11527_v47  ;;  %10015 = vmatpush3.xpose.msk.msra.mxu0 %vm2899_vm7, %v11521_v21  ;;  %v4819_v21 = vpop.permute.xlu1 %4818 }
0x1df3   :  { %10020 = vmatpush3.xpose.msk.msra.mxu1 %vm2899_vm7, %v11531_v51  ;;  %10021 = vmatprep.mubr.msk.f32.mxu1 %vm10827_vm3, %v12320_v14 }
0x1df4   :  { %10024 = vmatprep.subr.mxu0 %v12320_v14  ;;  %10029 = vmatprep.subr.mxu1 %v12320_v14  ;;  %v4739_v22 = vpop.permute.xlu0 %4738 }
0x1df5   :  { %10017 = vmatmul.mubr.msk.f32.vlgmr.msra.gmra.mrb[38].mxu0 %vm2899_vm7, %v11525_v23 }
0x1df6   :  { %10022 = vmatmul.mubr.msk.f32.vlgmr.msra.gmra.mrb[40].mxu1 %vm2899_vm7, %v4427_v38  ;;  %10025 = vmatpush3.xpose.msk.msra.mxu0 %vm2899_vm7, %v11529_v26  ;;  %v4817_v23 = vpop.permute.xlu1 %4816 }
0x1df7   :  { %10030 = vmatpush3.xpose.msk.msra.mxu1 %vm2899_vm7, %v4585_v2  ;;  %10026 = vmatprep.mubr.msk.f32.mxu0 %vm10827_vm3, %v12320_v14 }
0x1df8   :  { %10031 = vmatprep.mubr.msk.f32.mxu1 %vm10827_vm3, %v12320_v14  ;;  %10034 = vmatprep.subr.mxu0 %v12320_v14 }
0x1df9   :  { %10027 = vmatmul.mubr.msk.f32.vlgmr.msra.gmra.mrb[40].mxu0 %vm2899_vm7, %v4505_v0  ;;  %10039 = vmatprep.subr.mxu1 %v12320_v14 }
0x1dfa   :  { %10032 = vmatmul.mubr.msk.f32.vlgmr.msra.gmra.mrb[42].mxu1 %vm2899_vm7, %v4583_v36  ;;  %10035 = vmatpush3.xpose.msk.msra.mxu0 %vm2899_vm7, %v4663_v59 }
0x1dfb   :  { %10040 = vmatpush3.xpose.msk.msra.mxu1 %vm2899_vm7, %v4741_v19  ;;  %10036 = vmatprep.mubr.msk.f32.mxu0 %vm10827_vm3, %v12320_v14 }
0x1dfc   :  { %10041 = vmatprep.mubr.msk.f32.mxu1 %vm10827_vm3, %v12320_v14  ;;  %10044 = vmatprep.subr.mxu0 %v12320_v14 }
0x1dfd   :  { %10037 = vmatmul.mubr.msk.f32.vlgmr.msra.gmra.mrb[42].mxu0 %vm2899_vm7, %v4661_v62  ;;  %10049 = vmatprep.subr.mxu1 %v12320_v14 }
0x1dfe   :  { %10042 = vmatmul.mubr.msk.f32.vlgmr.msra.gmra.mrb[44].mxu1 %vm2899_vm7, %v4739_v22  ;;  %10045 = vmatpush3.xpose.msk.msra.mxu0 %vm2899_vm7, %v4819_v21 }
0x1dff   :  { %10046 = vmatprep.mubr.msk.f32.mxu0 %vm10827_vm3, %v12320_v14  ;;  %10054 = vmatprep.subr.mxu0 %v12320_v14 }
0x1e00   :  { %10051 = vmatprep.mubr.msk.f32.mxu1 %vm10827_vm3, %v12320_v14 }
0x1e01   :  { %10047 = vmatmul.mubr.msk.f32.vlgmr.msra.gmra.mrb[44].mxu0 %vm2899_vm7, %v4817_v23 }
0x1e02   :  { %10056 = vmatprep.mubr.msk.f32.mxu0 %vm10827_vm3, %v12320_v14 }
0x1eb0   :  { %v11624_v47 = vpop.f32.mrb[30].mxu1 }
0x1eb1   :  { %v9973_v26 = vpop.f32.mrb[31].mxu1 }
0x1eb4   :  { %v11626_v51 = vpop.f32.mrb[32].mxu1 }
0x1eb5   :  { %v11628_v10 = vpop.f32.mrb[30].mxu0  ;;  %v9983_v8 = vpop.f32.mrb[33].mxu1 }
0x1eb6   :  { %v9978_v30 = vpop.f32.mrb[31].mxu0 }
0x1eb9   :  { %v11630_v31 = vpop.f32.mrb[32].mxu0 }
0x1eba   :  { %v11632_v24 = vpop.f32.mrb[34].mxu1  ;;  %v9988_v39 = vpop.f32.mrb[33].mxu0 }
0x1ebb   :  { %v9993_v35 = vpop.f32.mrb[35].mxu1 }
0x1ebd   :  { %v11634_v63 = vpop.f32.mrb[34].mxu0 }
0x1ebe   :  { %v11636_v43 = vpop.f32.mrb[36].mxu1  ;;  %v9998_v4 = vpop.f32.mrb[35].mxu0 }
0x1ebf   :  { %v10003_v54 = vpop.f32.mrb[37].mxu1 }
0x1ec1   :  { %v11638_v58 = vpop.f32.mrb[36].mxu0 }
0x1ec2   :  { %v10008_v28 = vpop.f32.mrb[37].mxu0 }
0x1ec5   :  { %v4344_v55 = vpop.f32.mrb[38].mxu1 }
0x1ec6   :  { %v4894_v52 = vmul.f32 0.35355338, %v4344_v55  ;;  %v10013_v29 = vpop.f32.mrb[39].mxu1 }
0x1ec8   :  { %v4422_v38 = vpop.f32.mrb[38].mxu0  ;;  %v4902_v3 = vsel %vm3563_vm8, %v4894_v52, -inf }
0x1ec9   :  { %v4895_v5 = vmul.f32 0.35355338, %v4422_v38  ;;  %4903 = vmax.xlane.f32.xlu0 %v4902_v3  ;;  %v4500_v9 = vpop.f32.mrb[40].mxu1  ;;  %v10018_v0 = vpop.f32.mrb[39].mxu0 }
0x1eca   :  { %v4896_v53 = vmul.f32 0.35355338, %v4500_v9  ;;  %v10023_v15 = vpop.f32.mrb[41].mxu1 }
0x1ecb   :  { %v4905_v56 = vsel %vm3563_vm8, %v4895_v5, -inf }
0x1ecc   :  { %4906 = vmax.xlane.f32.xlu1 %v4905_v56  ;;  %v4908_v2 = vsel %vm3563_vm8, %v4896_v53, -inf  ;;  %v4578_v57 = vpop.f32.mrb[40].mxu0 }
0x1ecd   :  { %4909 = vmax.xlane.f32.xlu0 %v4908_v2  ;;  %v4897_v59 = vmul.f32 0.35355338, %v4578_v57  ;;  %v4656_v36 = vpop.f32.mrb[42].mxu1  ;;  %v10028_v62 = vpop.f32.mrb[41].mxu0 }
0x1ece   :  { %v4898_v19 = vmul.f32 0.35355338, %v4656_v36  ;;  %v10033_v21 = vpop.f32.mrb[43].mxu1 }
0x1ecf   :  { %v4911_v22 = vsel %vm3563_vm8, %v4897_v59, -inf }
0x1ed0   :  { %v4914_v23 = vsel %vm3563_vm8, %v4898_v19, -inf  ;;  %v4734_v26 = vpop.f32.mrb[42].mxu0 }
0x1ed1   :  { %4915 = vmax.xlane.f32.xlu1 %v4914_v23  ;;  %v4812_v8 = vpop.f32.mrb[44].mxu1  ;;  %4912 = vmax.xlane.f32.xlu0 %v4911_v22  ;;  %v4899_v30 = vmul.f32 0.35355338, %v4734_v26  ;;  %v10038_v39 = vpop.f32.mrb[43].mxu0 }
0x1ed2   :  { %v4900_v35 = vmul.f32 0.35355338, %v4812_v8  ;;  %v10043_v4 = vpop.f32.mrb[45].mxu1 }
0x1ed3   :  { %v4917_v54 = vsel %vm3563_vm8, %v4899_v30, -inf }
0x1ed4   :  { %v4920_v28 = vsel %vm3563_vm8, %v4900_v35, -inf  ;;  %v4890_v55 = vpop.f32.mrb[44].mxu0 }
0x1ed5   :  { %4921 = vmax.xlane.f32.xlu1 %v4920_v28  ;;  %4918 = vmax.xlane.f32.xlu0 %v4917_v54  ;;  %v4901_v29 = vmul.f32 0.35355338, %v4890_v55  ;;  %v10048_v38 = vpop.f32.mrb[45].mxu0 }
0x1ed7   :  { %v4923_v3 = vsel %vm3563_vm8, %v4901_v29, -inf }
0x1ed9   :  { %4924 = vmax.xlane.f32.xlu0 %v4923_v3 }
0x1ee6   :  { %4990 = vrot.lane.b32.xlu1 %v11346_v33, %s10836_s3 }
0x1eea   :  { %5144 = vrot.lane.b32.xlu1 %v11355_v41, %s10836_s3 }
0x1eee   :  { %5221 = vrot.lane.b32.xlu1 %v11361_v18, %s10836_s3 }
0x1eef   :  { %5067 = vrot.lane.b32.xlu0 %v11350_v40, %s10836_s3 }
0x1ef2   :  { %5375 = vrot.lane.b32.xlu1 %v11371_v42, %s10836_s3 }
0x1ef3   :  { %5298 = vrot.lane.b32.xlu0 %v11366_v44, %s10836_s3 }
0x1ef6   :  { %5529 = vrot.lane.b32.xlu1 %v11381_v48, %s10836_s3 }
0x1ef7   :  { %5452 = vrot.lane.b32.xlu0 %v11376_v45, %s10836_s3 }
0x1efa   :  { %5686 = vrot.lane.b32.xlu1 %v11350_v40, %s10837_s4 }
0x1efb   :  { %5608 = vrot.lane.b32.xlu0 %v11346_v33, %s10837_s4 }
0x1efe   :  { %5684 = vrot.lane.b32.xlu1 %v11350_v40, %s10838_s5 }
0x1eff   :  { %5606 = vrot.lane.b32.xlu0 %v11346_v33, %s10838_s5 }
0x1f02   :  { %5842 = vrot.lane.b32.xlu1 %v11361_v18, %s10837_s4 }
0x1f03   :  { %5764 = vrot.lane.b32.xlu0 %v11355_v41, %s10837_s4 }
0x1f56   :  { %v4904_v9 = vpop.xlane.xlu0 %4903 }
0x1f57   :  { %v4926_v0 = vsub.f32 %v4894_v52, %v4904_v9 }
0x1f59   :  { %v4934_v15 = vmul.f32 1.442695, %v4926_v0  ;;  %v4907_v56 = vpop.xlane.xlu1 %4906 }
0x1f5a   :  { %v4910_v2 = vpop.xlane.xlu0 %4909  ;;  %v4927_v57 = vsub.f32 %v4895_v5, %v4907_v56 }
0x1f5b   :  { %10692 = vpow2.f32 %v4934_v15  ;;  %v4928_v36 = vsub.f32 %v4896_v53, %v4910_v2 }
0x1f5c   :  { %v4936_v62 = vmul.f32 1.442695, %v4927_v57 }
0x1f5d   :  { %v4938_v21 = vmul.f32 1.442695, %v4928_v36 }
0x1f5e   :  { %10694 = vpow2.f32 %v4936_v62  ;;  %v4913_v22 = vpop.xlane.xlu0 %4912  ;;  %v4916_v23 = vpop.xlane.xlu1 %4915 }
0x1f5f   :  { %10696 = vpow2.f32 %v4938_v21  ;;  %v4929_v26 = vsub.f32 %v4897_v59, %v4913_v22  ;;  %v4930_v8 = vsub.f32 %v4898_v19, %v4916_v23 }
0x1f61   :  { %v4940_v39 = vmul.f32 1.442695, %v4929_v26  ;;  %v4942_v4 = vmul.f32 1.442695, %v4930_v8 }
0x1f62   :  { %v4919_v54 = vpop.xlane.xlu0 %4918  ;;  %v4922_v28 = vpop.xlane.xlu1 %4921 }
0x1f63   :  { %10698 = vpow2.f32 %v4940_v39  ;;  %v4931_v52 = vsub.f32 %v4899_v30, %v4919_v54  ;;  %v4932_v55 = vsub.f32 %v4900_v35, %v4922_v28 }
0x1f64   :  { %10700 = vpow2.f32 %v4942_v4 }
0x1f65   :  { %v11668_v38 = vpop.eup %10692  ;;  %v4944_v5 = vmul.f32 1.442695, %v4931_v52  ;;  %v4946_v53 = vmul.f32 1.442695, %v4932_v55 }
0x1f66   :  { %v4925_v3 = vpop.xlane.xlu0 %4924  ;;  %v4991_v9 = vpop.permute.xlu1 %4990  ;;  %v4950_v0 = vsel %vm3563_vm8, %v11668_v38, 0.0 }
0x1f67   :  { %10702 = vpow2.f32 %v4944_v5  ;;  %v4933_v59 = vsub.f32 %v4901_v29, %v4925_v3  ;;  %4951 = vadd.xlane.f32.xlu1 %v4950_v0  ;;  %10050 = vmatpush3.msk.msra.mxu1 %vm3658_vm9, %v4991_v9 }
0x1f68   :  { %v11673_v19 = vpop.eup %10694  ;;  %10704 = vpow2.f32 %v4946_v53  ;;  %10059 = vmatprep.subr.mxu1 %v12320_v14 }
0x1f69   :  { %v11676_v30 = vpop.eup %10696  ;;  %v4948_v35 = vmul.f32 1.442695, %v4933_v59  ;;  %v4953_v15 = vsel %vm3563_vm8, %v11673_v19, 0.0 }
0x1f6a   :  { %v5068_v56 = vpop.permute.xlu0 %5067  ;;  %v4956_v2 = vsel %vm3563_vm8, %v11676_v30, 0.0  ;;  %4954 = vadd.xlane.f32.xlu0 %v4953_v15  ;;  %v5145_v4 = vpop.permute.xlu1 %5144 }
0x1f6b   :  { %10706 = vpow2.f32 %v4948_v35  ;;  %4957 = vadd.xlane.f32.xlu1 %v4956_v2  ;;  %10055 = vmatpush3.msk.msra.mxu0 %vm3658_vm9, %v5068_v56 }
0x1f6c   :  { %10064 = vmatprep.subr.mxu0 %v12320_v14 }
0x1f6d   :  { %v11684_v29 = vpop.eup %10698 }
0x1f6e   :  { %v11686_v57 = vpop.eup %10700  ;;  %v4959_v36 = vsel %vm3563_vm8, %v11684_v29, 0.0  ;;  %v5222_v54 = vpop.permute.xlu1 %5221 }
0x1f6f   :  { %4960 = vadd.xlane.f32.xlu0 %v4959_v36  ;;  %v4962_v62 = vsel %vm3563_vm8, %v11686_v57, 0.0  ;;  %v5299_v52 = vpop.permute.xlu0 %5298 }
0x1f70   :  { %4963 = vadd.xlane.f32.xlu1 %v4962_v62 }
0x1f71   :  { %v11692_v21 = vpop.eup %10702 }
0x1f72   :  { %v11694_v22 = vpop.eup %10704  ;;  %v4965_v23 = vsel %vm3563_vm8, %v11692_v21, 0.0  ;;  %v5376_v28 = vpop.permute.xlu1 %5375 }
0x1f73   :  { %4966 = vadd.xlane.f32.xlu0 %v4965_v23  ;;  %v4968_v26 = vsel %vm3563_vm8, %v11694_v22, 0.0  ;;  %v5453_v5 = vpop.permute.xlu0 %5452 }
0x1f74   :  { %4969 = vadd.xlane.f32.xlu1 %v4968_v26 }
0x1f75   :  { %v11700_v8 = vpop.eup %10706 }
0x1f76   :  { %v4971_v39 = vsel %vm3563_vm8, %v11700_v8, 0.0  ;;  %v11740_v55 = vpop.permute.xlu1 %5529 }
0x1f77   :  { %4972 = vadd.xlane.f32.xlu0 %v4971_v39  ;;  %v11744_v3 = vpop.permute.xlu0 %5608 }
0x1f7a   :  { %v11742_v53 = vpop.permute.xlu1 %5686 }
0x1f7b   :  { %v11748_v0 = vpop.permute.xlu0 %5606 }
0x1f7e   :  { %v11746_v9 = vpop.permute.xlu1 %5684 }
0x1f7f   :  { %v11752_v35 = vpop.permute.xlu0 %5764 }
0x1f82   :  { %v11750_v59 = vpop.permute.xlu1 %5842 }
0x1f85   :  { %5840 = vrot.lane.b32.xlu1 %v11361_v18, %s10838_s5 }
0x1f89   :  { %5998 = vrot.lane.b32.xlu1 %v11371_v42, %s10837_s4 }
0x1f8d   :  { %5996 = vrot.lane.b32.xlu1 %v11371_v42, %s10838_s5  ;;  %5762 = vrot.lane.b32.xlu0 %v11355_v41, %s10838_s5 }
0x1f91   :  { %6154 = vrot.lane.b32.xlu1 %v11381_v48, %s10837_s4  ;;  %5920 = vrot.lane.b32.xlu0 %v11366_v44, %s10837_s4 }
0x1f95   :  { %6152 = vrot.lane.b32.xlu1 %v11381_v48, %s10838_s5  ;;  %5918 = vrot.lane.b32.xlu0 %v11366_v44, %s10838_s5 }
0x1f99   :  { %6326 = vrot.lane.b32.xlu1 %v11346_v33, %s10839_s6  ;;  %6076 = vrot.lane.b32.xlu0 %v11376_v45, %s10837_s4 }
0x1f9d   :  { %6480 = vrot.lane.b32.xlu1 %v11355_v41, %s10839_s6  ;;  %6074 = vrot.lane.b32.xlu0 %v11376_v45, %s10838_s5 }
0x1fa1   :  { %6557 = vrot.lane.b32.xlu1 %v11361_v18, %s10839_s6  ;;  %6403 = vrot.lane.b32.xlu0 %v11350_v40, %s10839_s6 }
0x1fa5   :  { %6711 = vrot.lane.b32.xlu1 %v11371_v42, %s10839_s6  ;;  %6634 = vrot.lane.b32.xlu0 %v11366_v44, %s10839_s6 }
0x1fa9   :  { %6865 = vrot.lane.b32.xlu1 %v11381_v48, %s10839_s6  ;;  %6788 = vrot.lane.b32.xlu0 %v11376_v45, %s10839_s6 }
0x1fad   :  { %7022 = vrot.lane.b32.xlu1 %v11350_v40, %s10840_s7  ;;  %6944 = vrot.lane.b32.xlu0 %v11346_v33, %s10840_s7 }
0x1fb1   :  { %7020 = vrot.lane.b32.xlu1 %v11350_v40, %s10841_s8  ;;  %6942 = vrot.lane.b32.xlu0 %v11346_v33, %s10841_s8 }
0x1ff4   :  { %v4952_v15 = vpop.xlane.xlu1 %4951 }
0x1ff5   :  { %10708 = vrcp.f32 %v4952_v15 }
0x1ff7   :  { %v4955_v56 = vpop.xlane.xlu0 %4954 }
0x1ff8   :  { %10710 = vrcp.f32 %v4955_v56  ;;  %v4958_v2 = vpop.xlane.xlu1 %4957 }
0x1ff9   :  { %10712 = vrcp.f32 %v4958_v2 }
0x1ffc   :  { %v4961_v36 = vpop.xlane.xlu0 %4960 }
0x1ffd   :  { %10714 = vrcp.f32 %v4961_v36  ;;  %v4964_v62 = vpop.xlane.xlu1 %4963 }
0x1ffe   :  { %10716 = vrcp.f32 %v4964_v62 }
0x1fff   :  { %v10709_v23 = vpop.eup %10708 }
0x2000   :  { %v4967_v26 = vpop.xlane.xlu0 %4966  ;;  %v4975_v39 = vmul.f32 %v10709_v23, %v11668_v38 }
0x2001   :  { %10718 = vrcp.f32 %v4967_v26  ;;  %v4970_v20 = vpop.xlane.xlu1 %4969 }
0x2002   :  { %v10711_v17 = vpop.eup %10710  ;;  %10720 = vrcp.f32 %v4970_v20  ;;  %10052 = vmatmul.mubr.msk.f32.vlgmr.msra.gmra.mrb[46].mxu1 %vm3654_vm10, %v4975_v39 }
0x2003   :  { %v10713_v13 = vpop.eup %10712  ;;  %10060 = vmatpush3.msk.msra.mxu1 %vm3658_vm9, %v5145_v4  ;;  %10061 = vmatprep.mubr.msk.f32.mxu1 %vm10827_vm3, %v12320_v14  ;;  %v4977_v15 = vmul.f32 %v10711_v17, %v11673_v19 }
0x2004   :  { %v4973_v56 = vpop.xlane.xlu0 %4972  ;;  %10069 = vmatprep.subr.mxu1 %v12320_v14  ;;  %v4979_v2 = vmul.f32 %v10713_v13, %v11676_v30 }
0x2005   :  { %10722 = vrcp.f32 %v4973_v56  ;;  %v5841_v38 = vpop.permute.xlu1 %5840  ;;  %10057 = vmatmul.mubr.msk.f32.vlgmr.msra.gmra.mrb[46].mxu0 %vm3654_vm10, %v4977_v15 }
0x2006   :  { %10062 = vmatmul.mubr.msk.f32.vlgmr.msra.gmra.mrb[48].mxu1 %vm3654_vm10, %v4979_v2  ;;  %10065 = vmatpush3.msk.msra.mxu0 %vm3658_vm9, %v5222_v54 }
0x2007   :  { %v10715_v20 = vpop.eup %10714  ;;  %10070 = vmatpush3.msk.msra.mxu1 %vm3658_vm9, %v5299_v52  ;;  %10066 = vmatprep.mubr.msk.f32.mxu0 %vm10827_vm3, %v12320_v14 }
0x2008   :  { %v10717_v17 = vpop.eup %10716  ;;  %v5763_v19 = vpop.permute.xlu0 %5762  ;;  %10071 = vmatprep.mubr.msk.f32.mxu1 %vm10827_vm3, %v12320_v14  ;;  %10074 = vmatprep.subr.mxu0 %v12320_v14  ;;  %v4981_v13 = vmul.f32 %v10715_v20, %v11684_v29 }
0x2009   :  { %10079 = vmatprep.subr.mxu1 %v12320_v14  ;;  %v4983_v30 = vmul.f32 %v10717_v17, %v11686_v57  ;;  %v5999_v4 = vpop.permute.xlu1 %5998 }
0x200a   :  { %10067 = vmatmul.mubr.msk.f32.vlgmr.msra.gmra.mrb[48].mxu0 %vm3654_vm10, %v4981_v13 }
0x200b   :  { %v10719_v54 = vpop.eup %10718  ;;  %10072 = vmatmul.mubr.msk.f32.vlgmr.msra.gmra.mrb[50].mxu1 %vm3654_vm10, %v4983_v30  ;;  %10075 = vmatpush3.msk.msra.mxu0 %vm3658_vm9, %v5376_v28 }
0x200c   :  { %v10721_v52 = vpop.eup %10720  ;;  %10080 = vmatpush3.msk.msra.mxu1 %vm3658_vm9, %v5453_v5  ;;  %10076 = vmatprep.mubr.msk.f32.mxu0 %vm10827_vm3, %v12320_v14  ;;  %v4985_v29 = vmul.f32 %v10719_v54, %v11692_v21  ;;  %v5921_v36 = vpop.permute.xlu0 %5920 }
0x200d   :  { %10081 = vmatprep.mubr.msk.f32.mxu1 %vm10827_vm3, %v12320_v14  ;;  %10084 = vmatprep.subr.mxu0 %v12320_v14  ;;  %v4987_v57 = vmul.f32 %v10721_v52, %v11694_v22  ;;  %v5997_v5 = vpop.permute.xlu1 %5996 }
0x200e   :  { %10077 = vmatmul.mubr.msk.f32.vlgmr.msra.gmra.mrb[50].mxu0 %vm3654_vm10, %v4985_v29  ;;  %10089 = vmatprep.subr.mxu1 %v12320_v14 }
0x200f   :  { %v10723_v28 = vpop.eup %10722  ;;  %10082 = vmatmul.mubr.msk.f32.vlgmr.msra.gmra.mrb[52].mxu1 %vm3654_vm10, %v4987_v57  ;;  %10085 = vmatpush3.msk.msra.mxu0 %vm3658_vm9, %v11740_v55 }
0x2010   :  { %10086 = vmatprep.mubr.msk.f32.mxu0 %vm10827_vm3, %v12320_v14  ;;  %v4989_v21 = vmul.f32 %v10723_v28, %v11700_v8  ;;  %10091 = vmatprep.mubr.msk.f32.mxu1 %vm10827_vm3, %v12320_v14  ;;  %v5919_v22 = vpop.permute.xlu0 %5918 }
0x2011   :  { %10094 = vmatprep.subr.mxu0 %v12320_v14  ;;  %v6155_v55 = vpop.permute.xlu1 %6154 }
0x2012   :  { %10087 = vmatmul.mubr.msk.f32.vlgmr.msra.gmra.mrb[52].mxu0 %vm3654_vm10, %v4989_v21 }
0x2013   :  { %10090 = vmatpush3.xpose.msk.msra.mxu1 %vm2899_vm7, %v11744_v3  ;;  %10096 = vmatprep.mubr.msk.f32.mxu0 %vm10827_vm3, %v12320_v14 }
0x2014   :  { %10099 = vmatprep.subr.mxu1 %v12320_v14  ;;  %v6077_v8 = vpop.permute.xlu0 %6076 }
0x2016   :  { %10092 = vmatmul.mubr.msk.f32.vlgmr.msra.gmra.mrb[54].mxu1 %vm2899_vm7, %v11748_v0  ;;  %10095 = vmatpush3.xpose.msk.msra.mxu0 %vm2899_vm7, %v11742_v53  ;;  %v6153_v53 = vpop.permute.xlu1 %6152 }
0x2017   :  { %10100 = vmatpush3.xpose.msk.msra.mxu1 %vm2899_vm7, %v11752_v35  ;;  %10101 = vmatprep.mubr.msk.f32.mxu1 %vm10827_vm3, %v12320_v14 }
0x2018   :  { %10104 = vmatprep.subr.mxu0 %v12320_v14  ;;  %10109 = vmatprep.subr.mxu1 %v12320_v14  ;;  %v6075_v3 = vpop.permute.xlu0 %6074 }
0x2019   :  { %10097 = vmatmul.mubr.msk.f32.vlgmr.msra.gmra.mrb[54].mxu0 %vm2899_vm7, %v11746_v9 }
0x201a   :  { %10102 = vmatmul.mubr.msk.f32.vlgmr.msra.gmra.mrb[56].mxu1 %vm2899_vm7, %v5763_v19  ;;  %10105 = vmatpush3.xpose.msk.msra.mxu0 %vm2899_vm7, %v11750_v59  ;;  %v6327_v9 = vpop.permute.xlu1 %6326 }
0x201b   :  { %10110 = vmatpush3.xpose.msk.msra.mxu1 %vm2899_vm7, %v5921_v36  ;;  %10106 = vmatprep.mubr.msk.f32.mxu0 %vm10827_vm3, %v12320_v14 }
0x201c   :  { %10111 = vmatprep.mubr.msk.f32.mxu1 %vm10827_vm3, %v12320_v14  ;;  %10114 = vmatprep.subr.mxu0 %v12320_v14  ;;  %v6404_v0 = vpop.permute.xlu0 %6403 }
0x201d   :  { %10107 = vmatmul.mubr.msk.f32.vlgmr.msra.gmra.mrb[56].mxu0 %vm2899_vm7, %v5841_v38  ;;  %10119 = vmatprep.subr.mxu1 %v12320_v14 }
0x201e   :  { %10112 = vmatmul.mubr.msk.f32.vlgmr.msra.gmra.mrb[58].mxu1 %vm2899_vm7, %v5919_v22  ;;  %10115 = vmatpush3.xpose.msk.msra.mxu0 %vm2899_vm7, %v5999_v4 }
0x201f   :  { %10120 = vmatpush3.xpose.msk.msra.mxu1 %vm2899_vm7, %v6077_v8  ;;  %10116 = vmatprep.mubr.msk.f32.mxu0 %vm10827_vm3, %v12320_v14 }
0x2020   :  { %10121 = vmatprep.mubr.msk.f32.mxu1 %vm10827_vm3, %v12320_v14  ;;  %10124 = vmatprep.subr.mxu0 %v12320_v14 }
0x2021   :  { %10117 = vmatmul.mubr.msk.f32.vlgmr.msra.gmra.mrb[58].mxu0 %vm2899_vm7, %v5997_v5  ;;  %10129 = vmatprep.subr.mxu1 %v12320_v14 }
0x2022   :  { %10122 = vmatmul.mubr.msk.f32.vlgmr.msra.gmra.mrb[60].mxu1 %vm2899_vm7, %v6075_v3  ;;  %10125 = vmatpush3.xpose.msk.msra.mxu0 %vm2899_vm7, %v6155_v55 }
0x2023   :  { %10130 = vmatpush3.msk.msra.mxu1 %vm3658_vm9, %v6327_v9  ;;  %10126 = vmatprep.mubr.msk.f32.mxu0 %vm10827_vm3, %v12320_v14 }
0x2024   :  { %10134 = vmatprep.subr.mxu0 %v12320_v14  ;;  %10131 = vmatprep.mubr.msk.f32.mxu1 %vm10827_vm3, %v12320_v14 }
0x2025   :  { %10127 = vmatmul.mubr.msk.f32.vlgmr.msra.gmra.mrb[60].mxu0 %vm2899_vm7, %v6153_v53  ;;  %10139 = vmatprep.subr.mxu1 %v12320_v14 }
0x2026   :  { %10135 = vmatpush3.msk.msra.mxu0 %vm3658_vm9, %v6404_v0  ;;  %10136 = vmatprep.mubr.msk.f32.mxu0 %vm10827_vm3, %v12320_v14 }
0x2027   :  { %10144 = vmatprep.subr.mxu0 %v12320_v14 }
0x20d5   :  { %v11849_v59 = vpop.f32.mrb[46].mxu1 }
0x20d6   :  { %v10053_v35 = vpop.f32.mrb[47].mxu1 }
0x20d8   :  { %v11851_v62 = vpop.f32.mrb[46].mxu0 }
0x20d9   :  { %v11853_v23 = vpop.f32.mrb[48].mxu1  ;;  %v10058_v26 = vpop.f32.mrb[47].mxu0 }
0x20da   :  { %v10063_v39 = vpop.f32.mrb[49].mxu1 }
0x20dd   :  { %v11855_v15 = vpop.f32.mrb[48].mxu0 }
0x20de   :  { %v11857_v56 = vpop.f32.mrb[50].mxu1  ;;  %v10068_v2 = vpop.f32.mrb[49].mxu0 }
0x20df   :  { %v10073_v38 = vpop.f32.mrb[51].mxu1 }
0x20e1   :  { %v11859_v20 = vpop.f32.mrb[50].mxu0 }
0x20e2   :  { %v11861_v17 = vpop.f32.mrb[52].mxu1  ;;  %v10078_v19 = vpop.f32.mrb[51].mxu0 }
0x20e3   :  { %v10083_v13 = vpop.f32.mrb[53].mxu1 }
0x20e5   :  { %v11863_v30 = vpop.f32.mrb[52].mxu0 }
0x20e6   :  { %v10088_v4 = vpop.f32.mrb[53].mxu0 }
0x20e9   :  { %v5680_v54 = vpop.f32.mrb[54].mxu1 }
0x20ea   :  { %v6230_v52 = vmul.f32 0.35355338, %v5680_v54  ;;  %v10093_v29 = vpop.f32.mrb[55].mxu1 }
0x20ec   :  { %v5758_v36 = vpop.f32.mrb[54].mxu0  ;;  %v6238_v57 = vsel %vm3563_vm8, %v6230_v52, -inf }
0x20ed   :  { %v6231_v28 = vmul.f32 0.35355338, %v5758_v36  ;;  %6239 = vmax.xlane.f32.xlu0 %v6238_v57  ;;  %v5836_v5 = vpop.f32.mrb[56].mxu1  ;;  %v10098_v21 = vpop.f32.mrb[55].mxu0 }
0x20ee   :  { %v6232_v22 = vmul.f32 0.35355338, %v5836_v5  ;;  %v10103_v55 = vpop.f32.mrb[57].mxu1 }
0x20ef   :  { %v6241_v8 = vsel %vm3563_vm8, %v6231_v28, -inf }
0x20f0   :  { %6242 = vmax.xlane.f32.xlu1 %v6241_v8  ;;  %v6244_v53 = vsel %vm3563_vm8, %v6232_v22, -inf  ;;  %v5914_v3 = vpop.f32.mrb[56].mxu0 }
0x20f1   :  { %6245 = vmax.xlane.f32.xlu0 %v6244_v53  ;;  %v6233_v9 = vmul.f32 0.35355338, %v5914_v3  ;;  %v5992_v0 = vpop.f32.mrb[58].mxu1  ;;  %v10108_v35 = vpop.f32.mrb[57].mxu0 }
0x20f2   :  { %v6234_v26 = vmul.f32 0.35355338, %v5992_v0  ;;  %v10113_v39 = vpop.f32.mrb[59].mxu1  ;;  %v11883_v3 = vpop.permute.xlu1 %6480 }
0x20f3   :  { %v6247_v2 = vsel %vm3563_vm8, %v6233_v9, -inf  ;;  %v11887_v35 = vpop.permute.xlu0 %6634 }
0x20f4   :  { %v6250_v38 = vsel %vm3563_vm8, %v6234_v26, -inf  ;;  %v6070_v19 = vpop.f32.mrb[58].mxu0 }
0x20f5   :  { %6251 = vmax.xlane.f32.xlu1 %v6250_v38  ;;  %v6148_v13 = vpop.f32.mrb[60].mxu1  ;;  %6248 = vmax.xlane.f32.xlu0 %v6247_v2  ;;  %v6235_v4 = vmul.f32 0.35355338, %v6070_v19  ;;  %v10118_v54 = vpop.f32.mrb[59].mxu0 }
0x20f6   :  { %v11870_v29 = vmul.f32 0.35355338, %v6148_v13  ;;  %v10123_v36 = vpop.f32.mrb[61].mxu1  ;;  %v11885_v0 = vpop.permute.xlu1 %6557 }
0x20f7   :  { %v6253_v57 = vsel %vm3563_vm8, %v6235_v4, -inf  ;;  %v11891_v2 = vpop.permute.xlu0 %6788 }
0x20f8   :  { %v6256_v5 = vsel %vm3563_vm8, %v11870_v29, -inf  ;;  %v6226_v21 = vpop.f32.mrb[60].mxu0 }
0x20f9   :  { %6257 = vmax.xlane.f32.xlu1 %v6256_v5  ;;  %6254 = vmax.xlane.f32.xlu0 %v6253_v57  ;;  %v11875_v55 = vmul.f32 0.35355338, %v6226_v21  ;;  %v10128_v8 = vpop.f32.mrb[61].mxu0 }
0x20fa   :  { %v11889_v39 = vpop.permute.xlu1 %6711 }
0x20fb   :  { %v6259_v53 = vsel %vm3563_vm8, %v11875_v55, -inf  ;;  %v11895_v19 = vpop.permute.xlu0 %6944 }
0x20fd   :  { %6260 = vmax.xlane.f32.xlu0 %v6259_v53 }
0x20fe   :  { %v11893_v38 = vpop.permute.xlu1 %6865 }
0x20ff   :  { %v11899_v54 = vpop.permute.xlu0 %6942 }
0x2102   :  { %v11897_v13 = vpop.permute.xlu1 %7022 }
0x2106   :  { %v11901_v36 = vpop.permute.xlu1 %7020 }
0x210a   :  { %7178 = vrot.lane.b32.xlu1 %v11361_v18, %s10840_s7 }
0x2113   :  { %7100 = vrot.lane.b32.xlu0 %v11355_v41, %s10840_s7 }
0x217a   :  { %v6240_v57 = vpop.xlane.xlu0 %6239 }
0x217b   :  { %v6262_v5 = vsub.f32 %v6230_v52, %v6240_v57 }
0x217d   :  { %v6270_v21 = vmul.f32 1.442695, %v6262_v5  ;;  %v6243_v8 = vpop.xlane.xlu1 %6242 }
0x217e   :  { %v6246_v53 = vpop.xlane.xlu0 %6245  ;;  %v6263_v14 = vsub.f32 %v6231_v28, %v6243_v8 }
0x217f   :  { %10724 = vpow2.f32 %v6270_v21  ;;  %v6264_v32 = vsub.f32 %v6232_v22, %v6246_v53 }
0x2180   :  { %v6272_v50 = vmul.f32 1.442695, %v6263_v14 }
0x2181   :  { %v6274_v34 = vmul.f32 1.442695, %v6264_v32 }
0x2182   :  { %10726 = vpow2.f32 %v6272_v50  ;;  %v6249_v25 = vpop.xlane.xlu0 %6248  ;;  %v6252_v60 = vpop.xlane.xlu1 %6251 }
0x2183   :  { %10728 = vpow2.f32 %v6274_v34  ;;  %v6265_v1 = vsub.f32 %v6233_v9, %v6249_v25  ;;  %v6266_v11 = vsub.f32 %v6234_v26, %v6252_v60 }
0x2185   :  { %v6276_v27 = vmul.f32 1.442695, %v6265_v1  ;;  %v6278_v12 = vmul.f32 1.442695, %v6266_v11 }
0x2186   :  { %v6255_v46 = vpop.xlane.xlu0 %6254  ;;  %v6258_v25 = vpop.xlane.xlu1 %6257 }
0x2187   :  { %10730 = vpow2.f32 %v6276_v27  ;;  %v6267_v37 = vsub.f32 %v6235_v4, %v6255_v46  ;;  %v6268_v60 = vsub.f32 %v11870_v29, %v6258_v25 }
0x2188   :  { %10732 = vpow2.f32 %v6278_v12 }
0x2189   :  { %v10725_v52 = vpop.eup %10724  ;;  %v6280_v57 = vmul.f32 1.442695, %v6267_v37  ;;  %v6282_v26 = vmul.f32 1.442695, %v6268_v60 }
0x218a   :  { %v6286_v28 = vsel %vm3563_vm8, %v10725_v52, 0.0  ;;  %v6261_v22 = vpop.xlane.xlu0 %6260  ;;  %v11948_v29 = vpop.permute.xlu1 %7178 }
0x218b   :  { %10734 = vpow2.f32 %v6280_v57  ;;  %6287 = vadd.xlane.f32.xlu1 %v6286_v28  ;;  %v6269_v9 = vsub.f32 %v11875_v55, %v6261_v22 }
0x218c   :  { %v10727_v14 = vpop.eup %10726  ;;  %10736 = vpow2.f32 %v6282_v26  ;;  %v12345_v26 = vmov 0.0  }
0x218d   :  { %v10729_v32 = vpop.eup %10728  ;;  %v6289_v50 = vsel %vm3563_vm8, %v10727_v14, 0.0  ;;  %v6284_v4 = vmul.f32 1.442695, %v6269_v9 }
0x218e   :  { %v6292_v34 = vsel %vm3563_vm8, %v10729_v32, 0.0  ;;  %6290 = vadd.xlane.f32.xlu0 %v6289_v50  ;;  %v11950_v55 = vpop.permute.xlu0 %7100 }
0x218f   :  { %6293 = vadd.xlane.f32.xlu1 %v6292_v34  ;;  %10738 = vpow2.f32 %v6284_v4 }
0x2191   :  { %v11906_v1 = vpop.eup %10730 }
0x2192   :  { %v11908_v11 = vpop.eup %10732  ;;  %v6295_v46 = vsel %vm3563_vm8, %v11906_v1, 0.0 }
0x2193   :  { %6296 = vadd.xlane.f32.xlu0 %v6295_v46  ;;  %v6298_v37 = vsel %vm3563_vm8, %v11908_v11, 0.0 }
0x2194   :  { %6299 = vadd.xlane.f32.xlu1 %v6298_v37 }
0x2195   :  { %v11914_v27 = vpop.eup %10734 }
0x2196   :  { %v6301_v12 = vsel %vm3563_vm8, %v11914_v27, 0.0  ;;  %v11924_v5 = vpop.eup %10736 }
0x2197   :  { %6302 = vadd.xlane.f32.xlu0 %v6301_v12  ;;  %v6304_v8 = vsel %vm3563_vm8, %v11924_v5, 0.0 }
0x2199   :  { %v11926_v21 = vpop.eup %10738 }
0x219a   :  { %v6307_v53 = vsel %vm3563_vm8, %v11926_v21, 0.0 }
0x21a5   :  { %7176 = vrot.lane.b32.xlu1 %v11361_v18, %s10841_s8 }
0x21ad   :  { %7098 = vrot.lane.b32.xlu0 %v11355_v41, %s10841_s8 }
0x21c9   :  { %6305 = vadd.xlane.f32.xlu1 %v6304_v8 }
0x21cc   :  { %6308 = vadd.xlane.f32.xlu0 %v6307_v53 }
0x21da   :  { %7334 = vrot.lane.b32.xlu1 %v11371_v42, %s10840_s7 }
0x21de   :  { %7332 = vrot.lane.b32.xlu1 %v11371_v42, %s10841_s8 }
0x21e2   :  { %7490 = vrot.lane.b32.xlu1 %v11381_v48, %s10840_s7  ;;  %7256 = vrot.lane.b32.xlu0 %v11366_v44, %s10840_s7 }
0x21e6   :  { %7488 = vrot.lane.b32.xlu1 %v11381_v48, %s10841_s8  ;;  %7254 = vrot.lane.b32.xlu0 %v11366_v44, %s10841_s8 }
0x21ea   :  { %7412 = vrot.lane.b32.xlu0 %v11376_v45, %s10840_s7 }
0x21ee   :  { %7410 = vrot.lane.b32.xlu0 %v11376_v45, %s10841_s8 }
0x2218   :  { %v6288_v57 = vpop.xlane.xlu1 %6287 }
0x2219   :  { %10740 = vrcp.f32 %v6288_v57 }
0x221b   :  { %v6291_v28 = vpop.xlane.xlu0 %6290 }
0x221c   :  { %10742 = vrcp.f32 %v6291_v28  ;;  %v6294_v50 = vpop.xlane.xlu1 %6293 }
0x221d   :  { %10744 = vrcp.f32 %v6294_v50 }
0x2220   :  { %v6297_v34 = vpop.xlane.xlu0 %6296 }
0x2221   :  { %10746 = vrcp.f32 %v6297_v34  ;;  %v6300_v46 = vpop.xlane.xlu1 %6299 }
0x2222   :  { %10748 = vrcp.f32 %v6300_v46 }
0x2223   :  { %v10741_v37 = vpop.eup %10740 }
0x2224   :  { %v6311_v12 = vmul.f32 %v10741_v37, %v10725_v52  ;;  %v6303_v25 = vpop.xlane.xlu0 %6302 }
0x2225   :  { %10750 = vrcp.f32 %v6303_v25 }
0x2226   :  { %v10743_v60 = vpop.eup %10742  ;;  %10132 = vmatmul.mubr.msk.f32.vlgmr.msra.gmra.mrb[62].mxu1 %vm3654_vm10, %v6311_v12 }
0x2227   :  { %v10745_v22 = vpop.eup %10744  ;;  %v6313_v9 = vmul.f32 %v10743_v60, %v10727_v14  ;;  %10140 = vmatpush3.msk.msra.mxu1 %vm3658_vm9, %v11883_v3  ;;  %10141 = vmatprep.mubr.msk.f32.mxu1 %vm10827_vm3, %v12345_v26 }
0x2228   :  { %v6315_v4 = vmul.f32 %v10745_v22, %v10729_v32  ;;  %10149 = vmatprep.subr.mxu1 %v12345_v26 }
0x2229   :  { %10137 = vmatmul.mubr.msk.f32.vlgmr.msra.gmra.mrb[62].mxu0 %vm3654_vm10, %v6313_v9 }
0x222a   :  { %10142 = vmatmul.mubr.msk.f32.vlgmr.msra.gmra.mrb[64].mxu1 %vm3654_vm10, %v6315_v4  ;;  %10145 = vmatpush3.msk.msra.mxu0 %vm3658_vm9, %v11885_v0 }
0x222b   :  { %v10747_v52 = vpop.eup %10746  ;;  %10150 = vmatpush3.msk.msra.mxu1 %vm3658_vm9, %v11887_v35  ;;  %10146 = vmatprep.mubr.msk.f32.mxu0 %vm10827_vm3, %v12345_v26 }
0x222c   :  { %v10749_v3 = vpop.eup %10748  ;;  %v6317_v14 = vmul.f32 %v10747_v52, %v11906_v1  ;;  %10151 = vmatprep.mubr.msk.f32.mxu1 %vm10827_vm3, %v12345_v26  ;;  %10154 = vmatprep.subr.mxu0 %v12345_v26 }
0x222d   :  { %v6319_v32 = vmul.f32 %v10749_v3, %v11908_v11  ;;  %10159 = vmatprep.subr.mxu1 %v12345_v26 }
0x222e   :  { %10147 = vmatmul.mubr.msk.f32.vlgmr.msra.gmra.mrb[64].mxu0 %vm3654_vm10, %v6317_v14 }
0x222f   :  { %v10751_v0 = vpop.eup %10750  ;;  %10152 = vmatmul.mubr.msk.f32.vlgmr.msra.gmra.mrb[66].mxu1 %vm3654_vm10, %v6319_v32  ;;  %10155 = vmatpush3.msk.msra.mxu0 %vm3658_vm9, %v11889_v39  ;;  %v7177_v39 = vpop.permute.xlu1 %7176 }
0x2230   :  { %v6321_v35 = vmul.f32 %v10751_v0, %v11914_v27  ;;  %10160 = vmatpush3.msk.msra.mxu1 %vm3658_vm9, %v11891_v2  ;;  %10156 = vmatprep.mubr.msk.f32.mxu0 %vm10827_vm3, %v12345_v26  ;;  %v7099_v2 = vpop.permute.xlu0 %7098 }
0x2231   :  { %10164 = vmatprep.subr.mxu0 %v12345_v26  ;;  %10161 = vmatprep.mubr.msk.f32.mxu1 %vm10827_vm3, %v12345_v26 }
0x2232   :  { %10157 = vmatmul.mubr.msk.f32.vlgmr.msra.gmra.mrb[66].mxu0 %vm3654_vm10, %v6321_v35  ;;  %10169 = vmatprep.subr.mxu1 %v12345_v26 }
0x2233   :  { %10165 = vmatpush3.msk.msra.mxu0 %vm3658_vm9, %v11893_v38  ;;  %10166 = vmatprep.mubr.msk.f32.mxu0 %vm10827_vm3, %v12345_v26 }
0x2234   :  { %10174 = vmatprep.subr.mxu0 %v12345_v26 }
0x2256   :  { %v6306_v1 = vpop.xlane.xlu1 %6305 }
0x2257   :  { %10752 = vrcp.f32 %v6306_v1 }
0x2259   :  { %v6309_v11 = vpop.xlane.xlu0 %6308 }
0x225a   :  { %10754 = vrcp.f32 %v6309_v11  ;;  %v7335_v28 = vpop.permute.xlu1 %7334 }
0x225d   :  { %v7257_v8 = vpop.permute.xlu0 %7256 }
0x2261   :  { %v10753_v27 = vpop.eup %10752  ;;  %v7255_v50 = vpop.permute.xlu0 %7254 }
0x2262   :  { %v6323_v53 = vmul.f32 %v10753_v27, %v11924_v5 }
0x2264   :  { %v10755_v57 = vpop.eup %10754  ;;  %10162 = vmatmul.mubr.msk.f32.vlgmr.msra.gmra.mrb[68].mxu1 %vm3654_vm10, %v6323_v53 }
0x2265   :  { %v6325_v38 = vmul.f32 %v10755_v57, %v11926_v21  ;;  %10170 = vmatpush3.xpose.msk.msra.mxu1 %vm2899_vm7, %v11895_v19  ;;  %10171 = vmatprep.mubr.msk.f32.mxu1 %vm10827_vm3, %v12345_v26  ;;  %v7333_v19 = vpop.permute.xlu1 %7332 }
0x2266   :  { %10179 = vmatprep.subr.mxu1 %v12345_v26 }
0x2267   :  { %10167 = vmatmul.mubr.msk.f32.vlgmr.msra.gmra.mrb[68].mxu0 %vm3654_vm10, %v6325_v38 }
0x2268   :  { %10172 = vmatmul.mubr.msk.f32.vlgmr.msra.gmra.mrb[70].mxu1 %vm2899_vm7, %v11899_v54  ;;  %10175 = vmatpush3.xpose.msk.msra.mxu0 %vm2899_vm7, %v11897_v13  ;;  %v7413_v13 = vpop.permute.xlu0 %7412 }
0x2269   :  { %10180 = vmatpush3.xpose.msk.msra.mxu1 %vm2899_vm7, %v11950_v55  ;;  %10176 = vmatprep.mubr.msk.f32.mxu0 %vm10827_vm3, %v12345_v26  ;;  %v7491_v54 = vpop.permute.xlu1 %7490 }
0x226a   :  { %10181 = vmatprep.mubr.msk.f32.mxu1 %vm10827_vm3, %v12345_v26  ;;  %10184 = vmatprep.subr.mxu0 %v12345_v26 }
0x226b   :  { %10189 = vmatprep.subr.mxu1 %v12345_v26  ;;  %10177 = vmatmul.mubr.msk.f32.vlgmr.msra.gmra.mrb[70].mxu0 %vm2899_vm7, %v11901_v36 }
0x226c   :  { %10182 = vmatmul.mubr.msk.f32.vlgmr.msra.gmra.mrb[72].mxu1 %vm2899_vm7, %v7099_v2  ;;  %10185 = vmatpush3.xpose.msk.msra.mxu0 %vm2899_vm7, %v11948_v29  ;;  %v7411_v36 = vpop.permute.xlu0 %7410 }
0x226d   :  { %10190 = vmatpush3.xpose.msk.msra.mxu1 %vm2899_vm7, %v7257_v8  ;;  %10186 = vmatprep.mubr.msk.f32.mxu0 %vm10827_vm3, %v12345_v26  ;;  %v7489_v5 = vpop.permute.xlu1 %7488 }
0x226e   :  { %10191 = vmatprep.mubr.msk.f32.mxu1 %vm10827_vm3, %v12345_v26  ;;  %10194 = vmatprep.subr.mxu0 %v12345_v26 }
0x226f   :  { %10199 = vmatprep.subr.mxu1 %v12345_v26  ;;  %10187 = vmatmul.mubr.msk.f32.vlgmr.msra.gmra.mrb[72].mxu0 %vm2899_vm7, %v7177_v39 }
0x2270   :  { %10192 = vmatmul.mubr.msk.f32.vlgmr.msra.gmra.mrb[74].mxu1 %vm2899_vm7, %v7255_v50  ;;  %10195 = vmatpush3.xpose.msk.msra.mxu0 %vm2899_vm7, %v7335_v28 }
0x2271   :  { %10200 = vmatpush3.xpose.msk.msra.mxu1 %vm2899_vm7, %v7413_v13  ;;  %10196 = vmatprep.mubr.msk.f32.mxu0 %vm10827_vm3, %v12345_v26 }
0x2272   :  { %10201 = vmatprep.mubr.msk.f32.mxu1 %vm10827_vm3, %v12345_v26  ;;  %10204 = vmatprep.subr.mxu0 %v12345_v26 }
0x2273   :  { %10197 = vmatmul.mubr.msk.f32.vlgmr.msra.gmra.mrb[74].mxu0 %vm2899_vm7, %v7333_v19  ;;  %10209 = vmatprep.subr.mxu1 %v12345_v26 }
0x2274   :  { %10202 = vmatmul.mubr.msk.f32.vlgmr.msra.gmra.mrb[76].mxu1 %vm2899_vm7, %v7411_v36  ;;  %10205 = vmatpush3.xpose.msk.msra.mxu0 %vm2899_vm7, %v7491_v54 }
0x2275   :  { %10206 = vmatprep.mubr.msk.f32.mxu0 %vm10827_vm3, %v12345_v26  ;;  %10214 = vmatprep.subr.mxu0 %v12345_v26 }
0x2276   :  { %10211 = vmatprep.mubr.msk.f32.mxu1 %vm10827_vm3, %v12345_v26 }
0x2277   :  { %10207 = vmatmul.mubr.msk.f32.vlgmr.msra.gmra.mrb[76].mxu0 %vm2899_vm7, %v7489_v5 }
0x2278   :  { %10216 = vmatprep.mubr.msk.f32.mxu0 %vm10827_vm3, %v12345_v26 }
0x22f9   :  { %v12045_v21 = vpop.f32.mrb[62].mxu1 }
0x22fa   :  { %v10133_v29 = vpop.f32.mrb[63].mxu1 }
0x22fc   :  { %v12047_v55 = vpop.f32.mrb[62].mxu0 }
0x22fd   :  { %v12049_v34 = vpop.f32.mrb[64].mxu1  ;;  %v10138_v46 = vpop.f32.mrb[63].mxu0 }
0x22fe   :  { %v10143_v37 = vpop.f32.mrb[65].mxu1 }
0x2301   :  { %v12051_v12 = vpop.f32.mrb[64].mxu0 }
0x2302   :  { %v12053_v25 = vpop.f32.mrb[66].mxu1  ;;  %v10148_v60 = vpop.f32.mrb[65].mxu0 }
0x2303   :  { %v10153_v22 = vpop.f32.mrb[67].mxu1 }
0x2305   :  { %v12055_v9 = vpop.f32.mrb[66].mxu0 }
0x2306   :  { %v10158_v4 = vpop.f32.mrb[67].mxu0 }
0x2337   :  { %v12057_v52 = vpop.f32.mrb[68].mxu1 }
0x2338   :  { %v10163_v3 = vpop.f32.mrb[69].mxu1 }
0x233a   :  { %v12059_v14 = vpop.f32.mrb[68].mxu0 }
0x233b   :  { %v7016_v32 = vpop.f32.mrb[70].mxu1  ;;  %v10168_v0 = vpop.f32.mrb[69].mxu0 }
0x233c   :  { %v7566_v35 = vmul.f32 0.35355338, %v7016_v32  ;;  %v10173_v39 = vpop.f32.mrb[71].mxu1 }
0x233e   :  { %v7094_v2 = vpop.f32.mrb[70].mxu0  ;;  %v7574_v1 = vsel %vm3563_vm8, %v7566_v35, -inf }
0x233f   :  { %v7567_v11 = vmul.f32 0.35355338, %v7094_v2  ;;  %7575 = vmax.xlane.f32.xlu0 %v7574_v1  ;;  %v7172_v27 = vpop.f32.mrb[72].mxu1  ;;  %v10178_v8 = vpop.f32.mrb[71].mxu0 }
0x2340   :  { %v7568_v53 = vmul.f32 0.35355338, %v7172_v27  ;;  %v10183_v57 = vpop.f32.mrb[73].mxu1 }
0x2341   :  { %v7577_v28 = vsel %vm3563_vm8, %v7567_v11, -inf }
0x2342   :  { %7578 = vmax.xlane.f32.xlu1 %v7577_v28  ;;  %v7250_v38 = vpop.f32.mrb[72].mxu0  ;;  %v7580_v50 = vsel %vm3563_vm8, %v7568_v53, -inf }
0x2343   :  { %v7569_v19 = vmul.f32 0.35355338, %v7250_v38  ;;  %7581 = vmax.xlane.f32.xlu0 %v7580_v50  ;;  %v7328_v13 = vpop.f32.mrb[74].mxu1  ;;  %v10188_v54 = vpop.f32.mrb[73].mxu0 }
0x2344   :  { %v7570_v36 = vmul.f32 0.35355338, %v7328_v13  ;;  %v10193_v5 = vpop.f32.mrb[75].mxu1 }
0x2345   :  { %v7583_v29 = vsel %vm3563_vm8, %v7569_v19, -inf }
0x2346   :  { %v7586_v46 = vsel %vm3563_vm8, %v7570_v36, -inf  ;;  %v7406_v37 = vpop.f32.mrb[74].mxu0 }
0x2347   :  { %7584 = vmax.xlane.f32.xlu0 %v7583_v29  ;;  %7587 = vmax.xlane.f32.xlu1 %v7586_v46  ;;  %v7571_v60 = vmul.f32 0.35355338, %v7406_v37  ;;  %v7484_v22 = vpop.f32.mrb[76].mxu1  ;;  %v10198_v4 = vpop.f32.mrb[75].mxu0 }
0x2348   :  { %v7572_v3 = vmul.f32 0.35355338, %v7484_v22  ;;  %v10203_v32 = vpop.f32.mrb[77].mxu1 }
0x2349   :  { %v7589_v0 = vsel %vm3563_vm8, %v7571_v60, -inf }
0x234a   :  { %v7592_v39 = vsel %vm3563_vm8, %v7572_v3, -inf  ;;  %v7562_v2 = vpop.f32.mrb[76].mxu0 }
0x234b   :  { %7593 = vmax.xlane.f32.xlu1 %v7592_v39  ;;  %7590 = vmax.xlane.f32.xlu0 %v7589_v0  ;;  %v7573_v1 = vmul.f32 0.35355338, %v7562_v2  ;;  %v10208_v27 = vpop.f32.mrb[77].mxu0 }
0x234d   :  { %v7595_v8 = vsel %vm3563_vm8, %v7573_v1, -inf }
0x234f   :  { %7596 = vmax.xlane.f32.xlu0 %v7595_v8 }
0x235c   :  { %7662 = vrot.lane.b32.xlu1 %v11346_v33, %s10842_s9 }
0x2360   :  { %7816 = vrot.lane.b32.xlu1 %v11355_v41, %s10842_s9 }
0x2364   :  { %7893 = vrot.lane.b32.xlu1 %v11361_v18, %s10842_s9 }
0x2365   :  { %7739 = vrot.lane.b32.xlu0 %v11350_v40, %s10842_s9 }
0x2368   :  { %8047 = vrot.lane.b32.xlu1 %v11371_v42, %s10842_s9 }
0x2369   :  { %7970 = vrot.lane.b32.xlu0 %v11366_v44, %s10842_s9 }
0x23cc   :  { %v7576_v57 = vpop.xlane.xlu0 %7575 }
0x23cd   :  { %v7598_v28 = vsub.f32 %v7566_v35, %v7576_v57 }
0x23cf   :  { %v7606_v38 = vmul.f32 1.442695, %v7598_v28  ;;  %v7579_v50 = vpop.xlane.xlu1 %7578 }
0x23d0   :  { %v7582_v33 = vpop.xlane.xlu0 %7581  ;;  %v7599_v13 = vsub.f32 %v7567_v11, %v7579_v50 }
0x23d1   :  { %10756 = vpow2.f32 %v7606_v38  ;;  %v7600_v41 = vsub.f32 %v7568_v53, %v7582_v33 }
0x23d2   :  { %v7608_v54 = vmul.f32 1.442695, %v7599_v13 }
0x23d3   :  { %v7610_v5 = vmul.f32 1.442695, %v7600_v41 }
0x23d4   :  { %10758 = vpow2.f32 %v7608_v54  ;;  %v7585_v18 = vpop.xlane.xlu0 %7584  ;;  %v7588_v29 = vpop.xlane.xlu1 %7587 }
0x23d5   :  { %10760 = vpow2.f32 %v7610_v5  ;;  %v7601_v40 = vsub.f32 %v7569_v19, %v7585_v18  ;;  %v7602_v46 = vsub.f32 %v7570_v36, %v7588_v29 }
0x23d7   :  { %v7612_v42 = vmul.f32 1.442695, %v7601_v40  ;;  %v7614_v37 = vmul.f32 1.442695, %v7602_v46 }
0x23d8   :  { %v7591_v22 = vpop.xlane.xlu0 %7590  ;;  %v7594_v44 = vpop.xlane.xlu1 %7593 }
0x23d9   :  { %10762 = vpow2.f32 %v7612_v42  ;;  %v7603_v35 = vsub.f32 %v7571_v60, %v7591_v22  ;;  %v7604_v4 = vsub.f32 %v7572_v3, %v7594_v44 }
0x23da   :  { %10764 = vpow2.f32 %v7614_v37 }
0x23db   :  { %v12081_v32 = vpop.eup %10756  ;;  %v7616_v11 = vmul.f32 1.442695, %v7603_v35  ;;  %v7618_v53 = vmul.f32 1.442695, %v7604_v4  ;;  %v49_v4 = vld [vmem:[#allocation2 + $0x150] sm:$0xff] }
0x23dc   :  { %v7597_v0 = vpop.xlane.xlu0 %7596  ;;  %v7663_v39 = vpop.permute.xlu1 %7662  ;;  %v7622_v2 = vsel %vm3563_vm8, %v12081_v32, 0.0 }
0x23dd   :  { %10766 = vpow2.f32 %v7616_v11  ;;  %v7605_v19 = vsub.f32 %v7573_v1, %v7597_v0  ;;  %7623 = vadd.xlane.f32.xlu1 %v7622_v2  ;;  %10210 = vmatpush3.msk.msra.mxu1 %vm3658_vm9, %v7663_v39  ;;  %v107_v2 = vsub.s32 2, %v10887_v16 }
0x23de   :  { %v12086_v36 = vpop.eup %10758  ;;  %10768 = vpow2.f32 %v7618_v53  ;;  %10219 = vmatprep.subr.mxu1 %v12345_v26 }
0x23df   :  { %v12089_v60 = vpop.eup %10760  ;;  %v7620_v3 = vmul.f32 1.442695, %v7605_v19  ;;  %v7625_v27 = vsel %vm3563_vm8, %v12086_v36, 0.0 }
0x23e0   :  { %v7740_v8 = vpop.permute.xlu0 %7739  ;;  %v7628_v57 = vsel %vm3563_vm8, %v12089_v60, 0.0  ;;  %7626 = vadd.xlane.f32.xlu0 %v7625_v27 }
0x23e1   :  { %10770 = vpow2.f32 %v7620_v3  ;;  %7629 = vadd.xlane.f32.xlu1 %v7628_v57  ;;  %10215 = vmatpush3.msk.msra.mxu0 %vm3658_vm9, %v7740_v8  ;;  %v52_v3 = vld [vmem:[#allocation2 + $0x168] sm:$0xff]  ;;  %v12187_v8 = vld [vmem:[#allocation2 + $0xa0] sm:$0xff] }
0x23e2   :  { %10224 = vmatprep.subr.mxu0 %v12345_v26  ;;  %v108_v57 = vrot.slane %v12187_v8, %v107_v2 }
0x23e3   :  { %v12097_v1 = vpop.eup %10762 }
0x23e4   :  { %v12099_v28 = vpop.eup %10764  ;;  %v7631_v38 = vsel %vm3563_vm8, %v12097_v1, 0.0 }
0x23e5   :  { %7632 = vadd.xlane.f32.xlu0 %v7631_v38  ;;  %v7634_v50 = vsel %vm3563_vm8, %v12099_v28, 0.0 }
0x23e6   :  { %7635 = vadd.xlane.f32.xlu1 %v7634_v50  ;;  %v41_v50 = vld [vmem:[#allocation2 + $0x110] sm:$0xff] }
0x23e7   :  { %v12105_v33 = vpop.eup %10766 }
0x23e8   :  { %v12107_v13 = vpop.eup %10768  ;;  %v7637_v41 = vsel %vm3563_vm8, %v12105_v33, 0.0 }
0x23e9   :  { %7638 = vadd.xlane.f32.xlu0 %v7637_v41  ;;  %v7640_v54 = vsel %vm3563_vm8, %v12107_v13, 0.0 }
0x23ea   :  { %7641 = vadd.xlane.f32.xlu1 %v7640_v54 }
0x23eb   :  { %v12113_v5 = vpop.eup %10770 }
0x23ec   :  { %v7643_v18 = vsel %vm3563_vm8, %v12113_v5, 0.0 }
0x23ed   :  { %7644 = vadd.xlane.f32.xlu0 %v7643_v18 }
0x23fb   :  { %8201 = vrot.lane.b32.xlu1 %v11381_v48, %s10842_s9 }
0x23ff   :  { %8288 = vrot.lane.b32.xlu1 %v11851_v62, %s10824_s20  ;;  %v7971_v62 = vpop.permute.xlu0 %7970 }
0x2403   :  { %8292 = vrot.lane.b32.xlu1 %v11855_v15, %s10824_s20  ;;  %8124 = vrot.lane.b32.xlu0 %v11376_v45, %s10842_s9  ;;  %v7817_v45 = vpop.permute.xlu1 %7816 }
0x2407   :  { %8296 = vrot.lane.b32.xlu1 %v11859_v20, %s10824_s20  ;;  %8286 = vrot.lane.b32.xlu0 %v11849_v59, %s10824_s20  ;;  %v7894_v48 = vpop.permute.xlu1 %7893 }
0x240b   :  { %8300 = vrot.lane.b32.xlu1 %v11863_v30, %s10824_s20  ;;  %8290 = vrot.lane.b32.xlu0 %v11853_v23, %s10824_s20  ;;  %v8048_v59 = vpop.permute.xlu1 %8047 }
0x240f   :  { %8320 = vrot.lane.b32.xlu1 %v12047_v55, %s10843_s10  ;;  %8294 = vrot.lane.b32.xlu0 %v11857_v56, %s10824_s20 }
0x2413   :  { %8324 = vrot.lane.b32.xlu1 %v12051_v12, %s10843_s10  ;;  %8298 = vrot.lane.b32.xlu0 %v11861_v17, %s10824_s20 }
0x2417   :  { %8328 = vrot.lane.b32.xlu1 %v12055_v9, %s10843_s10  ;;  %8318 = vrot.lane.b32.xlu0 %v12045_v21, %s10843_s10 }
0x241b   :  { %8332 = vrot.lane.b32.xlu1 %v12059_v14, %s10843_s10  ;;  %8322 = vrot.lane.b32.xlu0 %v12049_v34, %s10843_s10 }
0x241f   :  { %8326 = vrot.lane.b32.xlu0 %v12053_v25, %s10843_s10 }
0x2423   :  { %8330 = vrot.lane.b32.xlu0 %v12057_v52, %s10843_s10 }
0x246a   :  { %v7624_v23 = vpop.xlane.xlu1 %7623 }
0x246b   :  { %10772 = vrcp.f32 %v7624_v23 }
0x246d   :  { %v7627_v15 = vpop.xlane.xlu0 %7626 }
0x246e   :  { %10774 = vrcp.f32 %v7627_v15  ;;  %v7630_v56 = vpop.xlane.xlu1 %7629  ;;  %v53_v15 = vld [vmem:[#allocation2 + $0x170] sm:$0xff] }
0x246f   :  { %10776 = vrcp.f32 %v7630_v56  ;;  %v54_v56 = vld [vmem:[#allocation2 + $0x178] sm:$0xff] }
0x2472   :  { %v7633_v20 = vpop.xlane.xlu0 %7632 }
0x2473   :  { %10778 = vrcp.f32 %v7633_v20  ;;  %v7636_v17 = vpop.xlane.xlu1 %7635 }
0x2474   :  { %10780 = vrcp.f32 %v7636_v17  ;;  %v12198_v17 = vpack.c.bf16 %v54_v56, %v53_v15 }
0x2475   :  { %v10773_v30 = vpop.eup %10772 }
0x2476   :  { %v7647_v21 = vmul.f32 %v10773_v30, %v12081_v32  ;;  %v7639_v55 = vpop.xlane.xlu0 %7638  ;;  %v50_v32 = vld [vmem:[#allocation2 + $0x158] sm:$0xff] }
0x2477   :  { %10782 = vrcp.f32 %v7639_v55  ;;  %v7642_v34 = vpop.xlane.xlu1 %7641  ;;  %v10498_v39 = vpack.c.bf16 %v50_v32, %v49_v4 }
0x2478   :  { %v10775_v12 = vpop.eup %10774  ;;  %10784 = vrcp.f32 %v7642_v34  ;;  %10212 = vmatmul.mubr.msk.f32.vlgmr.msra.gmra.mrb[78].mxu1 %vm3654_vm10, %v7647_v21 }
0x2479   :  { %v10777_v25 = vpop.eup %10776  ;;  %v7649_v9 = vmul.f32 %v10775_v12, %v12086_v36  ;;  %10220 = vmatpush3.msk.msra.mxu1 %vm3658_vm9, %v7817_v45  ;;  %10221 = vmatprep.mubr.msk.f32.mxu1 %vm10827_vm3, %v12345_v26  ;;  %v12346_v36 = vmov 0.0|0.0   ;;  %v44_v45 = vld [vmem:[#allocation2 + $0x128] sm:$0xff] }
0x247a   :  { %v7651_v52 = vmul.f32 %v10777_v25, %v12089_v60  ;;  %v7645_v14 = vpop.xlane.xlu0 %7644  ;;  %10229 = vmatprep.subr.mxu1 %v12345_v26  ;;  %v51_v60 = vld [vmem:[#allocation2 + $0x160] sm:$0xff] }
0x247b   :  { %10786 = vrcp.f32 %v7645_v14  ;;  %10217 = vmatmul.mubr.msk.f32.vlgmr.msra.gmra.mrb[78].mxu0 %vm3654_vm10, %v7649_v9  ;;  %v8202_v53 = vpop.permute.xlu1 %8201  ;;  %v10501_v27 = vpack.c.bf16 %v52_v3, %v51_v60 }
0x247c   :  { %10222 = vmatmul.mubr.msk.f32.vlgmr.msra.gmra.mrb[80].mxu1 %vm3654_vm10, %v7651_v52  ;;  %10225 = vmatpush3.msk.msra.mxu0 %vm3658_vm9, %v7894_v48 }
0x247d   :  { %v10779_v29 = vpop.eup %10778  ;;  %10230 = vmatpush3.msk.msra.mxu1 %vm3658_vm9, %v7971_v62  ;;  %10226 = vmatprep.mubr.msk.f32.mxu0 %vm10827_vm3, %v12345_v26 }
0x247e   :  { %v10781_v40 = vpop.eup %10780  ;;  %v7653_v46 = vmul.f32 %v10779_v29, %v12097_v1  ;;  %10231 = vmatprep.mubr.msk.f32.mxu1 %vm10827_vm3, %v12345_v26  ;;  %10234 = vmatprep.subr.mxu0 %v12345_v26  ;;  %v8125_v37 = vpop.permute.xlu0 %8124  ;;  %v180_v1 = vadd.f32 %v10987_v61, %v108_v57  ;;  %v43_v61 = vld [vmem:[#allocation2 + $0x120] sm:$0xff] }
0x247f   :  { %v7655_v42 = vmul.f32 %v10781_v40, %v12099_v28  ;;  %10239 = vmatprep.subr.mxu1 %v12345_v26  ;;  %v10493_v48 = vpack.c.bf16 %v44_v45, %v43_v61  ;;  %v8289_v29 = vpop.permute.xlu1 %8288 }
0x2480   :  { %10227 = vmatmul.mubr.msk.f32.vlgmr.msra.gmra.mrb[80].mxu0 %vm3654_vm10, %v7653_v46 }
0x2481   :  { %v10783_v22 = vpop.eup %10782  ;;  %10232 = vmatmul.mubr.msk.f32.vlgmr.msra.gmra.mrb[82].mxu1 %vm3654_vm10, %v7655_v42  ;;  %10235 = vmatpush3.msk.msra.mxu0 %vm3658_vm9, %v8048_v59 }
0x2482   :  { %v10785_v44 = vpop.eup %10784  ;;  %v7657_v35 = vmul.f32 %v10783_v22, %v12105_v33  ;;  %10240 = vmatpush3.msk.msra.mxu1 %vm3658_vm9, %v8125_v37  ;;  %10236 = vmatprep.mubr.msk.f32.mxu0 %vm10827_vm3, %v12345_v26  ;;  %v42_v33 = vld [vmem:[#allocation2 + $0x118] sm:$0xff]  ;;  %v8287_v14 = vpop.permute.xlu0 %8286 }
0x2483   :  { %v7659_v11 = vmul.f32 %v10785_v44, %v12107_v13  ;;  %10241 = vmatprep.mubr.msk.f32.mxu1 %vm10827_vm3, %v12345_v26  ;;  %10244 = vmatprep.subr.mxu0 %v12345_v26  ;;  %v10489_v13 = vpack.c.bf16 %v42_v33, %v41_v50  ;;  %v8293_v46 = vpop.permute.xlu1 %8292  ;;  %v8374_v60 = vsel %vm2899_vm7, %v11624_v47, %v8287_v14 }
0x2484   :  { %10237 = vmatmul.mubr.msk.f32.vlgmr.msra.gmra.mrb[82].mxu0 %vm3654_vm10, %v7657_v35  ;;  %v8377_v33 = vsel %vm2899_vm7, %v11630_v31, %v8293_v46  ;;  %v55_v46 = vld [vmem:[#allocation2 + $0x180] sm:$0xff] }
0x2485   :  { %v10787_v0 = vpop.eup %10786  ;;  %10242 = vmatmul.mubr.msk.f32.vlgmr.msra.gmra.mrb[84].mxu1 %vm3654_vm10, %v7659_v11  ;;  %10245 = vmatpush3.msk.msra.mxu0 %vm3658_vm9, %v8202_v53 }
0x2486   :  { %v7661_v19 = vmul.f32 %v10787_v0, %v12113_v5  ;;  %10246 = vmatprep.mubr.msk.f32.mxu0 %vm10827_vm3, %v12345_v26  ;;  %10497 = vmatprep.subr.bf16.mxu0 %v12346_v36  ;;  %v8291_v40 = vpop.permute.xlu0 %8290 }
0x2487   :  { %10490 = vmatprep.subr.bf16.mxu1 %v10489_v13  ;;  %v8297_v37 = vpop.permute.xlu1 %8296 }
0x2488   :  { %10247 = vmatmul.mubr.msk.f32.vlgmr.msra.gmra.mrb[84].mxu0 %vm3654_vm10, %v7661_v19  ;;  %10492 = vmatpush3.bf16.msra.mxu1 %v10489_v13  ;;  %v8379_v45 = vsel %vm2899_vm7, %v11634_v63, %v8297_v37  ;;  %v384_v63 = vsub.s32 5, %v10887_v16 }
0x2489   :  { %10499 = vmatpush3.bf16.msra.mxu0 %v10498_v39  ;;  %10268 = vmatprep.mubr.msk.f32.mxu0 %vm10827_vm3, %v12345_v26 }
0x248a   :  { %10500 = vmatprep.subr.bf16.mxu0 %v12346_v36  ;;  %10494 = vmatprep.subr.bf16.mxu1 %v10493_v48  ;;  %v8295_v42 = vpop.permute.xlu0 %8294  ;;  %v8375_v36 = vsel %vm2899_vm7, %v11628_v10, %v8289_v29  ;;  %v8376_v10 = vsel %vm2899_vm7, %v11626_v51, %v8291_v40  ;;  %v385_v40 = vrot.slane %v12187_v8, %v384_v63 }
0x248b   :  { %v8301_v44 = vpop.permute.xlu1 %8300  ;;  %v8378_v31 = vsel %vm2899_vm7, %v11632_v24, %v8295_v42  ;;  %v56_v42 = vld [vmem:[#allocation2 + $0x188] sm:$0xff] }
0x248c   :  { %10496 = vmatpush3.bf16.msra.mxu1 %v10493_v48  ;;  %v8381_v24 = vsel %vm2899_vm7, %v11638_v58, %v8301_v44  ;;  %v459_v44 = vadd.f32 %v11001_v7, %v385_v40 }
0x248d   :  { %10502 = vmatpush3.bf16.msra.mxu0 %v10501_v27  ;;  %10504 = vmatprep.subr.bf16.mxu1 %v12198_v17 }
0x248e   :  { %v8299_v22 = vpop.permute.xlu0 %8298 }
0x248f   :  { %v8321_v4 = vpop.permute.xlu1 %8320 }
0x2490   :  { %10269 = vmatmul.mubr.msk.f32.vlgmr.msra.gmra.mrb[86].mxu0 %vm109_vm4, %v180_v1  ;;  %v8384_v3 = vsel %vm8382_vm11, %v8375_v36, %v8321_v4  ;;  %v8402_v4 = vsub.s32 6, %v10887_v16 }
0x2492   :  { %v8319_v35 = vpop.permute.xlu0 %8318 }
0x2493   :  { %v8325_v11 = vpop.permute.xlu1 %8324  ;;  %v8383_v27 = vsel %vm8382_vm11, %v8374_v60, %v8319_v35  ;;  %v464_v35 = vadd.f32 %v10998_v6, %v385_v40  ;;  %v12355_v40 = vld [vmem:[#allocation13_spill] sm:$0xff] }
0x2494   :  { %v8386_v13 = vsel %vm8382_vm11, %v8377_v33, %v8325_v11 }
0x2496   :  { %v8323_v32 = vpop.permute.xlu0 %8322 }
0x2497   :  { %v8329_v0 = vpop.permute.xlu1 %8328  ;;  %v8385_v47 = vsel %vm8382_vm11, %v8376_v10, %v8323_v32  ;;  %v8403_v32 = vrot.slane %v12187_v8, %v8402_v4 }
0x2498   :  { %v8388_v48 = vsel %vm8382_vm11, %v8379_v45, %v8329_v0  ;;  %v12348_v45 = vld [vmem:[#allocation5_spill] sm:$0xff] }
0x249a   :  { %v8327_v53 = vpop.permute.xlu0 %8326 }
0x249b   :  { %v8333_v2 = vpop.permute.xlu1 %8332  ;;  %v8387_v51 = vsel %vm8382_vm11, %v8378_v31, %v8327_v53 }
0x249e   :  { %v8331_v39 = vpop.permute.xlu0 %8330 }
0x254b   :  { %v7735_v28 = vpop.f32.mrb[78].mxu1 }
0x254c   :  { %8350 = vrot.lane.b32.xlu0 %v7735_v28, %s10844_s11  ;;  %v10213_v38 = vpop.f32.mrb[79].mxu1 }
0x254e   :  { %v7812_v41 = vpop.f32.mrb[78].mxu0 }
0x254f   :  { %v7889_v54 = vpop.f32.mrb[80].mxu1  ;;  %v10218_v5 = vpop.f32.mrb[79].mxu0  ;;  %8352 = vrot.lane.b32.xlu1 %v7812_v41, %s10844_s11 }
0x2550   :  { %8354 = vrot.lane.b32.xlu0 %v7889_v54, %s10844_s11  ;;  %v10223_v18 = vpop.f32.mrb[81].mxu1 }
0x2553   :  { %v7966_v59 = vpop.f32.mrb[80].mxu0 }
0x2554   :  { %v8043_v62 = vpop.f32.mrb[82].mxu1  ;;  %8356 = vrot.lane.b32.xlu1 %v7966_v59, %s10844_s11  ;;  %v10228_v23 = vpop.f32.mrb[81].mxu0 }
0x2555   :  { %8358 = vrot.lane.b32.xlu0 %v8043_v62, %s10844_s11  ;;  %v10233_v20 = vpop.f32.mrb[83].mxu1 }
0x2557   :  { %v8120_v30 = vpop.f32.mrb[82].mxu0 }
0x2558   :  { %v8197_v21 = vpop.f32.mrb[84].mxu1  ;;  %8360 = vrot.lane.b32.xlu1 %v8120_v30, %s10844_s11  ;;  %v10238_v55 = vpop.f32.mrb[83].mxu0 }
0x2559   :  { %8362 = vrot.lane.b32.xlu0 %v8197_v21, %s10844_s11  ;;  %v10243_v34 = vpop.f32.mrb[85].mxu1  ;;  %v8380_v55 = vsel %vm2899_vm7, %v11636_v43, %v8299_v22  ;;  %v10507_v22 = vpack.c.bf16 %v56_v42, %v55_v46  ;;  %v12356_v42 = vld [vmem:[#allocation15_spill] sm:$0xff] }
0x255a   :  { %v8390_v34 = vsel %vm8382_vm11, %v8381_v24, %v8333_v2  ;;  %v12353_v24 = vld [vmem:[#allocation14_spill] sm:$0xff] }
0x255b   :  { %v8274_v12 = vpop.f32.mrb[84].mxu0 }
0x255c   :  { %8364 = vrot.lane.b32.xlu1 %v8274_v12, %s10844_s11  ;;  %v10248_v25 = vpop.f32.mrb[85].mxu0  ;;  %v8389_v12 = vsel %vm8382_vm11, %v8380_v55, %v8331_v39  ;;  %v12354_v55 = vld [vmem:[#allocation11_spill] sm:$0xff] }
0x2563   :  { %v12204_v9 = vpop.f32.mrb[86].mxu0 }
0x2564   :  { %v10270_v52 = vpop.f32.mrb[87].mxu0 }
0x25be   :  { %v8351_v19 = vpop.permute.xlu0 %8350 }
0x25bf   :  { %v8392_v1 = vsel %vm8391_vm12, %v8383_v27, %v8351_v19 }
0x25c1   :  { %v8353_v57 = vpop.permute.xlu1 %8352 }
0x25c2   :  { %v8355_v28 = vpop.permute.xlu0 %8354  ;;  %v8393_v38 = vsel %vm8391_vm12, %v8384_v3, %v8353_v57  ;;  %v45_v57 = vld [vmem:[#allocation2 + $0x130] sm:$0xff] }
0x25c3   :  { %v8412_v50 = vcombine.low %v8392_v1, %v8393_v38  ;;  %v8394_v54 = vsel %vm8391_vm12, %v8385_v47, %v8355_v28  ;;  %v46_v1 = vld [vmem:[#allocation2 + $0x138] sm:$0xff]  ;;  %v48_v47 = vld [vmem:[#allocation2 + $0x148] sm:$0xff] }
0x25c4   :  { %v10511_v28 = vpack.c.bf16 %v46_v1, %v45_v57  ;;  %v8887_v1 = vsub.s32 7, %v10887_v16 }
0x25c5   :  { %v8420_v59 = vrot.slane %v8412_v50, %v10918_v49 }
0x25c6   :  { %v8357_v41 = vpop.permute.xlu1 %8356 }
0x25c7   :  { %v8359_v5 = vpop.permute.xlu0 %8358  ;;  %v8395_v18 = vsel %vm8391_vm12, %v8386_v13, %v8357_v41  ;;  %v47_v13 = vld [vmem:[#allocation2 + $0x140] sm:$0xff] }
0x25c8   :  { %v8413_v61 = vcombine.low %v8394_v54, %v8395_v18  ;;  %v8396_v15 = vsel %vm8391_vm12, %v8387_v51, %v8359_v5  ;;  %v10515_v54 = vpack.c.bf16 %v48_v47, %v47_v13  ;;  %v12347_v5 = vld [vmem:[#allocation6_spill] sm:$0xff] }
0x25ca   :  { %v8427_v62 = vrot.slane %v8413_v61, %v10918_v49  ;;  %v8361_v23 = vpop.permute.xlu1 %8360 }
0x25cb   :  { %v8397_v56 = vsel %vm8391_vm12, %v8388_v48, %v8361_v23  ;;  %v8363_v30 = vpop.permute.xlu0 %8362  ;;  %v12349_v48 = vld [vmem:[#allocation10_spill] sm:$0xff]  ;;  %v12350_v23 = vld [vmem:[#allocation7_spill] sm:$0xff] }
0x25cc   :  { %v8428_v20 = vcombine.low %v8420_v59, %v8427_v62  ;;  %v8429_v21 = vcombine.low %v8396_v15, %v8397_v56  ;;  %v8398_v52 = vsel %vm8391_vm12, %v8389_v12, %v8363_v30  ;;  %v12351_v56 = vld [vmem:[#allocation8_spill] sm:$0xff]  ;;  %v12352_v30 = vld [vmem:[#allocation9_spill] sm:$0xff] }
0x25ce   :  { %10257 = vmatprep.mubr.msk.f32.mxu1 %vm109_vm4, %v8428_v20  ;;  %v8365_v25 = vpop.permute.xlu1 %8364  ;;  %v8437_v58 = vrot.slane %v8429_v21, %v10918_v49 }
0x25cf   :  { %v8399_v14 = vsel %vm8391_vm12, %v8390_v34, %v8365_v25  ;;  %v9092_v34 = vcombine.low %v12354_v55, %v12353_v24 }
0x25d0   :  { %v8430_v29 = vcombine.low %v8398_v52, %v8399_v14 }
0x25d2   :  { %v8444_v43 = vrot.slane %v8430_v29, %v10918_v49 }
0x25d4   :  { %v8445_v37 = vcombine.low %v8437_v58, %v8444_v43  ;;  %v9099_v43 = vrot.slane %v9092_v34, %v10918_v49 }
0x25d6   :  { %10258 = vmatmul.mubr.msk.f32.vlgmr.msra.gmra.mrb[86].mxu1 %vm109_vm4, %v8445_v37  ;;  %v9100_v4 = vcombine.low %v9099_v43, %v9099_v43 }
0x25d7   :  { %10506 = vmatpush3.bf16.msra.mxu1 %v12198_v17  ;;  %10279 = vmatprep.mubr.msk.f32.mxu1 %vm109_vm4, %v459_v44 }
0x25d8   :  { %10508 = vmatprep.subr.bf16.mxu1 %v10507_v22 }
0x25db   :  { %10510 = vmatpush3.bf16.msra.mxu1 %v10507_v22 }
0x25dc   :  { %10512 = vmatprep.subr.bf16.mxu1 %v10511_v28 }
0x25de   :  { %10280 = vmatmul.mubr.msk.f32.vlgmr.msra.gmra.mrb[88].mxu1 %vm109_vm4, %v464_v35 }
0x25df   :  { %10514 = vmatpush3.bf16.msra.mxu1 %v10511_v28 }
0x25e0   :  { %10516 = vmatprep.subr.bf16.mxu1 %v10515_v54 }
0x25e3   :  { %10518 = vmatpush3.bf16.msra.mxu1 %v10515_v54 }
0x26a9   :  { %v10259_v11 = vpop.f32.mrb[86].mxu1 }
0x26aa   :  { %v8522_v53 = vadd.f32 %v10259_v11, %v8403_v32  ;;  %v8516_v0 = vpop.f32.mrb[87].mxu1  ;;  %v12357_v11 = vld [vmem:[#allocation12_spill] sm:$0xff] }
0x26ab   :  { %v8517_v7 = vadd.f32 %v8516_v0, %v8403_v32 }
0x26ac   :  { %v8551_v39 = vrot.slane %v8522_v53, %v10918_v49  ;;  %v8544_v6 = vcombine.high %v8522_v53, %v8522_v53  ;;  %v9081_v53 = vcombine.low %v12357_v11, %v12356_v42 }
0x26ad   :  { %v8527_v17 = vcombine.high %v8517_v7, %v8517_v7  ;;  %v8534_v19 = vrot.slane %v8517_v7, %v10918_v49 }
0x26ae   :  { %v8559_v2 = vcombine.high %v8551_v39, %v8551_v39  ;;  %8569 = vrot.lane.b32.xlu0 %v8551_v39, %s10832_s1  ;;  %v8558_v3 = vrot.slane %v8544_v6, %v10918_v49  ;;  %v9088_v7 = vrot.slane %v9081_v53, %v10918_v49  ;;  %v58_v6 = vld [vmem:[#allocation2 + $0x198] sm:$0xff] }
0x26af   :  { %v8541_v36 = vrot.slane %v8527_v17, %v10918_v49  ;;  %v8542_v60 = vcombine.high %v8534_v19, %v8534_v19 }
0x26b0   :  { %8571 = vrot.lane.b32.xlu1 %v8559_v2, %s10832_s1  ;;  %v8560_v38 = vcombine.high %v8558_v3, %v8558_v3 }
0x26b1   :  { %v8543_v27 = vcombine.high %v8541_v36, %v8541_v36 }
0x26b2   :  { %8561 = vrot.lane.b32.xlu0 %v8534_v19, %s10832_s1  ;;  %v57_v19 = vld [vmem:[#allocation2 + $0x190] sm:$0xff] }
0x26b4   :  { %8563 = vrot.lane.b32.xlu1 %v8542_v60, %s10832_s1  ;;  %v60_v60 = vld [vmem:[#allocation2 + $0x1a8] sm:$0xff] }
0x26b6   :  { %8565 = vrot.lane.b32.xlu0 %v8541_v36, %s10832_s1  ;;  %v10519_v36 = vpack.c.bf16 %v58_v6, %v57_v19 }
0x26b8   :  { %8567 = vrot.lane.b32.xlu1 %v8543_v27, %s10832_s1  ;;  %10520 = vmatprep.subr.bf16.mxu0 %v10519_v36  ;;  %v8873_v27 = vcombine.low %v12204_v9, %v12204_v9 }
0x26b9   :  { %10522 = vmatpush3.bf16.msra.mxu0 %v10519_v36 }
0x26ba   :  { %8573 = vrot.lane.b32.xlu0 %v8558_v3, %s10832_s1  ;;  %v8880_v57 = vrot.slane %v8873_v27, %v10918_v49 }
0x26bc   :  { %8575 = vrot.lane.b32.xlu1 %v8560_v38, %s10832_s1  ;;  %v8881_v28 = vcombine.low %v8880_v57, %v8880_v57  ;;  %v8888_v38 = vrot.slane %v12187_v8, %v8887_v1  ;;  %v61_v8 = vld [vmem:[#allocation2 + $0x1b0] sm:$0xff] }
0x2720   :  { %v8570_v50 = vpop.permute.xlu0 %8569 }
0x2721   :  { %v8589_v21 = vadd.f32 %v8570_v50, %v12352_v30  ;;  %v12358_v30 = vsub.s32 0, %v10887_v16 }
0x2722   :  { %v8572_v33 = vpop.permute.xlu1 %8571 }
0x2723   :  { %v8590_v51 = vadd.f32 %v8572_v33, %v12349_v48 }
0x2724   :  { %v8562_v10 = vpop.permute.xlu0 %8561 }
0x2725   :  { %v8585_v31 = vadd.f32 %v8562_v10, %v12348_v45  ;;  %v8772_v25 = vcombine.low %v8589_v21, %v8590_v51 }
0x2726   :  { %v8564_v41 = vpop.permute.xlu1 %8563 }
0x2727   :  { %v8586_v18 = vadd.f32 %v8564_v41, %v12347_v5  ;;  %v8780_v44 = vrot.slane %v8772_v25, %v10918_v49 }
0x2728   :  { %v8566_v61 = vpop.permute.xlu0 %8565 }
0x2729   :  { %v8755_v62 = vcombine.low %v8585_v31, %v8586_v18  ;;  %v8587_v15 = vadd.f32 %v8566_v61, %v12350_v23  ;;  %v63_v23 = vld [vmem:[#allocation2 + $0x1c0] sm:$0xff] }
0x272a   :  { %v8568_v59 = vpop.permute.xlu1 %8567 }
0x272b   :  { %v8588_v20 = vadd.f32 %v8568_v59, %v12351_v56  ;;  %v8763_v14 = vrot.slane %v8755_v62, %v10918_v49  ;;  %v62_v59 = vld [vmem:[#allocation2 + $0x1b8] sm:$0xff] }
0x272c   :  { %v8574_v63 = vpop.permute.xlu0 %8573  ;;  %v10527_v62 = vpack.c.bf16 %v62_v59, %v61_v8 }
0x272d   :  { %v8756_v12 = vcombine.low %v8587_v15, %v8588_v20  ;;  %v8591_v46 = vadd.f32 %v8574_v63, %v12355_v40  ;;  %v64_v15 = vld [vmem:[#allocation2 + $0x1c8] sm:$0xff] }
0x272e   :  { %v8576_v52 = vpop.permute.xlu1 %8575  ;;  %v10531_v56 = vpack.c.bf16 %v64_v15, %v63_v23  ;;  %v10797_v20 = vld [vmem:[#allocation2 + $0xa8] sm:$0xff] }
0x272f   :  { %v8770_v29 = vrot.slane %v8756_v12, %v10918_v49  ;;  %v8592_v58 = vadd.f32 %v8576_v52, %v12356_v42  ;;  %v8904_v21 = vrot.slane %v10797_v20, %v12358_v30 }
0x2731   :  { %v8771_v37 = vcombine.low %v8763_v14, %v8770_v29  ;;  %v8773_v22 = vcombine.low %v8591_v46, %v8592_v58 }
0x2733   :  { %v8787_v35 = vrot.slane %v8773_v22, %v10918_v49  ;;  %8789 = vrot.lane.b32.xlu0 %v8771_v37, %s10832_s1  ;;  %v12359_v37 = vsub.s32 1, %v10887_v16 }
0x2735   :  { %v8788_v32 = vcombine.low %v8780_v44, %v8787_v35  ;;  %v8999_v22 = vrot.slane %v10797_v20, %v12359_v37 }
0x2737   :  { %9101 = vrot.lane.b32.xlu0 %v9100_v4, %s10831_s0  ;;  %8791 = vrot.lane.b32.xlu1 %v8788_v32, %s10832_s1 }
0x273b   :  { %9108 = vrot.lane.b32.xlu0 %v12345_v26, %s10833_s28  ;;  %v59_v26 = vld [vmem:[#allocation2 + $0x1a0] sm:$0xff] }
0x273c   :  { %v10523_v3 = vpack.c.bf16 %v60_v60, %v59_v26 }
0x273e   :  { %10524 = vmatprep.subr.bf16.mxu0 %v10523_v3 }
0x273f   :  { %10526 = vmatpush3.bf16.msra.mxu0 %v10523_v3 }
0x2740   :  { %10528 = vmatprep.subr.bf16.mxu0 %v10527_v62 }
0x27a5   :  { %v8790_v0 = vpop.permute.xlu0 %8789 }
0x27a6   :  { %10290 = vmatprep.mubr.msk.f32.mxu1 %vm109_vm4, %v8790_v0 }
0x27a9   :  { %v9102_v39 = vpop.permute.xlu0 %9101  ;;  %v8792_v2 = vpop.permute.xlu1 %8791 }
0x27aa   :  { %v9104_v17 = vsel %vm476_vm2, %v9088_v7, %v9102_v39  ;;  %10291 = vmatmul.mubr.msk.f32.vlgmr.msra.gmra.mrb[88].mxu1 %vm109_vm4, %v8792_v2 }
0x27ab   :  { %9106 = vrot.lane.b32.xlu1 %v9104_v17, %s10833_s28 }
0x27ad   :  { %v9109_v35 = vpop.permute.xlu0 %9108 }
0x281d   :  { %v9107_v53 = vpop.permute.xlu1 %9106 }
0x287d   :  { %v10292_v50 = vpop.f32.mrb[88].mxu1 }
0x287e   :  { %v8884_v33 = vadd.f32 %v10292_v50, %v8881_v28  ;;  %v8863_v10 = vpop.f32.mrb[89].mxu1 }
0x287f   :  { %v8883_v13 = vadd.f32 %v8881_v28, %v8863_v10 }
0x2880   :  { %v8890_v47 = vadd.f32 %v8888_v38, %v8884_v33 }
0x2881   :  { %v8889_v41 = vadd.f32 %v8888_v38, %v8883_v13 }
0x2882   :  { %v8892_v54 = vmul.f32 0.5, %v8890_v47 }
0x2883   :  { %v8891_v5 = vmul.f32 0.5, %v8889_v41 }
0x2884   :  { %10788 = vtanh.f32 %v8892_v54 }
0x2885   :  { %10790 = vtanh.f32 %v8891_v5 }
0x288e   :  { %v10789_v18 = vpop.eup %10788 }
0x288f   :  { %v10791_v61 = vpop.eup %10790  ;;  %v8896_v9 = vmul.f32 0.5, %v10789_v18 }
0x2890   :  { %v8895_v45 = vmul.f32 0.5, %v10791_v61 }
0x2891   :  { %v8898_v49 = vadd.f32 0.5, %v8896_v9 }
0x2892   :  { %v8897_v31 = vadd.f32 0.5, %v8895_v45 }
0x2893   :  { %v8900_v51 = vmul.f32 %v8898_v49, %v8890_v47 }
0x2894   :  { %v8899_v48 = vmul.f32 %v8897_v31, %v8889_v41 }
0x2896   :  { %10301 = vmatprep.mubr.msk.f32.mxu0 %vm109_vm4, %v8899_v48 }
0x2897   :  { %10302 = vmatmul.mubr.msk.f32.vlgmr.msra.gmra.mrb[88].mxu0 %vm109_vm4, %v8900_v51 }
0x2898   :  { %10530 = vmatpush3.bf16.msra.mxu0 %v10527_v62 }
0x2899   :  { %10532 = vmatprep.subr.bf16.mxu0 %v10531_v56 }
0x289c   :  { %10534 = vmatpush3.bf16.msra.mxu0 %v10531_v56 }
0x296a   :  { %v10303_v63 = vpop.f32.mrb[88].mxu0 }
0x296b   :  { %v8983_v24 = vadd.f32 %v10303_v63, %v8904_v21  ;;  %v8977_v55 = vpop.f32.mrb[89].mxu0 }
0x296c   :  { %v8978_v34 = vadd.f32 %v8977_v55, %v8904_v21 }
0x296d   :  { %v8987_v12 = vmul.f32 0.5, %v8983_v24 }
0x296e   :  { %v8986_v25 = vmul.f32 0.5, %v8978_v34 }
0x296f   :  { %10792 = vtanh.f32 %v8987_v12 }
0x2970   :  { %10794 = vtanh.f32 %v8986_v25 }
0x2979   :  { %v10793_v52 = vpop.eup %10792 }
0x297a   :  { %v10795_v14 = vpop.eup %10794  ;;  %v8991_v29 = vmul.f32 0.5, %v10793_v52 }
0x297b   :  { %v8990_v40 = vmul.f32 0.5, %v10795_v14 }
0x297c   :  { %v8993_v46 = vadd.f32 0.5, %v8991_v29 }
0x297d   :  { %v8992_v42 = vadd.f32 0.5, %v8990_v40 }
0x297e   :  { %v8995_v43 = vmul.f32 %v8993_v46, %v8983_v24 }
0x297f   :  { %v8994_v58 = vmul.f32 %v8992_v42, %v8978_v34 }
0x2981   :  { %10312 = vmatprep.mubr.msk.f32.mxu0 %vm109_vm4, %v8994_v58 }
0x2982   :  { %10313 = vmatmul.mubr.msk.f32.vlgmr.msra.gmra.mrb[90].mxu0 %vm109_vm4, %v8995_v43 }
0x2a55   :  { %v10314_v44 = vpop.f32.mrb[90].mxu0 }
0x2a56   :  { %v9078_v4 = vadd.f32 %v10314_v44, %v8999_v22  ;;  %v9072_v32 = vpop.f32.mrb[91].mxu0 }
0x2a57   :  { %v9073_v11 = vadd.f32 %v9072_v32, %v8999_v22 }
0x2a58   :  { %v9113_v0 = vsel %vm109_vm4, %v9078_v4, %v9109_v35 }
0x2a59   :  { %v9112_v7 = vsel %vm109_vm4, %v9073_v11, %v9107_v53  ;;  %9116 = vst.msk [vmem:[%s12315_s2 + $0x8] sm:$0xff] %vm9114_vm13, %v9113_v0 }
0x2a5a   :  { %9115 = vst.msk [vmem:[%s12315_s2] sm:$0xff] %vm9114_vm13, %v9112_v7 }
0x2a5b   :  { %9121 = vsyncpa [#allocation3], 1 }

</bundles_post_ra>
